<compile_context>
chip_gen: v5e
topology: v5e:2x2
jax: 0.10.0
libtpu: 0.0.40
codegen_flags: <defaults>
</compile_context>

<pallas_src>
import functools

import jax
import jax.numpy as jnp
from jax import lax
from jax.experimental import pallas as pl
from jax.experimental.pallas import tpu as pltpu

LEAKY_SLOPE = 0.01   # torch.nn.LeakyReLU default negative_slope
BN_EPS = 1e-5        # torch.nn.BatchNorm default eps
PAD = 3              # spatial halo on each side (conv1 needs 3, conv2 needs 2)


def _round_up(v, m):
    return (v + m - 1) // m * m


# -----------------------------------------------------------------------------
# Pallas kernel: the whole ChannelBlock forward for one batch element.
# Activations are (channels, NP): channels on sublanes, padded-flat pixels on
# lanes (NP is a multiple of 128).  Conv taps are built in VMEM via static
# lane-offset slices of the flattened padded image.
# -----------------------------------------------------------------------------
def channel_block_kernel(x_ref,                      # (1, Cin, XL) bf16 padded image
                         mask_ref,                   # (1, NP) f32 valid-pixel mask
                         w1_ref, b1_ref,             # (9,  C, Cin) bf16, (C, 1) f32
                         w2_ref, b2_ref,             # (25, C, Cin) bf16, (C, 1) f32
                         fc1wa_ref, fc1wb_ref, fc1b_ref,   # (C, C), (C, C), (C, 1) f32
                         fc2w_ref, fc2b_ref,         # (C, C) f32, (C, 1) f32
                         w3a_ref, w3b_ref, b3_ref,   # (C, C) bf16 x2, (C, 1) f32
                         out_ref,                    # (1, C, NP) f32
                         *, wp, inv_hw):
    np_lanes = out_ref.shape[2]
    x = x_ref[0]                                     # (Cin, XL) bf16

    def conv_branch(w_ref, b_ref, k, dil, shift):
        # out[co, p] = sum_{ci,ky,kx} w[ky*k+kx, co, ci]
        #                             * x[ci, p + (ky*dil+shift)*wp + kx*dil+shift]
        acc = None
        for t in range(k * k):
            ky, kx = divmod(t, k)
            off = (ky * dil + shift) * wp + (kx * dil + shift)
            tap = x[:, off:off + np_lanes]           # (Cin, NP) static lane shift
            d = jnp.dot(w_ref[t], tap, preferred_element_type=jnp.float32)
            acc = d if acc is None else acc + d
        c = acc + b_ref[...]                         # (C, NP) f32  (+BN folded)
        return jnp.maximum(c, LEAKY_SLOPE * c)       # LeakyReLU (max form)

    r1 = conv_branch(w1_ref, b1_ref, k=3, dil=3, shift=0)   # conv1: 3x3 dil 3 pad 3
    r2 = conv_branch(w2_ref, b2_ref, k=5, dil=1, shift=1)   # conv2: 5x5 pad 2

    # Channel-attention gate: masked global average pool over the valid pixels,
    # fc1 (+BN3 folded) -> ReLU -> fc2 -> sigmoid.  Gate math stays f32.
    m = mask_ref[...]                                # (1, NP)
    pooled1 = jnp.sum(r1 * m, axis=1, keepdims=True) * inv_hw   # (C, 1)
    pooled2 = jnp.sum(r2 * m, axis=1, keepdims=True) * inv_hw   # (C, 1)
    h = (jnp.dot(fc1wa_ref[...], pooled1, preferred_element_type=jnp.float32)
         + jnp.dot(fc1wb_ref[...], pooled2, preferred_element_type=jnp.float32)
         + fc1b_ref[...])
    h = jnp.maximum(h, 0.0)                          # (C, 1)
    a = jax.nn.sigmoid(jnp.dot(fc2w_ref[...], h, preferred_element_type=jnp.float32)
                       + fc2b_ref[...])              # (C, 1)

    # Gated mix + 1x1 conv (+BN4 folded) + ReLU.  conv3 weight is pre-split into
    # top/bottom halves so no (2C, NP) concat is materialized.
    y = (r1 * a).astype(jnp.bfloat16)                # (C, NP)
    y1 = (r2 * (1.0 - a)).astype(jnp.bfloat16)       # (C, NP)
    o = (jnp.dot(w3a_ref[...], y, preferred_element_type=jnp.float32)
         + jnp.dot(w3b_ref[...], y1, preferred_element_type=jnp.float32)
         + b3_ref[...])
    out_ref[0] = jnp.maximum(o, 0.0)


# -----------------------------------------------------------------------------
# Plain-JAX glue: BatchNorm folding into conv / linear weights.
# -----------------------------------------------------------------------------
def _bn_fold(gamma, beta, mean, var):
    scale = gamma / jnp.sqrt(var + BN_EPS)
    shift = beta - mean * scale
    return scale, shift


def _prepare_weights(params):
    Cout, Cin = params["conv1_w"].shape[:2]

    s1, sh1 = _bn_fold(params["bn1_gamma"], params["bn1_beta"],
                       params["bn1_mean"], params["bn1_var"])
    s2, sh2 = _bn_fold(params["bn2_gamma"], params["bn2_beta"],
                       params["bn2_mean"], params["bn2_var"])
    s3, sh3 = _bn_fold(params["bn3_gamma"], params["bn3_beta"],
                       params["bn3_mean"], params["bn3_var"])
    s4, sh4 = _bn_fold(params["bn4_gamma"], params["bn4_beta"],
                       params["bn4_mean"], params["bn4_var"])

    # Per-tap conv weights, tap index first: (k*k, Cout, Cin).
    w1 = (params["conv1_w"] * s1[:, None, None, None]).transpose(2, 3, 0, 1)
    w1 = w1.reshape(9, Cout, Cin).astype(jnp.bfloat16)
    b1 = (params["conv1_b"] * s1 + sh1)[:, None]
    w2 = (params["conv2_w"] * s2[:, None, None, None]).transpose(2, 3, 0, 1)
    w2 = w2.reshape(25, Cout, Cin).astype(jnp.bfloat16)
    b2 = (params["conv2_b"] * s2 + sh2)[:, None]

    # fc1 (+BN3), split into the halves that act on pooled1 / pooled2.
    fc1w = params["fc1_w"] * s3[:, None]
    fc1wa = fc1w[:, :Cout]
    fc1wb = fc1w[:, Cout:]
    fc1b = (params["fc1_b"] * s3 + sh3)[:, None]
    fc2w = params["fc2_w"]
    fc2b = params["fc2_b"][:, None]

    # conv3 (1x1) (+BN4), split into the halves that act on y / y1.
    w3 = params["conv3_w"].reshape(Cout, 2 * Cout) * s4[:, None]
    w3a = w3[:, :Cout].astype(jnp.bfloat16)
    w3b = w3[:, Cout:].astype(jnp.bfloat16)
    b3 = (params["conv3_b"] * s4 + sh4)[:, None]

    return (w1, b1, w2, b2, fc1wa, fc1wb, fc1b, fc2w, fc2b, w3a, w3b, b3)


@jax.jit
def channel_block(x_nchw, params):
    N, Cin, H, W = x_nchw.shape
    Cout = params["conv1_b"].shape[0]

    Hp, Wp = H + 2 * PAD, W + 2 * PAD
    NP = _round_up(H * Wp, 128)                 # lane-dense working width
    off_max = 2 * PAD * Wp + 2 * PAD            # largest tap offset (6*Wp + 6)
    XL = _round_up(NP + off_max, 128)           # flat padded-image length

    # Pad the image once (halo 3), flatten spatial dims, zero-extend to XL.
    xp = jnp.pad(x_nchw.astype(jnp.bfloat16),
                 ((0, 0), (0, 0), (PAD, PAD), (PAD, PAD)))
    xflat = xp.reshape(N, Cin, Hp * Wp)
    xflat = jnp.pad(xflat, ((0, 0), (0, 0), (0, XL - Hp * Wp)))

    # Valid-pixel mask in padded flat coordinates (for the masked global pool).
    pp = jnp.arange(NP)
    mask = (((pp % Wp) < W) & ((pp // Wp) < H)).astype(jnp.float32)[None, :]

    weights = _prepare_weights(params)

    kernel = functools.partial(channel_block_kernel, wp=Wp, inv_hw=1.0 / float(H * W))

    def full(a):
        nd = a.ndim
        return pl.BlockSpec(a.shape, lambda n, _nd=nd: (0,) * _nd)

    # Generation-aware VMEM budget: double-buffered image/output tiles + weights
    # + slack for the f32 live activations, capped by the physical capacity.
    x_tile = Cin * XL * 2                       # bf16
    out_tile = Cout * NP * 4                    # f32
    mask_bytes = NP * 4
    wt_bytes = sum(int(a.size) * a.dtype.itemsize for a in weights)
    live_bytes = 6 * Cout * NP * 4              # r1, r2, y, y1, o + temporaries
    needed = 2 * (x_tile + out_tile + mask_bytes + wt_bytes) + live_bytes + (4 << 20)
    try:
        cap = int(pltpu.get_tpu_info().vmem_capacity_bytes)
    except Exception:
        cap = 64 << 20                          # conservative (v7x per-TC) fallback
    vmem_limit = int(min(max(needed, 16 << 20), cap - (8 << 20)))

    out = pl.pallas_call(
        kernel,
        out_shape=jax.ShapeDtypeStruct((N, Cout, NP), jnp.float32),
        grid=(N,),
        in_specs=[pl.BlockSpec((1, Cin, XL), lambda n: (n, 0, 0)),
                  pl.BlockSpec((1, NP), lambda n: (0, 0))]
                 + [full(a) for a in weights],
        out_specs=pl.BlockSpec((1, Cout, NP), lambda n: (n, 0, 0)),
        compiler_params=pltpu.CompilerParams(
            dimension_semantics=("parallel",),
            vmem_limit_bytes=vmem_limit),
    )(xflat, mask, *weights)

    # Crop the padded-flat output back to (N, Cout, H, W).
    out = out[:, :, :H * Wp].reshape(N, Cout, H, Wp)[:, :, :, :W]
    return out


# -----------------------------------------------------------------------------
# Independent pure-JAX reference (f32, lax.conv) for validation.
# -----------------------------------------------------------------------------
def channel_block_ref(x, params):
    hi = lax.Precision.HIGHEST
    Cout = params["conv1_b"].shape[0]

    def bn2d(z, name):
        s = params[f"{name}_gamma"] / jnp.sqrt(params[f"{name}_var"] + BN_EPS)
        sh = params[f"{name}_beta"] - params[f"{name}_mean"] * s
        return z * s.reshape(1, -1, 1, 1) + sh.reshape(1, -1, 1, 1)

    leaky = lambda z: jnp.where(z > 0, z, LEAKY_SLOPE * z)
    dn = ("NCHW", "OIHW", "NCHW")

    c1 = lax.conv_general_dilated(x, params["conv1_w"], (1, 1), [(3, 3), (3, 3)],
                                  rhs_dilation=(3, 3), dimension_numbers=dn,
                                  precision=hi) + params["conv1_b"].reshape(1, -1, 1, 1)
    r1 = leaky(bn2d(c1, "bn1"))
    c2 = lax.conv_general_dilated(x, params["conv2_w"], (1, 1), [(2, 2), (2, 2)],
                                  dimension_numbers=dn,
                                  precision=hi) + params["conv2_b"].reshape(1, -1, 1, 1)
    r2 = leaky(bn2d(c2, "bn2"))

    pooled = jnp.concatenate([r1.mean(axis=(2, 3)), r2.mean(axis=(2, 3))], axis=1)
    s3 = params["bn3_gamma"] / jnp.sqrt(params["bn3_var"] + BN_EPS)
    sh3 = params["bn3_beta"] - params["bn3_mean"] * s3
    h = jnp.dot(pooled, params["fc1_w"].T, precision=hi) + params["fc1_b"]
    h = jnp.maximum(h * s3 + sh3, 0.0)
    a = jax.nn.sigmoid(jnp.dot(h, params["fc2_w"].T, precision=hi) + params["fc2_b"])

    cat = jnp.concatenate([r1 * a[:, :, None, None],
                           r2 * (1.0 - a)[:, :, None, None]], axis=1)
    w3 = params["conv3_w"].reshape(Cout, 2 * Cout)
    o = jnp.einsum("oc,nchw->nohw", w3, cat,
                   precision=hi) + params["conv3_b"].reshape(1, -1, 1, 1)
    return jnp.maximum(bn2d(o, "bn4"), 0.0)


def init_params(key, in_filte, out_filte):
    """Deterministic synthetic parameters with PyTorch-like default init shapes."""
    ks = jax.random.split(key, 10)

    def u(k, shape, fan_in):
        bound = 1.0 / jnp.sqrt(jnp.float32(fan_in))
        return jax.random.uniform(k, shape, jnp.float32, -bound, bound)

    cin, cout = in_filte, out_filte
    p = {
        "conv1_w": u(ks[0], (cout, cin, 3, 3), cin * 9),
        "conv1_b": u(ks[1], (cout,), cin * 9),
        "conv2_w": u(ks[2], (cout, cin, 5, 5), cin * 25),
        "conv2_b": u(ks[3], (cout,), cin * 25),
        "fc1_w":   u(ks[4], (cout, 2 * cout), 2 * cout),
        "fc1_b":   u(ks[5], (cout,), 2 * cout),
        "fc2_w":   u(ks[6], (cout, cout), cout),
        "fc2_b":   u(ks[7], (cout,), cout),
        "conv3_w": u(ks[8], (cout, 2 * cout, 1, 1), 2 * cout),
        "conv3_b": u(ks[9], (cout,), 2 * cout),
    }
    # BatchNorm params at PyTorch defaults (fresh module, eval mode).
    for name in ("bn1", "bn2", "bn3", "bn4"):
        p[f"{name}_gamma"] = jnp.ones((cout,), jnp.float32)
        p[f"{name}_beta"] = jnp.zeros((cout,), jnp.float32)
        p[f"{name}_mean"] = jnp.zeros((cout,), jnp.float32)
        p[f"{name}_var"] = jnp.ones((cout,), jnp.float32)
    return p


if __name__ == "__main__":
    key = jax.random.PRNGKey(0)
    kx, kp = jax.random.split(key)

    N, Cin, Cout, H, W = 2, 4, 8, 16, 16
    x = jax.random.normal(kx, (N, Cin, H, W), jnp.float32)
    params = init_params(kp, Cin, Cout)

    out = channel_block(x, params)
    out = jax.block_until_ready(out)

    assert out.shape == (N, Cout, H, W), out.shape

    ref = channel_block_ref(x, params)
    max_err = float(jnp.max(jnp.abs(out - ref)))
    # Kernel uses bf16 image/conv-weights with f32 accumulation; reference is
    # full f32 -> loose-but-meaningful tolerance (real layout/fold bugs give
    # errors O(0.1+) at these magnitudes).
    assert max_err < 3e-2, f"mismatch vs reference: {max_err}"

    print("KERNEL_OK")
</pallas_src>

<mosaic_0001>
module attributes {stable_mosaic.version = 11 : i64} {
  func.func @channel_block_kernel(%arg0: i32, %arg1: memref<1x4x640xbf16, #tpu.memory_space<vmem>>, %arg2: memref<1x384xf32, #tpu.memory_space<vmem>>, %arg3: memref<9x8x4xbf16, #tpu.memory_space<vmem>>, %arg4: memref<8x1xf32, #tpu.memory_space<vmem>>, %arg5: memref<25x8x4xbf16, #tpu.memory_space<vmem>>, %arg6: memref<8x1xf32, #tpu.memory_space<vmem>>, %arg7: memref<8x8xf32, #tpu.memory_space<vmem>>, %arg8: memref<8x8xf32, #tpu.memory_space<vmem>>, %arg9: memref<8x1xf32, #tpu.memory_space<vmem>>, %arg10: memref<8x8xf32, #tpu.memory_space<vmem>>, %arg11: memref<8x1xf32, #tpu.memory_space<vmem>>, %arg12: memref<8x8xbf16, #tpu.memory_space<vmem>>, %arg13: memref<8x8xbf16, #tpu.memory_space<vmem>>, %arg14: memref<8x1xf32, #tpu.memory_space<vmem>>, %arg15: memref<1x8x384xf32, #tpu.memory_space<vmem>>) attributes {dimension_semantics = [#tpu.dimension_semantics<parallel>], iteration_bounds = array<i64: 2>, scalar_prefetch = 0 : i64, scratch_operands = 0 : i64, tpu.core_type = #tpu.core_type<tc>, window_params = [{transform_indices = @transform_0, window_bounds = array<i64: 1, 4, 640>}, {pipeline_mode = #tpu.pipeline_mode<synchronous>, transform_indices = @transform_1, window_bounds = array<i64: 1, 384>}, {pipeline_mode = #tpu.pipeline_mode<synchronous>, transform_indices = @transform_2, window_bounds = array<i64: 9, 8, 4>}, {pipeline_mode = #tpu.pipeline_mode<synchronous>, transform_indices = @transform_3, window_bounds = array<i64: 8, 1>}, {pipeline_mode = #tpu.pipeline_mode<synchronous>, transform_indices = @transform_4, window_bounds = array<i64: 25, 8, 4>}, {pipeline_mode = #tpu.pipeline_mode<synchronous>, transform_indices = @transform_5, window_bounds = array<i64: 8, 1>}, {pipeline_mode = #tpu.pipeline_mode<synchronous>, transform_indices = @transform_6, window_bounds = array<i64: 8, 8>}, {pipeline_mode = #tpu.pipeline_mode<synchronous>, transform_indices = @transform_7, window_bounds = array<i64: 8, 8>}, {pipeline_mode = #tpu.pipeline_mode<synchronous>, transform_indices = @transform_8, window_bounds = array<i64: 8, 1>}, {pipeline_mode = #tpu.pipeline_mode<synchronous>, transform_indices = @transform_9, window_bounds = array<i64: 8, 8>}, {pipeline_mode = #tpu.pipeline_mode<synchronous>, transform_indices = @transform_10, window_bounds = array<i64: 8, 1>}, {pipeline_mode = #tpu.pipeline_mode<synchronous>, transform_indices = @transform_11, window_bounds = array<i64: 8, 8>}, {pipeline_mode = #tpu.pipeline_mode<synchronous>, transform_indices = @transform_12, window_bounds = array<i64: 8, 8>}, {pipeline_mode = #tpu.pipeline_mode<synchronous>, transform_indices = @transform_13, window_bounds = array<i64: 8, 1>}, {transform_indices = @transform_14, window_bounds = array<i64: 1, 8, 384>}]} {
    %c0 = arith.constant 0 : index
    %c0_0 = arith.constant 0 : index
    %c0_1 = arith.constant 0 : index
    %0 = vector.load %arg1[%c0, %c0_0, %c0_1] : memref<1x4x640xbf16, #tpu.memory_space<vmem>>, vector<1x4x640xbf16>
    %1 = vector.shape_cast %0 : vector<1x4x640xbf16> to vector<4x640xbf16>
    %2 = vector.extract_strided_slice %1 {offsets = [0, 0], sizes = [4, 384], strides = [1, 1]} : vector<4x640xbf16> to vector<4x384xbf16>
    %c0_2 = arith.constant 0 : index
    %c0_3 = arith.constant 0 : index
    %c0_4 = arith.constant 0 : index
    %3 = vector.load %arg3[%c0_2, %c0_3, %c0_4] : memref<9x8x4xbf16, #tpu.memory_space<vmem>>, vector<1x8x4xbf16>
    %4 = vector.shape_cast %3 : vector<1x8x4xbf16> to vector<8x4xbf16>
    %cst = arith.constant dense<0.000000e+00> : vector<8x384xf32>
    %5 = tpu.matmul %4, %2, %cst {dimension_numbers = #tpu.dot_dimension_numbers<[1], [0], [0], [1], [0, 0, 1, 1], [], []>} : vector<8x4xbf16>, vector<4x384xbf16>, vector<8x384xf32> -> vector<8x384xf32>
    %6 = vector.extract_strided_slice %1 {offsets = [0, 3], sizes = [4, 384], strides = [1, 1]} : vector<4x640xbf16> to vector<4x384xbf16>
    %c1 = arith.constant 1 : index
    %c0_5 = arith.constant 0 : index
    %c0_6 = arith.constant 0 : index
    %7 = vector.load %arg3[%c1, %c0_5, %c0_6] : memref<9x8x4xbf16, #tpu.memory_space<vmem>>, vector<1x8x4xbf16>
    %8 = vector.shape_cast %7 : vector<1x8x4xbf16> to vector<8x4xbf16>
    %cst_7 = arith.constant dense<0.000000e+00> : vector<8x384xf32>
    %9 = tpu.matmul %8, %6, %cst_7 {dimension_numbers = #tpu.dot_dimension_numbers<[1], [0], [0], [1], [0, 0, 1, 1], [], []>} : vector<8x4xbf16>, vector<4x384xbf16>, vector<8x384xf32> -> vector<8x384xf32>
    %10 = arith.addf %5, %9 : vector<8x384xf32>
    %11 = vector.extract_strided_slice %1 {offsets = [0, 6], sizes = [4, 384], strides = [1, 1]} : vector<4x640xbf16> to vector<4x384xbf16>
    %c2 = arith.constant 2 : index
    %c0_8 = arith.constant 0 : index
    %c0_9 = arith.constant 0 : index
    %12 = vector.load %arg3[%c2, %c0_8, %c0_9] : memref<9x8x4xbf16, #tpu.memory_space<vmem>>, vector<1x8x4xbf16>
    %13 = vector.shape_cast %12 : vector<1x8x4xbf16> to vector<8x4xbf16>
    %cst_10 = arith.constant dense<0.000000e+00> : vector<8x384xf32>
    %14 = tpu.matmul %13, %11, %cst_10 {dimension_numbers = #tpu.dot_dimension_numbers<[1], [0], [0], [1], [0, 0, 1, 1], [], []>} : vector<8x4xbf16>, vector<4x384xbf16>, vector<8x384xf32> -> vector<8x384xf32>
    %15 = arith.addf %10, %14 : vector<8x384xf32>
    %16 = vector.extract_strided_slice %1 {offsets = [0, 66], sizes = [4, 384], strides = [1, 1]} : vector<4x640xbf16> to vector<4x384xbf16>
    %c3 = arith.constant 3 : index
    %c0_11 = arith.constant 0 : index
    %c0_12 = arith.constant 0 : index
    %17 = vector.load %arg3[%c3, %c0_11, %c0_12] : memref<9x8x4xbf16, #tpu.memory_space<vmem>>, vector<1x8x4xbf16>
    %18 = vector.shape_cast %17 : vector<1x8x4xbf16> to vector<8x4xbf16>
    %cst_13 = arith.constant dense<0.000000e+00> : vector<8x384xf32>
    %19 = tpu.matmul %18, %16, %cst_13 {dimension_numbers = #tpu.dot_dimension_numbers<[1], [0], [0], [1], [0, 0, 1, 1], [], []>} : vector<8x4xbf16>, vector<4x384xbf16>, vector<8x384xf32> -> vector<8x384xf32>
    %20 = arith.addf %15, %19 : vector<8x384xf32>
    %21 = vector.extract_strided_slice %1 {offsets = [0, 69], sizes = [4, 384], strides = [1, 1]} : vector<4x640xbf16> to vector<4x384xbf16>
    %c4 = arith.constant 4 : index
    %c0_14 = arith.constant 0 : index
    %c0_15 = arith.constant 0 : index
    %22 = vector.load %arg3[%c4, %c0_14, %c0_15] : memref<9x8x4xbf16, #tpu.memory_space<vmem>>, vector<1x8x4xbf16>
    %23 = vector.shape_cast %22 : vector<1x8x4xbf16> to vector<8x4xbf16>
    %cst_16 = arith.constant dense<0.000000e+00> : vector<8x384xf32>
    %24 = tpu.matmul %23, %21, %cst_16 {dimension_numbers = #tpu.dot_dimension_numbers<[1], [0], [0], [1], [0, 0, 1, 1], [], []>} : vector<8x4xbf16>, vector<4x384xbf16>, vector<8x384xf32> -> vector<8x384xf32>
    %25 = arith.addf %20, %24 : vector<8x384xf32>
    %26 = vector.extract_strided_slice %1 {offsets = [0, 72], sizes = [4, 384], strides = [1, 1]} : vector<4x640xbf16> to vector<4x384xbf16>
    %c5 = arith.constant 5 : index
    %c0_17 = arith.constant 0 : index
    %c0_18 = arith.constant 0 : index
    %27 = vector.load %arg3[%c5, %c0_17, %c0_18] : memref<9x8x4xbf16, #tpu.memory_space<vmem>>, vector<1x8x4xbf16>
    %28 = vector.shape_cast %27 : vector<1x8x4xbf16> to vector<8x4xbf16>
    %cst_19 = arith.constant dense<0.000000e+00> : vector<8x384xf32>
    %29 = tpu.matmul %28, %26, %cst_19 {dimension_numbers = #tpu.dot_dimension_numbers<[1], [0], [0], [1], [0, 0, 1, 1], [], []>} : vector<8x4xbf16>, vector<4x384xbf16>, vector<8x384xf32> -> vector<8x384xf32>
    %30 = arith.addf %25, %29 : vector<8x384xf32>
    %31 = vector.extract_strided_slice %1 {offsets = [0, 132], sizes = [4, 384], strides = [1, 1]} : vector<4x640xbf16> to vector<4x384xbf16>
    %c6 = arith.constant 6 : index
    %c0_20 = arith.constant 0 : index
    %c0_21 = arith.constant 0 : index
    %32 = vector.load %arg3[%c6, %c0_20, %c0_21] : memref<9x8x4xbf16, #tpu.memory_space<vmem>>, vector<1x8x4xbf16>
    %33 = vector.shape_cast %32 : vector<1x8x4xbf16> to vector<8x4xbf16>
    %cst_22 = arith.constant dense<0.000000e+00> : vector<8x384xf32>
    %34 = tpu.matmul %33, %31, %cst_22 {dimension_numbers = #tpu.dot_dimension_numbers<[1], [0], [0], [1], [0, 0, 1, 1], [], []>} : vector<8x4xbf16>, vector<4x384xbf16>, vector<8x384xf32> -> vector<8x384xf32>
    %35 = arith.addf %30, %34 : vector<8x384xf32>
    %36 = vector.extract_strided_slice %1 {offsets = [0, 135], sizes = [4, 384], strides = [1, 1]} : vector<4x640xbf16> to vector<4x384xbf16>
    %c7 = arith.constant 7 : index
    %c0_23 = arith.constant 0 : index
    %c0_24 = arith.constant 0 : index
    %37 = vector.load %arg3[%c7, %c0_23, %c0_24] : memref<9x8x4xbf16, #tpu.memory_space<vmem>>, vector<1x8x4xbf16>
    %38 = vector.shape_cast %37 : vector<1x8x4xbf16> to vector<8x4xbf16>
    %cst_25 = arith.constant dense<0.000000e+00> : vector<8x384xf32>
    %39 = tpu.matmul %38, %36, %cst_25 {dimension_numbers = #tpu.dot_dimension_numbers<[1], [0], [0], [1], [0, 0, 1, 1], [], []>} : vector<8x4xbf16>, vector<4x384xbf16>, vector<8x384xf32> -> vector<8x384xf32>
    %40 = arith.addf %35, %39 : vector<8x384xf32>
    %41 = vector.extract_strided_slice %1 {offsets = [0, 138], sizes = [4, 384], strides = [1, 1]} : vector<4x640xbf16> to vector<4x384xbf16>
    %c8 = arith.constant 8 : index
    %c0_26 = arith.constant 0 : index
    %c0_27 = arith.constant 0 : index
    %42 = vector.load %arg3[%c8, %c0_26, %c0_27] : memref<9x8x4xbf16, #tpu.memory_space<vmem>>, vector<1x8x4xbf16>
    %43 = vector.shape_cast %42 : vector<1x8x4xbf16> to vector<8x4xbf16>
    %cst_28 = arith.constant dense<0.000000e+00> : vector<8x384xf32>
    %44 = tpu.matmul %43, %41, %cst_28 {dimension_numbers = #tpu.dot_dimension_numbers<[1], [0], [0], [1], [0, 0, 1, 1], [], []>} : vector<8x4xbf16>, vector<4x384xbf16>, vector<8x384xf32> -> vector<8x384xf32>
    %45 = arith.addf %40, %44 : vector<8x384xf32>
    %c0_29 = arith.constant 0 : index
    %c0_30 = arith.constant 0 : index
    %46 = vector.load %arg4[%c0_29, %c0_30] : memref<8x1xf32, #tpu.memory_space<vmem>>, vector<8x1xf32>
    %47 = vector.broadcast %46 : vector<8x1xf32> to vector<8x384xf32>
    %48 = arith.addf %45, %47 : vector<8x384xf32>
    %cst_31 = arith.constant 0.00999999977 : f32
    %49 = vector.broadcast %cst_31 : f32 to vector<8x384xf32>
    %50 = arith.mulf %49, %48 : vector<8x384xf32>
    %51 = arith.maximumf %48, %50 : vector<8x384xf32>
    %52 = vector.extract_strided_slice %1 {offsets = [0, 23], sizes = [4, 384], strides = [1, 1]} : vector<4x640xbf16> to vector<4x384xbf16>
    %c0_32 = arith.constant 0 : index
    %c0_33 = arith.constant 0 : index
    %c0_34 = arith.constant 0 : index
    %53 = vector.load %arg5[%c0_32, %c0_33, %c0_34] : memref<25x8x4xbf16, #tpu.memory_space<vmem>>, vector<1x8x4xbf16>
    %54 = vector.shape_cast %53 : vector<1x8x4xbf16> to vector<8x4xbf16>
    %cst_35 = arith.constant dense<0.000000e+00> : vector<8x384xf32>
    %55 = tpu.matmul %54, %52, %cst_35 {dimension_numbers = #tpu.dot_dimension_numbers<[1], [0], [0], [1], [0, 0, 1, 1], [], []>} : vector<8x4xbf16>, vector<4x384xbf16>, vector<8x384xf32> -> vector<8x384xf32>
    %56 = vector.extract_strided_slice %1 {offsets = [0, 24], sizes = [4, 384], strides = [1, 1]} : vector<4x640xbf16> to vector<4x384xbf16>
    %c1_36 = arith.constant 1 : index
    %c0_37 = arith.constant 0 : index
    %c0_38 = arith.constant 0 : index
    %57 = vector.load %arg5[%c1_36, %c0_37, %c0_38] : memref<25x8x4xbf16, #tpu.memory_space<vmem>>, vector<1x8x4xbf16>
    %58 = vector.shape_cast %57 : vector<1x8x4xbf16> to vector<8x4xbf16>
    %cst_39 = arith.constant dense<0.000000e+00> : vector<8x384xf32>
    %59 = tpu.matmul %58, %56, %cst_39 {dimension_numbers = #tpu.dot_dimension_numbers<[1], [0], [0], [1], [0, 0, 1, 1], [], []>} : vector<8x4xbf16>, vector<4x384xbf16>, vector<8x384xf32> -> vector<8x384xf32>
    %60 = arith.addf %55, %59 : vector<8x384xf32>
    %61 = vector.extract_strided_slice %1 {offsets = [0, 25], sizes = [4, 384], strides = [1, 1]} : vector<4x640xbf16> to vector<4x384xbf16>
    %c2_40 = arith.constant 2 : index
    %c0_41 = arith.constant 0 : index
    %c0_42 = arith.constant 0 : index
    %62 = vector.load %arg5[%c2_40, %c0_41, %c0_42] : memref<25x8x4xbf16, #tpu.memory_space<vmem>>, vector<1x8x4xbf16>
    %63 = vector.shape_cast %62 : vector<1x8x4xbf16> to vector<8x4xbf16>
    %cst_43 = arith.constant dense<0.000000e+00> : vector<8x384xf32>
    %64 = tpu.matmul %63, %61, %cst_43 {dimension_numbers = #tpu.dot_dimension_numbers<[1], [0], [0], [1], [0, 0, 1, 1], [], []>} : vector<8x4xbf16>, vector<4x384xbf16>, vector<8x384xf32> -> vector<8x384xf32>
    %65 = arith.addf %60, %64 : vector<8x384xf32>
    %66 = vector.extract_strided_slice %1 {offsets = [0, 26], sizes = [4, 384], strides = [1, 1]} : vector<4x640xbf16> to vector<4x384xbf16>
    %c3_44 = arith.constant 3 : index
    %c0_45 = arith.constant 0 : index
    %c0_46 = arith.constant 0 : index
    %67 = vector.load %arg5[%c3_44, %c0_45, %c0_46] : memref<25x8x4xbf16, #tpu.memory_space<vmem>>, vector<1x8x4xbf16>
    %68 = vector.shape_cast %67 : vector<1x8x4xbf16> to vector<8x4xbf16>
    %cst_47 = arith.constant dense<0.000000e+00> : vector<8x384xf32>
    %69 = tpu.matmul %68, %66, %cst_47 {dimension_numbers = #tpu.dot_dimension_numbers<[1], [0], [0], [1], [0, 0, 1, 1], [], []>} : vector<8x4xbf16>, vector<4x384xbf16>, vector<8x384xf32> -> vector<8x384xf32>
    %70 = arith.addf %65, %69 : vector<8x384xf32>
    %71 = vector.extract_strided_slice %1 {offsets = [0, 27], sizes = [4, 384], strides = [1, 1]} : vector<4x640xbf16> to vector<4x384xbf16>
    %c4_48 = arith.constant 4 : index
    %c0_49 = arith.constant 0 : index
    %c0_50 = arith.constant 0 : index
    %72 = vector.load %arg5[%c4_48, %c0_49, %c0_50] : memref<25x8x4xbf16, #tpu.memory_space<vmem>>, vector<1x8x4xbf16>
    %73 = vector.shape_cast %72 : vector<1x8x4xbf16> to vector<8x4xbf16>
    %cst_51 = arith.constant dense<0.000000e+00> : vector<8x384xf32>
    %74 = tpu.matmul %73, %71, %cst_51 {dimension_numbers = #tpu.dot_dimension_numbers<[1], [0], [0], [1], [0, 0, 1, 1], [], []>} : vector<8x4xbf16>, vector<4x384xbf16>, vector<8x384xf32> -> vector<8x384xf32>
    %75 = arith.addf %70, %74 : vector<8x384xf32>
    %76 = vector.extract_strided_slice %1 {offsets = [0, 45], sizes = [4, 384], strides = [1, 1]} : vector<4x640xbf16> to vector<4x384xbf16>
    %c5_52 = arith.constant 5 : index
    %c0_53 = arith.constant 0 : index
    %c0_54 = arith.constant 0 : index
    %77 = vector.load %arg5[%c5_52, %c0_53, %c0_54] : memref<25x8x4xbf16, #tpu.memory_space<vmem>>, vector<1x8x4xbf16>
    %78 = vector.shape_cast %77 : vector<1x8x4xbf16> to vector<8x4xbf16>
    %cst_55 = arith.constant dense<0.000000e+00> : vector<8x384xf32>
    %79 = tpu.matmul %78, %76, %cst_55 {dimension_numbers = #tpu.dot_dimension_numbers<[1], [0], [0], [1], [0, 0, 1, 1], [], []>} : vector<8x4xbf16>, vector<4x384xbf16>, vector<8x384xf32> -> vector<8x384xf32>
    %80 = arith.addf %75, %79 : vector<8x384xf32>
    %81 = vector.extract_strided_slice %1 {offsets = [0, 46], sizes = [4, 384], strides = [1, 1]} : vector<4x640xbf16> to vector<4x384xbf16>
    %c6_56 = arith.constant 6 : index
    %c0_57 = arith.constant 0 : index
    %c0_58 = arith.constant 0 : index
    %82 = vector.load %arg5[%c6_56, %c0_57, %c0_58] : memref<25x8x4xbf16, #tpu.memory_space<vmem>>, vector<1x8x4xbf16>
    %83 = vector.shape_cast %82 : vector<1x8x4xbf16> to vector<8x4xbf16>
    %cst_59 = arith.constant dense<0.000000e+00> : vector<8x384xf32>
    %84 = tpu.matmul %83, %81, %cst_59 {dimension_numbers = #tpu.dot_dimension_numbers<[1], [0], [0], [1], [0, 0, 1, 1], [], []>} : vector<8x4xbf16>, vector<4x384xbf16>, vector<8x384xf32> -> vector<8x384xf32>
    %85 = arith.addf %80, %84 : vector<8x384xf32>
    %86 = vector.extract_strided_slice %1 {offsets = [0, 47], sizes = [4, 384], strides = [1, 1]} : vector<4x640xbf16> to vector<4x384xbf16>
    %c7_60 = arith.constant 7 : index
    %c0_61 = arith.constant 0 : index
    %c0_62 = arith.constant 0 : index
    %87 = vector.load %arg5[%c7_60, %c0_61, %c0_62] : memref<25x8x4xbf16, #tpu.memory_space<vmem>>, vector<1x8x4xbf16>
    %88 = vector.shape_cast %87 : vector<1x8x4xbf16> to vector<8x4xbf16>
    %cst_63 = arith.constant dense<0.000000e+00> : vector<8x384xf32>
    %89 = tpu.matmul %88, %86, %cst_63 {dimension_numbers = #tpu.dot_dimension_numbers<[1], [0], [0], [1], [0, 0, 1, 1], [], []>} : vector<8x4xbf16>, vector<4x384xbf16>, vector<8x384xf32> -> vector<8x384xf32>
    %90 = arith.addf %85, %89 : vector<8x384xf32>
    %91 = vector.extract_strided_slice %1 {offsets = [0, 48], sizes = [4, 384], strides = [1, 1]} : vector<4x640xbf16> to vector<4x384xbf16>
    %c8_64 = arith.constant 8 : index
    %c0_65 = arith.constant 0 : index
    %c0_66 = arith.constant 0 : index
    %92 = vector.load %arg5[%c8_64, %c0_65, %c0_66] : memref<25x8x4xbf16, #tpu.memory_space<vmem>>, vector<1x8x4xbf16>
    %93 = vector.shape_cast %92 : vector<1x8x4xbf16> to vector<8x4xbf16>
    %cst_67 = arith.constant dense<0.000000e+00> : vector<8x384xf32>
    %94 = tpu.matmul %93, %91, %cst_67 {dimension_numbers = #tpu.dot_dimension_numbers<[1], [0], [0], [1], [0, 0, 1, 1], [], []>} : vector<8x4xbf16>, vector<4x384xbf16>, vector<8x384xf32> -> vector<8x384xf32>
    %95 = arith.addf %90, %94 : vector<8x384xf32>
    %96 = vector.extract_strided_slice %1 {offsets = [0, 49], sizes = [4, 384], strides = [1, 1]} : vector<4x640xbf16> to vector<4x384xbf16>
    %c9 = arith.constant 9 : index
    %c0_68 = arith.constant 0 : index
    %c0_69 = arith.constant 0 : index
    %97 = vector.load %arg5[%c9, %c0_68, %c0_69] : memref<25x8x4xbf16, #tpu.memory_space<vmem>>, vector<1x8x4xbf16>
    %98 = vector.shape_cast %97 : vector<1x8x4xbf16> to vector<8x4xbf16>
    %cst_70 = arith.constant dense<0.000000e+00> : vector<8x384xf32>
    %99 = tpu.matmul %98, %96, %cst_70 {dimension_numbers = #tpu.dot_dimension_numbers<[1], [0], [0], [1], [0, 0, 1, 1], [], []>} : vector<8x4xbf16>, vector<4x384xbf16>, vector<8x384xf32> -> vector<8x384xf32>
    %100 = arith.addf %95, %99 : vector<8x384xf32>
    %101 = vector.extract_strided_slice %1 {offsets = [0, 67], sizes = [4, 384], strides = [1, 1]} : vector<4x640xbf16> to vector<4x384xbf16>
    %c10 = arith.constant 10 : index
    %c0_71 = arith.constant 0 : index
    %c0_72 = arith.constant 0 : index
    %102 = vector.load %arg5[%c10, %c0_71, %c0_72] : memref<25x8x4xbf16, #tpu.memory_space<vmem>>, vector<1x8x4xbf16>
    %103 = vector.shape_cast %102 : vector<1x8x4xbf16> to vector<8x4xbf16>
    %cst_73 = arith.constant dense<0.000000e+00> : vector<8x384xf32>
    %104 = tpu.matmul %103, %101, %cst_73 {dimension_numbers = #tpu.dot_dimension_numbers<[1], [0], [0], [1], [0, 0, 1, 1], [], []>} : vector<8x4xbf16>, vector<4x384xbf16>, vector<8x384xf32> -> vector<8x384xf32>
    %105 = arith.addf %100, %104 : vector<8x384xf32>
    %106 = vector.extract_strided_slice %1 {offsets = [0, 68], sizes = [4, 384], strides = [1, 1]} : vector<4x640xbf16> to vector<4x384xbf16>
    %c11 = arith.constant 11 : index
    %c0_74 = arith.constant 0 : index
    %c0_75 = arith.constant 0 : index
    %107 = vector.load %arg5[%c11, %c0_74, %c0_75] : memref<25x8x4xbf16, #tpu.memory_space<vmem>>, vector<1x8x4xbf16>
    %108 = vector.shape_cast %107 : vector<1x8x4xbf16> to vector<8x4xbf16>
    %cst_76 = arith.constant dense<0.000000e+00> : vector<8x384xf32>
    %109 = tpu.matmul %108, %106, %cst_76 {dimension_numbers = #tpu.dot_dimension_numbers<[1], [0], [0], [1], [0, 0, 1, 1], [], []>} : vector<8x4xbf16>, vector<4x384xbf16>, vector<8x384xf32> -> vector<8x384xf32>
    %110 = arith.addf %105, %109 : vector<8x384xf32>
    %111 = vector.extract_strided_slice %1 {offsets = [0, 69], sizes = [4, 384], strides = [1, 1]} : vector<4x640xbf16> to vector<4x384xbf16>
    %c12 = arith.constant 12 : index
    %c0_77 = arith.constant 0 : index
    %c0_78 = arith.constant 0 : index
    %112 = vector.load %arg5[%c12, %c0_77, %c0_78] : memref<25x8x4xbf16, #tpu.memory_space<vmem>>, vector<1x8x4xbf16>
    %113 = vector.shape_cast %112 : vector<1x8x4xbf16> to vector<8x4xbf16>
    %cst_79 = arith.constant dense<0.000000e+00> : vector<8x384xf32>
    %114 = tpu.matmul %113, %111, %cst_79 {dimension_numbers = #tpu.dot_dimension_numbers<[1], [0], [0], [1], [0, 0, 1, 1], [], []>} : vector<8x4xbf16>, vector<4x384xbf16>, vector<8x384xf32> -> vector<8x384xf32>
    %115 = arith.addf %110, %114 : vector<8x384xf32>
    %116 = vector.extract_strided_slice %1 {offsets = [0, 70], sizes = [4, 384], strides = [1, 1]} : vector<4x640xbf16> to vector<4x384xbf16>
    %c13 = arith.constant 13 : index
    %c0_80 = arith.constant 0 : index
    %c0_81 = arith.constant 0 : index
    %117 = vector.load %arg5[%c13, %c0_80, %c0_81] : memref<25x8x4xbf16, #tpu.memory_space<vmem>>, vector<1x8x4xbf16>
    %118 = vector.shape_cast %117 : vector<1x8x4xbf16> to vector<8x4xbf16>
    %cst_82 = arith.constant dense<0.000000e+00> : vector<8x384xf32>
    %119 = tpu.matmul %118, %116, %cst_82 {dimension_numbers = #tpu.dot_dimension_numbers<[1], [0], [0], [1], [0, 0, 1, 1], [], []>} : vector<8x4xbf16>, vector<4x384xbf16>, vector<8x384xf32> -> vector<8x384xf32>
    %120 = arith.addf %115, %119 : vector<8x384xf32>
    %121 = vector.extract_strided_slice %1 {offsets = [0, 71], sizes = [4, 384], strides = [1, 1]} : vector<4x640xbf16> to vector<4x384xbf16>
    %c14 = arith.constant 14 : index
    %c0_83 = arith.constant 0 : index
    %c0_84 = arith.constant 0 : index
    %122 = vector.load %arg5[%c14, %c0_83, %c0_84] : memref<25x8x4xbf16, #tpu.memory_space<vmem>>, vector<1x8x4xbf16>
    %123 = vector.shape_cast %122 : vector<1x8x4xbf16> to vector<8x4xbf16>
    %cst_85 = arith.constant dense<0.000000e+00> : vector<8x384xf32>
    %124 = tpu.matmul %123, %121, %cst_85 {dimension_numbers = #tpu.dot_dimension_numbers<[1], [0], [0], [1], [0, 0, 1, 1], [], []>} : vector<8x4xbf16>, vector<4x384xbf16>, vector<8x384xf32> -> vector<8x384xf32>
    %125 = arith.addf %120, %124 : vector<8x384xf32>
    %126 = vector.extract_strided_slice %1 {offsets = [0, 89], sizes = [4, 384], strides = [1, 1]} : vector<4x640xbf16> to vector<4x384xbf16>
    %c15 = arith.constant 15 : index
    %c0_86 = arith.constant 0 : index
    %c0_87 = arith.constant 0 : index
    %127 = vector.load %arg5[%c15, %c0_86, %c0_87] : memref<25x8x4xbf16, #tpu.memory_space<vmem>>, vector<1x8x4xbf16>
    %128 = vector.shape_cast %127 : vector<1x8x4xbf16> to vector<8x4xbf16>
    %cst_88 = arith.constant dense<0.000000e+00> : vector<8x384xf32>
    %129 = tpu.matmul %128, %126, %cst_88 {dimension_numbers = #tpu.dot_dimension_numbers<[1], [0], [0], [1], [0, 0, 1, 1], [], []>} : vector<8x4xbf16>, vector<4x384xbf16>, vector<8x384xf32> -> vector<8x384xf32>
    %130 = arith.addf %125, %129 : vector<8x384xf32>
    %131 = vector.extract_strided_slice %1 {offsets = [0, 90], sizes = [4, 384], strides = [1, 1]} : vector<4x640xbf16> to vector<4x384xbf16>
    %c16 = arith.constant 16 : index
    %c0_89 = arith.constant 0 : index
    %c0_90 = arith.constant 0 : index
    %132 = vector.load %arg5[%c16, %c0_89, %c0_90] : memref<25x8x4xbf16, #tpu.memory_space<vmem>>, vector<1x8x4xbf16>
    %133 = vector.shape_cast %132 : vector<1x8x4xbf16> to vector<8x4xbf16>
    %cst_91 = arith.constant dense<0.000000e+00> : vector<8x384xf32>
    %134 = tpu.matmul %133, %131, %cst_91 {dimension_numbers = #tpu.dot_dimension_numbers<[1], [0], [0], [1], [0, 0, 1, 1], [], []>} : vector<8x4xbf16>, vector<4x384xbf16>, vector<8x384xf32> -> vector<8x384xf32>
    %135 = arith.addf %130, %134 : vector<8x384xf32>
    %136 = vector.extract_strided_slice %1 {offsets = [0, 91], sizes = [4, 384], strides = [1, 1]} : vector<4x640xbf16> to vector<4x384xbf16>
    %c17 = arith.constant 17 : index
    %c0_92 = arith.constant 0 : index
    %c0_93 = arith.constant 0 : index
    %137 = vector.load %arg5[%c17, %c0_92, %c0_93] : memref<25x8x4xbf16, #tpu.memory_space<vmem>>, vector<1x8x4xbf16>
    %138 = vector.shape_cast %137 : vector<1x8x4xbf16> to vector<8x4xbf16>
    %cst_94 = arith.constant dense<0.000000e+00> : vector<8x384xf32>
    %139 = tpu.matmul %138, %136, %cst_94 {dimension_numbers = #tpu.dot_dimension_numbers<[1], [0], [0], [1], [0, 0, 1, 1], [], []>} : vector<8x4xbf16>, vector<4x384xbf16>, vector<8x384xf32> -> vector<8x384xf32>
    %140 = arith.addf %135, %139 : vector<8x384xf32>
    %141 = vector.extract_strided_slice %1 {offsets = [0, 92], sizes = [4, 384], strides = [1, 1]} : vector<4x640xbf16> to vector<4x384xbf16>
    %c18 = arith.constant 18 : index
    %c0_95 = arith.constant 0 : index
    %c0_96 = arith.constant 0 : index
    %142 = vector.load %arg5[%c18, %c0_95, %c0_96] : memref<25x8x4xbf16, #tpu.memory_space<vmem>>, vector<1x8x4xbf16>
    %143 = vector.shape_cast %142 : vector<1x8x4xbf16> to vector<8x4xbf16>
    %cst_97 = arith.constant dense<0.000000e+00> : vector<8x384xf32>
    %144 = tpu.matmul %143, %141, %cst_97 {dimension_numbers = #tpu.dot_dimension_numbers<[1], [0], [0], [1], [0, 0, 1, 1], [], []>} : vector<8x4xbf16>, vector<4x384xbf16>, vector<8x384xf32> -> vector<8x384xf32>
    %145 = arith.addf %140, %144 : vector<8x384xf32>
    %146 = vector.extract_strided_slice %1 {offsets = [0, 93], sizes = [4, 384], strides = [1, 1]} : vector<4x640xbf16> to vector<4x384xbf16>
    %c19 = arith.constant 19 : index
    %c0_98 = arith.constant 0 : index
    %c0_99 = arith.constant 0 : index
    %147 = vector.load %arg5[%c19, %c0_98, %c0_99] : memref<25x8x4xbf16, #tpu.memory_space<vmem>>, vector<1x8x4xbf16>
    %148 = vector.shape_cast %147 : vector<1x8x4xbf16> to vector<8x4xbf16>
    %cst_100 = arith.constant dense<0.000000e+00> : vector<8x384xf32>
    %149 = tpu.matmul %148, %146, %cst_100 {dimension_numbers = #tpu.dot_dimension_numbers<[1], [0], [0], [1], [0, 0, 1, 1], [], []>} : vector<8x4xbf16>, vector<4x384xbf16>, vector<8x384xf32> -> vector<8x384xf32>
    %150 = arith.addf %145, %149 : vector<8x384xf32>
    %151 = vector.extract_strided_slice %1 {offsets = [0, 111], sizes = [4, 384], strides = [1, 1]} : vector<4x640xbf16> to vector<4x384xbf16>
    %c20 = arith.constant 20 : index
    %c0_101 = arith.constant 0 : index
    %c0_102 = arith.constant 0 : index
    %152 = vector.load %arg5[%c20, %c0_101, %c0_102] : memref<25x8x4xbf16, #tpu.memory_space<vmem>>, vector<1x8x4xbf16>
    %153 = vector.shape_cast %152 : vector<1x8x4xbf16> to vector<8x4xbf16>
    %cst_103 = arith.constant dense<0.000000e+00> : vector<8x384xf32>
    %154 = tpu.matmul %153, %151, %cst_103 {dimension_numbers = #tpu.dot_dimension_numbers<[1], [0], [0], [1], [0, 0, 1, 1], [], []>} : vector<8x4xbf16>, vector<4x384xbf16>, vector<8x384xf32> -> vector<8x384xf32>
    %155 = arith.addf %150, %154 : vector<8x384xf32>
    %156 = vector.extract_strided_slice %1 {offsets = [0, 112], sizes = [4, 384], strides = [1, 1]} : vector<4x640xbf16> to vector<4x384xbf16>
    %c21 = arith.constant 21 : index
    %c0_104 = arith.constant 0 : index
    %c0_105 = arith.constant 0 : index
    %157 = vector.load %arg5[%c21, %c0_104, %c0_105] : memref<25x8x4xbf16, #tpu.memory_space<vmem>>, vector<1x8x4xbf16>
    %158 = vector.shape_cast %157 : vector<1x8x4xbf16> to vector<8x4xbf16>
    %cst_106 = arith.constant dense<0.000000e+00> : vector<8x384xf32>
    %159 = tpu.matmul %158, %156, %cst_106 {dimension_numbers = #tpu.dot_dimension_numbers<[1], [0], [0], [1], [0, 0, 1, 1], [], []>} : vector<8x4xbf16>, vector<4x384xbf16>, vector<8x384xf32> -> vector<8x384xf32>
    %160 = arith.addf %155, %159 : vector<8x384xf32>
    %161 = vector.extract_strided_slice %1 {offsets = [0, 113], sizes = [4, 384], strides = [1, 1]} : vector<4x640xbf16> to vector<4x384xbf16>
    %c22 = arith.constant 22 : index
    %c0_107 = arith.constant 0 : index
    %c0_108 = arith.constant 0 : index
    %162 = vector.load %arg5[%c22, %c0_107, %c0_108] : memref<25x8x4xbf16, #tpu.memory_space<vmem>>, vector<1x8x4xbf16>
    %163 = vector.shape_cast %162 : vector<1x8x4xbf16> to vector<8x4xbf16>
    %cst_109 = arith.constant dense<0.000000e+00> : vector<8x384xf32>
    %164 = tpu.matmul %163, %161, %cst_109 {dimension_numbers = #tpu.dot_dimension_numbers<[1], [0], [0], [1], [0, 0, 1, 1], [], []>} : vector<8x4xbf16>, vector<4x384xbf16>, vector<8x384xf32> -> vector<8x384xf32>
    %165 = arith.addf %160, %164 : vector<8x384xf32>
    %166 = vector.extract_strided_slice %1 {offsets = [0, 114], sizes = [4, 384], strides = [1, 1]} : vector<4x640xbf16> to vector<4x384xbf16>
    %c23 = arith.constant 23 : index
    %c0_110 = arith.constant 0 : index
    %c0_111 = arith.constant 0 : index
    %167 = vector.load %arg5[%c23, %c0_110, %c0_111] : memref<25x8x4xbf16, #tpu.memory_space<vmem>>, vector<1x8x4xbf16>
    %168 = vector.shape_cast %167 : vector<1x8x4xbf16> to vector<8x4xbf16>
    %cst_112 = arith.constant dense<0.000000e+00> : vector<8x384xf32>
    %169 = tpu.matmul %168, %166, %cst_112 {dimension_numbers = #tpu.dot_dimension_numbers<[1], [0], [0], [1], [0, 0, 1, 1], [], []>} : vector<8x4xbf16>, vector<4x384xbf16>, vector<8x384xf32> -> vector<8x384xf32>
    %170 = arith.addf %165, %169 : vector<8x384xf32>
    %171 = vector.extract_strided_slice %1 {offsets = [0, 115], sizes = [4, 384], strides = [1, 1]} : vector<4x640xbf16> to vector<4x384xbf16>
    %c24 = arith.constant 24 : index
    %c0_113 = arith.constant 0 : index
    %c0_114 = arith.constant 0 : index
    %172 = vector.load %arg5[%c24, %c0_113, %c0_114] : memref<25x8x4xbf16, #tpu.memory_space<vmem>>, vector<1x8x4xbf16>
    %173 = vector.shape_cast %172 : vector<1x8x4xbf16> to vector<8x4xbf16>
    %cst_115 = arith.constant dense<0.000000e+00> : vector<8x384xf32>
    %174 = tpu.matmul %173, %171, %cst_115 {dimension_numbers = #tpu.dot_dimension_numbers<[1], [0], [0], [1], [0, 0, 1, 1], [], []>} : vector<8x4xbf16>, vector<4x384xbf16>, vector<8x384xf32> -> vector<8x384xf32>
    %175 = arith.addf %170, %174 : vector<8x384xf32>
    %c0_116 = arith.constant 0 : index
    %c0_117 = arith.constant 0 : index
    %176 = vector.load %arg6[%c0_116, %c0_117] : memref<8x1xf32, #tpu.memory_space<vmem>>, vector<8x1xf32>
    %177 = vector.broadcast %176 : vector<8x1xf32> to vector<8x384xf32>
    %178 = arith.addf %175, %177 : vector<8x384xf32>
    %cst_118 = arith.constant 0.00999999977 : f32
    %179 = vector.broadcast %cst_118 : f32 to vector<8x384xf32>
    %180 = arith.mulf %179, %178 : vector<8x384xf32>
    %181 = arith.maximumf %178, %180 : vector<8x384xf32>
    %c0_119 = arith.constant 0 : index
    %c0_120 = arith.constant 0 : index
    %182 = vector.load %arg2[%c0_119, %c0_120] : memref<1x384xf32, #tpu.memory_space<vmem>>, vector<1x384xf32>
    %183 = vector.broadcast %182 : vector<1x384xf32> to vector<8x384xf32>
    %184 = arith.mulf %51, %183 : vector<8x384xf32>
    %cst_121 = arith.constant dense<0.000000e+00> : vector<8xf32>
    %185 = vector.multi_reduction <add>, %184, %cst_121 [1] : vector<8x384xf32> to vector<8xf32>
    %186 = vector.shape_cast %185 : vector<8xf32> to vector<8x1xf32>
    %cst_122 = arith.constant 3.906250e-03 : f32
    %187 = vector.broadcast %cst_122 : f32 to vector<8x1xf32>
    %188 = arith.mulf %186, %187 : vector<8x1xf32>
    %189 = vector.broadcast %182 : vector<1x384xf32> to vector<8x384xf32>
    %190 = arith.mulf %181, %189 : vector<8x384xf32>
    %cst_123 = arith.constant dense<0.000000e+00> : vector<8xf32>
    %191 = vector.multi_reduction <add>, %190, %cst_123 [1] : vector<8x384xf32> to vector<8xf32>
    %192 = vector.shape_cast %191 : vector<8xf32> to vector<8x1xf32>
    %cst_124 = arith.constant 3.906250e-03 : f32
    %193 = vector.broadcast %cst_124 : f32 to vector<8x1xf32>
    %194 = arith.mulf %192, %193 : vector<8x1xf32>
    %c0_125 = arith.constant 0 : index
    %c0_126 = arith.constant 0 : index
    %195 = vector.load %arg7[%c0_125, %c0_126] : memref<8x8xf32, #tpu.memory_space<vmem>>, vector<8x8xf32>
    %cst_127 = arith.constant dense<0.000000e+00> : vector<8x1xf32>
    %196 = tpu.matmul %195, %188, %cst_127 {dimension_numbers = #tpu.dot_dimension_numbers<[1], [0], [0], [1], [0, 0, 1, 1], [], []>} : vector<8x8xf32>, vector<8x1xf32>, vector<8x1xf32> -> vector<8x1xf32>
    %c0_128 = arith.constant 0 : index
    %c0_129 = arith.constant 0 : index
    %197 = vector.load %arg8[%c0_128, %c0_129] : memref<8x8xf32, #tpu.memory_space<vmem>>, vector<8x8xf32>
    %cst_130 = arith.constant dense<0.000000e+00> : vector<8x1xf32>
    %198 = tpu.matmul %197, %194, %cst_130 {dimension_numbers = #tpu.dot_dimension_numbers<[1], [0], [0], [1], [0, 0, 1, 1], [], []>} : vector<8x8xf32>, vector<8x1xf32>, vector<8x1xf32> -> vector<8x1xf32>
    %199 = arith.addf %196, %198 : vector<8x1xf32>
    %c0_131 = arith.constant 0 : index
    %c0_132 = arith.constant 0 : index
    %200 = vector.load %arg9[%c0_131, %c0_132] : memref<8x1xf32, #tpu.memory_space<vmem>>, vector<8x1xf32>
    %201 = arith.addf %199, %200 : vector<8x1xf32>
    %cst_133 = arith.constant 0.000000e+00 : f32
    %202 = vector.broadcast %cst_133 : f32 to vector<8x1xf32>
    %203 = arith.maximumf %201, %202 : vector<8x1xf32>
    %c0_134 = arith.constant 0 : index
    %c0_135 = arith.constant 0 : index
    %204 = vector.load %arg10[%c0_134, %c0_135] : memref<8x8xf32, #tpu.memory_space<vmem>>, vector<8x8xf32>
    %cst_136 = arith.constant dense<0.000000e+00> : vector<8x1xf32>
    %205 = tpu.matmul %204, %203, %cst_136 {dimension_numbers = #tpu.dot_dimension_numbers<[1], [0], [0], [1], [0, 0, 1, 1], [], []>} : vector<8x8xf32>, vector<8x1xf32>, vector<8x1xf32> -> vector<8x1xf32>
    %c0_137 = arith.constant 0 : index
    %c0_138 = arith.constant 0 : index
    %206 = vector.load %arg11[%c0_137, %c0_138] : memref<8x1xf32, #tpu.memory_space<vmem>>, vector<8x1xf32>
    %207 = arith.addf %205, %206 : vector<8x1xf32>
    %208 = arith.negf %207 : vector<8x1xf32>
    %209 = math.exp %208 : vector<8x1xf32>
    %cst_139 = arith.constant 1.000000e+00 : f32
    %210 = vector.broadcast %cst_139 : f32 to vector<8x1xf32>
    %211 = arith.addf %210, %209 : vector<8x1xf32>
    %212 = arith.divf %210, %211 : vector<8x1xf32>
    %213 = vector.broadcast %212 : vector<8x1xf32> to vector<8x384xf32>
    %214 = arith.mulf %51, %213 : vector<8x384xf32>
    %215 = arith.truncf %214 : vector<8x384xf32> to vector<8x384xbf16>
    %cst_140 = arith.constant 1.000000e+00 : f32
    %216 = vector.broadcast %cst_140 : f32 to vector<8x1xf32>
    %217 = arith.subf %216, %212 : vector<8x1xf32>
    %218 = vector.broadcast %217 : vector<8x1xf32> to vector<8x384xf32>
    %219 = arith.mulf %181, %218 : vector<8x384xf32>
    %220 = arith.truncf %219 : vector<8x384xf32> to vector<8x384xbf16>
    %c0_141 = arith.constant 0 : index
    %c0_142 = arith.constant 0 : index
    %221 = vector.load %arg12[%c0_141, %c0_142] : memref<8x8xbf16, #tpu.memory_space<vmem>>, vector<8x8xbf16>
    %cst_143 = arith.constant dense<0.000000e+00> : vector<8x384xf32>
    %222 = tpu.matmul %221, %215, %cst_143 {dimension_numbers = #tpu.dot_dimension_numbers<[1], [0], [0], [1], [0, 0, 1, 1], [], []>} : vector<8x8xbf16>, vector<8x384xbf16>, vector<8x384xf32> -> vector<8x384xf32>
    %c0_144 = arith.constant 0 : index
    %c0_145 = arith.constant 0 : index
    %223 = vector.load %arg13[%c0_144, %c0_145] : memref<8x8xbf16, #tpu.memory_space<vmem>>, vector<8x8xbf16>
    %cst_146 = arith.constant dense<0.000000e+00> : vector<8x384xf32>
    %224 = tpu.matmul %223, %220, %cst_146 {dimension_numbers = #tpu.dot_dimension_numbers<[1], [0], [0], [1], [0, 0, 1, 1], [], []>} : vector<8x8xbf16>, vector<8x384xbf16>, vector<8x384xf32> -> vector<8x384xf32>
    %225 = arith.addf %222, %224 : vector<8x384xf32>
    %c0_147 = arith.constant 0 : index
    %c0_148 = arith.constant 0 : index
    %226 = vector.load %arg14[%c0_147, %c0_148] : memref<8x1xf32, #tpu.memory_space<vmem>>, vector<8x1xf32>
    %227 = vector.broadcast %226 : vector<8x1xf32> to vector<8x384xf32>
    %228 = arith.addf %225, %227 : vector<8x384xf32>
    %cst_149 = arith.constant 0.000000e+00 : f32
    %229 = vector.broadcast %cst_149 : f32 to vector<8x384xf32>
    %230 = arith.maximumf %228, %229 : vector<8x384xf32>
    %c0_150 = arith.constant 0 : index
    %c0_151 = arith.constant 0 : index
    %c0_152 = arith.constant 0 : index
    %231 = vector.load %arg15[%c0_150, %c0_151, %c0_152] : memref<1x8x384xf32, #tpu.memory_space<vmem>>, vector<1x8x384xf32>
    %232 = vector.shape_cast %231 : vector<1x8x384xf32> to vector<8x384xf32>
    %233 = vector.shape_cast %230 : vector<8x384xf32> to vector<1x8x384xf32>
    tpu.vector_store %arg15[%c0_150, %c0_151, %c0_152], %233 {strides = array<i32>} : memref<1x8x384xf32, #tpu.memory_space<vmem>>, vector<1x8x384xf32>,
    return
  }
  func.func @transform_0(%arg0: i32) -> (i32, i32, i32) {
    %c0_i32 = arith.constant 0 : i32
    %c0_i32_0 = arith.constant 0 : i32
    %c0_i32_1 = arith.constant 0 : i32
    return %arg0, %c0_i32, %c0_i32_0 : i32, i32, i32
  }
  func.func @transform_1(%arg0: i32) -> (i32, i32) {
    %c0_i32 = arith.constant 0 : i32
    %c0_i32_0 = arith.constant 0 : i32
    %c0_i32_1 = arith.constant 0 : i32
    return %c0_i32, %c0_i32_0 : i32, i32
  }
  func.func @transform_2(%arg0: i32) -> (i32, i32, i32) {
    %c0_i32 = arith.constant 0 : i32
    %c0_i32_0 = arith.constant 0 : i32
    %c0_i32_1 = arith.constant 0 : i32
    %c0_i32_2 = arith.constant 0 : i32
    return %c0_i32, %c0_i32_0, %c0_i32_1 : i32, i32, i32
  }
  func.func @transform_3(%arg0: i32) -> (i32, i32) {
    %c0_i32 = arith.constant 0 : i32
    %c0_i32_0 = arith.constant 0 : i32
    %c0_i32_1 = arith.constant 0 : i32
    return %c0_i32, %c0_i32_0 : i32, i32
  }
  func.func @transform_4(%arg0: i32) -> (i32, i32, i32) {
    %c0_i32 = arith.constant 0 : i32
    %c0_i32_0 = arith.constant 0 : i32
    %c0_i32_1 = arith.constant 0 : i32
    %c0_i32_2 = arith.constant 0 : i32
    return %c0_i32, %c0_i32_0, %c0_i32_1 : i32, i32, i32
  }
  func.func @transform_5(%arg0: i32) -> (i32, i32) {
    %c0_i32 = arith.constant 0 : i32
    %c0_i32_0 = arith.constant 0 : i32
    %c0_i32_1 = arith.constant 0 : i32
    return %c0_i32, %c0_i32_0 : i32, i32
  }
  func.func @transform_6(%arg0: i32) -> (i32, i32) {
    %c0_i32 = arith.constant 0 : i32
    %c0_i32_0 = arith.constant 0 : i32
    %c0_i32_1 = arith.constant 0 : i32
    return %c0_i32, %c0_i32_0 : i32, i32
  }
  func.func @transform_7(%arg0: i32) -> (i32, i32) {
    %c0_i32 = arith.constant 0 : i32
    %c0_i32_0 = arith.constant 0 : i32
    %c0_i32_1 = arith.constant 0 : i32
    return %c0_i32, %c0_i32_0 : i32, i32
  }
  func.func @transform_8(%arg0: i32) -> (i32, i32) {
    %c0_i32 = arith.constant 0 : i32
    %c0_i32_0 = arith.constant 0 : i32
    %c0_i32_1 = arith.constant 0 : i32
    return %c0_i32, %c0_i32_0 : i32, i32
  }
  func.func @transform_9(%arg0: i32) -> (i32, i32) {
    %c0_i32 = arith.constant 0 : i32
    %c0_i32_0 = arith.constant 0 : i32
    %c0_i32_1 = arith.constant 0 : i32
    return %c0_i32, %c0_i32_0 : i32, i32
  }
  func.func @transform_10(%arg0: i32) -> (i32, i32) {
    %c0_i32 = arith.constant 0 : i32
    %c0_i32_0 = arith.constant 0 : i32
    %c0_i32_1 = arith.constant 0 : i32
    return %c0_i32, %c0_i32_0 : i32, i32
  }
  func.func @transform_11(%arg0: i32) -> (i32, i32) {
    %c0_i32 = arith.constant 0 : i32
    %c0_i32_0 = arith.constant 0 : i32
    %c0_i32_1 = arith.constant 0 : i32
    return %c0_i32, %c0_i32_0 : i32, i32
  }
  func.func @transform_12(%arg0: i32) -> (i32, i32) {
    %c0_i32 = arith.constant 0 : i32
    %c0_i32_0 = arith.constant 0 : i32
    %c0_i32_1 = arith.constant 0 : i32
    return %c0_i32, %c0_i32_0 : i32, i32
  }
  func.func @transform_13(%arg0: i32) -> (i32, i32) {
    %c0_i32 = arith.constant 0 : i32
    %c0_i32_0 = arith.constant 0 : i32
    %c0_i32_1 = arith.constant 0 : i32
    return %c0_i32, %c0_i32_0 : i32, i32
  }
  func.func @transform_14(%arg0: i32) -> (i32, i32, i32) {
    %c0_i32 = arith.constant 0 : i32
    %c0_i32_0 = arith.constant 0 : i32
    %c0_i32_1 = arith.constant 0 : i32
    return %arg0, %c0_i32, %c0_i32_0 : i32, i32, i32
  }
}

</mosaic_0001>

<bundles_post_ra>
// kernel: channel_block.1
= control target key start
LH: loop header
LB: loop body
LE: loop exit
PB: predicated region body
PF: predicated region fallthrough
CT: control target
= control target key end

     0   :  { %s3730_s29 = smov 0   ;;  %s4641_s0 = inlined_call_operand.vmem [shape: bf16[2,4,640], index: 0, kind: input, shape index: {}]   ;;  %s4642_s1 = inlined_call_operand.vmem [shape: f32[1,384], index: 1, kind: input, shape index: {}]   ;;  %s4643_s2 = inlined_call_operand.vmem [shape: bf16[9,8,4], index: 2, kind: input, shape index: {}]   ;;  %s4644_s3 = inlined_call_operand.vmem [shape: f32[8,1], index: 3, kind: input, shape index: {}]   ;;  %s4645_s4 = inlined_call_operand.vmem [shape: bf16[25,8,4], index: 4, kind: input, shape index: {}]   ;;  %s4646_s5 = inlined_call_operand.vmem [shape: f32[8,1], index: 5, kind: input, shape index: {}]   ;;  %s4647_s6 = inlined_call_operand.vmem [shape: f32[8,8], index: 6, kind: input, shape index: {}]   ;;  %s4648_s7 = inlined_call_operand.vmem [shape: f32[8,8], index: 7, kind: input, shape index: {}]   ;;  %s4649_s8 = inlined_call_operand.vmem [shape: f32[8,1], index: 8, kind: input, shape index: {}]   ;;  %s4650_s9 = inlined_call_operand.vmem [shape: f32[8,8], index: 9, kind: input, shape index: {}]   ;;  %s4651_s10 = inlined_call_operand.vmem [shape: f32[8,1], index: 10, kind: input, shape index: {}]   ;;  %s4652_s11 = inlined_call_operand.vmem [shape: bf16[8,8], index: 11, kind: input, shape index: {}]   ;;  %s4653_s12 = inlined_call_operand.vmem [shape: bf16[8,8], index: 12, kind: input, shape index: {}]   ;;  %s4654_s13 = inlined_call_operand.vmem [shape: f32[8,1], index: 13, kind: input, shape index: {}]   ;;  %s4655_s14 = inlined_call_operand.vmem [shape: f32[2,8,384], index: 14, kind: output, shape index: {}]  }
   0x1 LB: > { %s3412_s30 = sadd.s32 4294967295, %s3620_s29   ;;  %p3416_p0 = scmp.ge.s32.totalorder %s3620_s29, 1  ;;  %s3620_s29 = sphi %s3730_s29, %s24_s29  }
   0x2   : > { %p412_p1 = scmp.lt.s32.totalorder %s3620_s29, 3 }
   0x4   : > { %p413_p2 = pnand %p3416_p0, %p412_p1 }
   0x5   : > { %p458_p3 = scmp.lt.s32.totalorder (!%p413_p2), %s3412_s30, 1  ;;  %s3622_s19 = smov (!%p413_p2), 125  }
   0x6   : > { %416 = sbr.rel (%p413_p2) target bundleno = 1393 (0x571), region = 76  ;;  %s3623_s20 = smov (!%p413_p2), 122  }
   0x7   : > { %s3624_s21 = smov (!%p413_p2), 62   ;;  %s3625_s22 = smov (!%p413_p2), 59  }
   0x8   : > { %s3626_s23 = smov (!%p413_p2), 56   ;;  %s3627_s24 = smov (!%p413_p2), 124  }
   0x9   : > { %s3628_s25 = smov (!%p413_p2), 121   ;;  %s3629_s26 = smov (!%p413_p2), 118  }
   0xa   : > { %s3630_s27 = smov (!%p413_p2), 104   ;;  %s3631_s16 = smov (!%p413_p2), 105  }
   0xb   : > { %s4657_s30 = smov (!%p458_p3, %s3412_s30), 1  ;;  %vm500_vm0 = vcmask 1041408   ;;  %v3777_v46 = vld [vmem:[%s4643_s2] sm:$0xf]  ;;  %vm496_vm1 = vcmask 31744   ;;  %s3632_s17 = smov 103  }
   0xc   : > { %s3565_s15 = smul.u32 10, %s4657_s30  ;;  %vm492_vm2 = vcmask 1022976   ;;  %vm620_vm3 = vcmask 998400   ;;  %vm697_vm4 = vcmask 506880   ;;  %vm774_vm5 = vcmask 482304   ;;  %s3636_s28 = smov 82  }
   0xd   : > { %vm851_vm6 = vcmask 457728   ;;  %vm931_vm7 = vcmask 1014784   ;;  %vm1010_vm8 = vcmask 990208   ;;  %vm1089_vm9 = vcmask 965632  }
   0xe   : > { %s3744_s18 = scalar_lea.vmem %s4641_s0, %s3565_s15  ;;  %s3637_s15 = smov 81   ;;  %vm1182_vm10 = vcmask 850944   ;;  %vm1254_vm11 = vcmask 859136   ;;  %vm1328_vm12 = vcmask 842752   ;;  %vm1405_vm13 = vcmask 834560  }
   0xf   : > { %v3747_v0 = vld [vmem:[%s3744_s18] sm:$0xff]  ;;  %v470_v16 = vld [vmem:[%s3744_s18 + $0x8] sm:$0x3]  ;;  %s3633_s18 = smov 102   ;;  %vm1482_vm14 = vcmask 826368   ;;  %vm1559_vm15 = vcmask 678912  }
  0x10   : > { %475 = vst [vmem:[#allocation1] ss:$4 sm:$0xff] %v3747_v0 }
  0x11   : > { %914 = vst [vmem:[#allocation1 + $0x20] ss:$4 sm:$0xff] %v470_v16 }
  0x17   : > { %v480_v1 = vld.sshfl [vmem:[#allocation1 + $0x10] sm:$0xff pattern:$0x73625140]  ;;  %v476_v2 = vld.sshfl [vmem:[#allocation1] sm:$0xff pattern:$0x73625140] }
  0x18   : > { %488 = vrot.lane.b32.xlu1 %v480_v1, %s3622_s19  ;;  %484 = vrot.lane.b32.xlu0 %v476_v2, %s3622_s19  ;;  %v482_v3 = vld.sshfl [vmem:[#allocation1 + $0x18] sm:$0xff pattern:$0x73625140]  ;;  %v478_v4 = vld.sshfl [vmem:[#allocation1 + $0x8] sm:$0xff pattern:$0x73625140] }
  0x19   : > { %549 = vst [vmem:[#allocation1] ss:$4 sm:$0xff] %v3747_v0  ;;  %v921_v21 = vld.sshfl [vmem:[#allocation1 + $0x20] sm:$0xff pattern:$0x73625140] }
  0x1a   : > { %993 = vst [vmem:[#allocation1 + $0x20] ss:$4 sm:$0xff] %v470_v16 }
  0x20   : > { %490 = vrot.lane.b32.xlu1 %v482_v3, %s3622_s19  ;;  %486 = vrot.lane.b32.xlu0 %v478_v4, %s3622_s19  ;;  %v3751_v5 = vld.sshfl [vmem:[#allocation1] sm:$0xff pattern:$0x73625140]  ;;  %v3753_v6 = vld.sshfl [vmem:[#allocation1 + $0x8] sm:$0xff pattern:$0x73625140] }
  0x21   : > { %v3755_v7 = vld.sshfl [vmem:[#allocation1 + $0x10] sm:$0xff pattern:$0x73625140]  ;;  %v1000_v26 = vld.sshfl [vmem:[#allocation1 + $0x20] sm:$0xff pattern:$0x73625140] }
  0x22   : > { %603 = vst [vmem:[#allocation1] ss:$4 sm:$0xff] %v3747_v0  ;;  %v556_v41 = vsel %vm500_vm0, %v3751_v5, 0  ;;  %v558_v2 = vsel %vm500_vm0, %v3753_v6, 0  ;;  %s3642_s19 = smov 58  }
  0x23   : > { %1072 = vst [vmem:[#allocation1 + $0x20] ss:$4 sm:$0xff] %v470_v16  ;;  %569 = vmatpush.bf16.msra.mxu3 %v556_v41 }
  0x26   : > { %3423 = vmatmul.msk.bf16.vlgmr.msra.gmra.mxu3 %vm496_vm1, %v3777_v46 }
  0x29   : > { %v608_v8 = vld.sshfl [vmem:[#allocation1 + $0x10] sm:$0xff pattern:$0x73625140]  ;;  %v610_v9 = vld.sshfl [vmem:[#allocation1 + $0x18] sm:$0xff pattern:$0x73625140] }
  0x2a   : > { %616 = vrot.lane.b32.xlu0 %v608_v8, %s3623_s20  ;;  %v604_v10 = vld.sshfl [vmem:[#allocation1] sm:$0xff pattern:$0x73625140]  ;;  %v606_v11 = vld.sshfl [vmem:[#allocation1 + $0x8] sm:$0xff pattern:$0x73625140]  ;;  %618 = vrot.lane.b32.xlu1 %v610_v9, %s3623_s20 }
  0x2b   : > { %680 = vst [vmem:[#allocation1] ss:$4 sm:$0xff] %v3747_v0  ;;  %612 = vrot.lane.b32.xlu2 %v604_v10, %s3623_s20  ;;  %v1079_v40 = vld.sshfl [vmem:[#allocation1 + $0x20] sm:$0xff pattern:$0x73625140]  ;;  %v560_v8 = vsel %vm500_vm0, %v3755_v7, 0 }
  0x32   : > { %v683_v12 = vld.sshfl [vmem:[#allocation1 + $0x8] sm:$0xff pattern:$0x73625140]  ;;  %v685_v13 = vld.sshfl [vmem:[#allocation1 + $0x10] sm:$0xff pattern:$0x73625140] }
  0x33   : > { %v687_v14 = vld.sshfl [vmem:[#allocation1 + $0x18] sm:$0xff pattern:$0x73625140]  ;;  %691 = vrot.lane.b32.xlu0 %v683_v12, %s3624_s21  ;;  %v681_v15 = vld.sshfl [vmem:[#allocation1] sm:$0xff pattern:$0x73625140]  ;;  %693 = vrot.lane.b32.xlu1 %v685_v13, %s3624_s21 }
  0x34   : > { %757 = vst [vmem:[#allocation1] ss:$4 sm:$0xff] %v3747_v0  ;;  %614 = vrot.lane.b32.xlu2 %v606_v11, %s3623_s20  ;;  %v3419_v12 = vld [vmem:[%s4643_s2 + $0x4] sm:$0xf]  ;;  %s3638_s20 = smov 80  }
  0x3b   : > { %v758_v17 = vld.sshfl [vmem:[#allocation1] sm:$0xff pattern:$0x73625140]  ;;  %v762_v18 = vld.sshfl [vmem:[#allocation1 + $0x10] sm:$0xff pattern:$0x73625140] }
  0x3c   : > { %766 = vrot.lane.b32.xlu0 %v758_v17, %s3625_s22  ;;  %v764_v19 = vld.sshfl [vmem:[#allocation1 + $0x18] sm:$0xff pattern:$0x73625140]  ;;  %v760_v20 = vld.sshfl [vmem:[#allocation1 + $0x8] sm:$0xff pattern:$0x73625140]  ;;  %689 = vrot.lane.b32.xlu2 %v681_v15, %s3624_s21 }
  0x3d   : > { %768 = vrot.lane.b32.xlu1 %v760_v20, %s3625_s22  ;;  %834 = vst [vmem:[#allocation1] ss:$4 sm:$0xff] %v3747_v0 }
  0x44   : > { %772 = vrot.lane.b32.xlu0 %v764_v19, %s3625_s22  ;;  %v839_v22 = vld.sshfl [vmem:[#allocation1 + $0x10] sm:$0xff pattern:$0x73625140]  ;;  %v841_v23 = vld.sshfl [vmem:[#allocation1 + $0x18] sm:$0xff pattern:$0x73625140]  ;;  %695 = vrot.lane.b32.xlu2 %v687_v14, %s3624_s21 }
  0x45   : > { %v837_v24 = vld.sshfl [vmem:[#allocation1 + $0x8] sm:$0xff pattern:$0x73625140]  ;;  %v835_v25 = vld.sshfl [vmem:[#allocation1] sm:$0xff pattern:$0x73625140] }
  0x46   : > { %843 = vrot.lane.b32.xlu1 %v835_v25, %s3626_s23  ;;  %911 = vst [vmem:[#allocation1] ss:$4 sm:$0xff] %v3747_v0  ;;  %s3634_s21 = smov 101  }
  0x4c   : > { %847 = vrot.lane.b32.xlu0 %v839_v22, %s3626_s23  ;;  %770 = vrot.lane.b32.xlu2 %v762_v18, %s3625_s22 }
  0x4d   : > { %v917_v27 = vld.sshfl [vmem:[#allocation1 + $0x10] sm:$0xff pattern:$0x73625140]  ;;  %v919_v28 = vld.sshfl [vmem:[#allocation1 + $0x18] sm:$0xff pattern:$0x73625140] }
  0x4e   : > { %v915_v29 = vld.sshfl [vmem:[#allocation1 + $0x8] sm:$0xff pattern:$0x73625140]  ;;  %849 = vrot.lane.b32.xlu1 %v841_v23, %s3626_s23 }
  0x4f   : > { %991 = vst [vmem:[#allocation1] ss:$4 sm:$0xff] %v3747_v0 }
  0x54   : > { %925 = vrot.lane.b32.xlu0 %v917_v27, %s3627_s24  ;;  %845 = vrot.lane.b32.xlu2 %v837_v24, %s3626_s23  ;;  %s3643_s23 = smov 57  }
  0x56   : > { %v996_v30 = vld.sshfl [vmem:[#allocation1 + $0x10] sm:$0xff pattern:$0x73625140]  ;;  %927 = vrot.lane.b32.xlu1 %v919_v28, %s3627_s24  ;;  %v994_v31 = vld.sshfl [vmem:[#allocation1 + $0x8] sm:$0xff pattern:$0x73625140] }
  0x57   : > { %v998_v32 = vld.sshfl [vmem:[#allocation1 + $0x18] sm:$0xff pattern:$0x73625140] }
  0x58   : > { %1070 = vst [vmem:[#allocation1] ss:$4 sm:$0xff] %v3747_v0 }
  0x5c   : > { %1002 = vrot.lane.b32.xlu0 %v994_v31, %s3628_s25  ;;  %923 = vrot.lane.b32.xlu2 %v915_v29, %s3627_s24 }
  0x5e   : > { %1004 = vrot.lane.b32.xlu1 %v996_v30, %s3628_s25 }
  0x5f   : > { %v1077_v33 = vld.sshfl [vmem:[#allocation1 + $0x18] sm:$0xff pattern:$0x73625140]  ;;  %v1073_v34 = vld.sshfl [vmem:[#allocation1 + $0x8] sm:$0xff pattern:$0x73625140] }
  0x60   : > { %v1075_v35 = vld.sshfl [vmem:[#allocation1 + $0x10] sm:$0xff pattern:$0x73625140] }
  0x61   : > { %1165 = vst [vmem:[#allocation1] ss:$4 sm:$0xff] %v3747_v0 }
  0x64   : > { %1008 = vrot.lane.b32.xlu0 %v1000_v26, %s3628_s25  ;;  %929 = vrot.lane.b32.xlu2 %v921_v21, %s3627_s24  ;;  %v3816_v21 = vld [vmem:[%s4643_s2 + $0x8] sm:$0xf]  ;;  %s3639_s24 = smov 79  }
  0x66   : > { %1081 = vrot.lane.b32.xlu1 %v1073_v34, %s3629_s26 }
  0x68   : > { %v1168_v36 = vld.sshfl [vmem:[#allocation1 + $0x8] sm:$0xff pattern:$0x73625140]  ;;  %v1170_v37 = vld.sshfl [vmem:[#allocation1 + $0x10] sm:$0xff pattern:$0x73625140] }
  0x69   : > { %v1172_v38 = vld.sshfl [vmem:[#allocation1 + $0x18] sm:$0xff pattern:$0x73625140]  ;;  %v1166_v39 = vld.sshfl [vmem:[#allocation1] sm:$0xff pattern:$0x73625140] }
  0x6a   : > { %1237 = vst [vmem:[#allocation1] ss:$4 sm:$0xff] %v3747_v0 }
  0x6c   : > { %1085 = vrot.lane.b32.xlu0 %v1077_v33, %s3629_s26  ;;  %1006 = vrot.lane.b32.xlu2 %v998_v32, %s3628_s25  ;;  %s3635_s25 = smov 83  }
  0x6e   : > { %1087 = vrot.lane.b32.xlu1 %v1079_v40, %s3629_s26 }
  0x71   : > { %v1238_v42 = vld.sshfl [vmem:[#allocation1] sm:$0xff pattern:$0x73625140]  ;;  %v1240_v43 = vld.sshfl [vmem:[#allocation1 + $0x8] sm:$0xff pattern:$0x73625140] }
  0x72   : > { %v1242_v44 = vld.sshfl [vmem:[#allocation1 + $0x10] sm:$0xff pattern:$0x73625140]  ;;  %v1244_v45 = vld.sshfl [vmem:[#allocation1 + $0x18] sm:$0xff pattern:$0x73625140] }
  0x73   : > { %1311 = vst [vmem:[#allocation1] ss:$4 sm:$0xff] %v3747_v0 }
  0x74   : > { %1176 = vrot.lane.b32.xlu0 %v1168_v36, %s3630_s27  ;;  %1083 = vrot.lane.b32.xlu2 %v1075_v35, %s3629_s26  ;;  %s3645_s26 = smov 38  }
  0x76   : > { %1178 = vrot.lane.b32.xlu1 %v1170_v37, %s3630_s27 }
  0x7a   : > { %v1316_v47 = vld.sshfl [vmem:[#allocation1 + $0x10] sm:$0xff pattern:$0x73625140]  ;;  %v1318_v48 = vld.sshfl [vmem:[#allocation1 + $0x18] sm:$0xff pattern:$0x73625140] }
  0x7b   : > { %v1312_v49 = vld.sshfl [vmem:[#allocation1] sm:$0xff pattern:$0x73625140]  ;;  %v1314_v50 = vld.sshfl [vmem:[#allocation1 + $0x8] sm:$0xff pattern:$0x73625140] }
  0x7c   : > { %1246 = vrot.lane.b32.xlu0 %v1238_v42, %s3631_s16  ;;  %1388 = vst [vmem:[#allocation1] ss:$4 sm:$0xff] %v3747_v0  ;;  %1174 = vrot.lane.b32.xlu2 %v1166_v39, %s3630_s27 }
  0x7e   : > { %1248 = vrot.lane.b32.xlu1 %v1240_v43, %s3631_s16 }
  0x83   : > { %v1391_v51 = vld.sshfl [vmem:[#allocation1 + $0x8] sm:$0xff pattern:$0x73625140]  ;;  %v1393_v52 = vld.sshfl [vmem:[#allocation1 + $0x10] sm:$0xff pattern:$0x73625140] }
  0x84   : > { %1252 = vrot.lane.b32.xlu0 %v1244_v45, %s3631_s16  ;;  %v3782_v53 = vld.sshfl [vmem:[#allocation1 + $0x18] sm:$0xff pattern:$0x73625140]  ;;  %v1389_v54 = vld.sshfl [vmem:[#allocation1] sm:$0xff pattern:$0x73625140]  ;;  %1180 = vrot.lane.b32.xlu2 %v1172_v38, %s3630_s27 }
  0x85   : > { %1465 = vst [vmem:[#allocation1] ss:$4 sm:$0xff] %v3747_v0  ;;  %v613_v55 = vpop.permute.xlu2 %612  ;;  %v3430_v45 = vld [vmem:[%s4643_s2 + $0xc] sm:$0xf]  ;;  %s3650_s27 = smov 16  }
  0x86   : > { %1320 = vrot.lane.b32.xlu1 %v1312_v49, %s3632_s17 }
  0x8a   : > { %v489_v56 = vpop.permute.xlu1 %488  ;;  %v485_v57 = vpop.permute.xlu0 %484 }
  0x8c   : > { %1324 = vrot.lane.b32.xlu0 %v1316_v47, %s3632_s17  ;;  %v1466_v58 = vld.sshfl [vmem:[#allocation1] sm:$0xff pattern:$0x73625140]  ;;  %v1468_v59 = vld.sshfl [vmem:[#allocation1 + $0x8] sm:$0xff pattern:$0x73625140]  ;;  %1250 = vrot.lane.b32.xlu2 %v1242_v44, %s3631_s16 }
  0x8d   : > { %v3785_v60 = vld.sshfl [vmem:[#allocation1 + $0x10] sm:$0xff pattern:$0x73625140]  ;;  %v1472_v61 = vld.sshfl [vmem:[#allocation1 + $0x18] sm:$0xff pattern:$0x73625140] }
  0x8e   : > { %v615_v62 = vpop.permute.xlu2 %614  ;;  %1326 = vrot.lane.b32.xlu1 %v1318_v48, %s3632_s17  ;;  %1542 = vst [vmem:[#allocation1] ss:$4 sm:$0xff] %v3747_v0  ;;  %s3652_s16 = smov 15  }
  0x8f   : > { %v621_v6 = vsel %vm620_vm3, %v613_v55, %v615_v62 }
  0x90   : > { %v628_v17 = vsel %vm500_vm0, %v621_v6, 0  ;;  %v3434_v6 = vld [vmem:[%s4643_s2 + $0x10] sm:$0xf] }
  0x92   : > { %v491_v63 = vpop.permute.xlu1 %490  ;;  %v487_v1 = vpop.permute.xlu0 %486 }
  0x93   : > { %v493_v3 = vsel %vm492_vm2, %v485_v57, %v487_v1  ;;  %v494_v4 = vsel %vm492_vm2, %v487_v1, %v489_v56  ;;  %v495_v5 = vsel %vm492_vm2, %v489_v56, %v491_v63  ;;  %vm1636_vm2 = vcmask 670720  }
  0x94   : > { %1399 = vrot.lane.b32.xlu0 %v1391_v51, %s3633_s18  ;;  %v502_v9 = vsel %vm500_vm0, %v493_v3, 0  ;;  %v505_v10 = vsel %vm500_vm0, %v494_v4, 0  ;;  %v508_v11 = vsel %vm500_vm0, %v495_v5, 0  ;;  %1322 = vrot.lane.b32.xlu2 %v1314_v50, %s3632_s17  ;;  %s3646_s17 = smov 37  }
  0x95   : > { %517 = vmatpush.bf16.msra.mxu0 %v502_v9  ;;  %530 = vmatpush.bf16.msra.mxu1 %v505_v10  ;;  %v1547_v13 = vld.sshfl [vmem:[#allocation1 + $0x10] sm:$0xff pattern:$0x73625140]  ;;  %v3800_v7 = vld.sshfl [vmem:[#allocation1 + $0x18] sm:$0xff pattern:$0x73625140] }
  0x96   : > { %543 = vmatpush.bf16.msra.mxu2 %v508_v11  ;;  %v690_v14 = vpop.permute.xlu2 %689  ;;  %1401 = vrot.lane.b32.xlu1 %v1393_v52, %s3633_s18  ;;  %v1543_v15 = vld.sshfl [vmem:[#allocation1] sm:$0xff pattern:$0x73625140]  ;;  %v3803_v16 = vld.sshfl [vmem:[#allocation1 + $0x8] sm:$0xff pattern:$0x73625140] }
  0x97   : > { %1619 = vst [vmem:[#allocation1] ss:$4 sm:$0xff] %v3747_v0 }
  0x98   : > { %3420 = vmatmul.msk.bf16.vlgmr.msra.gmra.mxu0 %vm496_vm1, %v3419_v12  ;;  %3421 = vmatmul.msk.bf16.vlgmr.msra.gmra.mxu1 %vm496_vm1, %v3419_v12 }
  0x99   : > { %582 = vmatpush.bf16.msrb.mxu0 %v558_v2  ;;  %595 = vmatpush.bf16.msrb.mxu1 %v560_v8  ;;  %v3894_v8 = vld [vmem:[%s4643_s2 + $0x14] sm:$0xf] }
  0x9a   : > { %3422 = vmatmul.msk.bf16.vlgmr.msra.gmra.mxu2 %vm496_vm1, %v3419_v12 }
  0x9b   : > { %643 = vmatpush.bf16.msrb.mxu2 %v628_v17 }
  0x9c   : > { %1474 = vrot.lane.b32.xlu0 %v1466_v58, %s3634_s21  ;;  %v617_v18 = vpop.permute.xlu0 %616  ;;  %v619_v19 = vpop.permute.xlu1 %618  ;;  %1397 = vrot.lane.b32.xlu2 %v1389_v54, %s3633_s18 }
  0x9d   : > { %v622_v20 = vsel %vm620_vm3, %v615_v62, %v617_v18  ;;  %v623_v22 = vsel %vm620_vm3, %v617_v18, %v619_v19  ;;  %vm1713_vm3 = vcmask 662528  }
  0x9e   : > { %v631_v23 = vsel %vm500_vm0, %v622_v20, 0  ;;  %v634_v24 = vsel %vm500_vm0, %v623_v22, 0  ;;  %v696_v25 = vpop.permute.xlu2 %695  ;;  %1476 = vrot.lane.b32.xlu1 %v1468_v59, %s3634_s21  ;;  %v1622_v26 = vld.sshfl [vmem:[#allocation1 + $0x8] sm:$0xff pattern:$0x73625140] }
  0x9f   : > { %656 = vmatpush.bf16.msrb.mxu3 %v631_v23  ;;  %669 = vmatpush.bf16.msra.mxu0 %v634_v24  ;;  %v1624_v27 = vld.sshfl [vmem:[#allocation1 + $0x10] sm:$0xff pattern:$0x73625140]  ;;  %v3822_v28 = vld.sshfl [vmem:[#allocation1 + $0x18] sm:$0xff pattern:$0x73625140] }
  0xa0   : > { %v3824_v29 = vld.sshfl [vmem:[#allocation1] sm:$0xff pattern:$0x73625140] }
  0xa1   : > { %1696 = vst [vmem:[#allocation1] ss:$4 sm:$0xff] %v3747_v0 }
  0xa2   : > { %3428 = vmatmul.msk.bf16.vlgmr.msrb.gmra.mxu3 %vm496_vm1, %v3816_v21 }
  0xa4   : > { %1480 = vrot.lane.b32.xlu0 %v1472_v61, %s3634_s21  ;;  %1403 = vrot.lane.b32.xlu2 %v3782_v53, %s3633_s18 }
  0xa5   : > { %v692_v30 = vpop.permute.xlu0 %691  ;;  %v694_v31 = vpop.permute.xlu1 %693 }
  0xa6   : > { %v698_v32 = vsel %vm697_vm4, %v690_v14, %v692_v30  ;;  %v699_v33 = vsel %vm697_vm4, %v692_v30, %v694_v31  ;;  %v700_v34 = vsel %vm697_vm4, %v694_v31, %v696_v25  ;;  %v771_v35 = vpop.permute.xlu2 %770  ;;  %1551 = vrot.lane.b32.xlu1 %v1543_v15, %s3635_s25  ;;  %v3442_v31 = vld [vmem:[%s4643_s2 + $0x18] sm:$0xf]  ;;  %vm1790_vm4 = vcmask 654336  }
  0xa7   : > { %v705_v36 = vsel %vm500_vm0, %v698_v32, 0  ;;  %v708_v37 = vsel %vm500_vm0, %v699_v33, 0  ;;  %v711_v38 = vsel %vm500_vm0, %v700_v34, 0 }
  0xa8   : > { %3424 = vmatmul.msk.bf16.vlgmr.msrb.gmra.mxu0 %vm496_vm1, %v3777_v46  ;;  %3425 = vmatmul.msk.bf16.vlgmr.msrb.gmra.mxu1 %vm496_vm1, %v3777_v46  ;;  %v1697_v39 = vld.sshfl [vmem:[#allocation1] sm:$0xff pattern:$0x73625140]  ;;  %v1699_v40 = vld.sshfl [vmem:[#allocation1 + $0x8] sm:$0xff pattern:$0x73625140] }
  0xa9   : > { %746 = vmatpush.bf16.msra.mxu3 %v711_v38  ;;  %v3842_v41 = vld.sshfl [vmem:[#allocation1 + $0x10] sm:$0xff pattern:$0x73625140]  ;;  %v1703_v42 = vld.sshfl [vmem:[#allocation1 + $0x18] sm:$0xff pattern:$0x73625140]  ;;  %720 = vmatpush.bf16.msra.mxu1 %v705_v36 }
  0xaa   : > { %3427 = vmatmul.msk.bf16.vlgmr.msrb.gmra.mxu2 %vm496_vm1, %v3816_v21  ;;  %1773 = vst [vmem:[#allocation1] ss:$4 sm:$0xff] %v3747_v0 }
  0xab   : > { %733 = vmatpush.bf16.msra.mxu2 %v708_v37 }
  0xac   : > { %1555 = vrot.lane.b32.xlu0 %v1547_v13, %s3635_s25  ;;  %1478 = vrot.lane.b32.xlu2 %v3785_v60, %s3634_s21  ;;  %s3648_s21 = smov 35  }
  0xae   : > { %v767_v43 = vpop.permute.xlu0 %766  ;;  %v846_v44 = vpop.permute.xlu2 %845  ;;  %1557 = vrot.lane.b32.xlu1 %v3800_v7, %s3635_s25 }
  0xaf   : > { %v769_v46 = vpop.permute.xlu1 %768 }
  0xb0   : > { %v775_v47 = vsel %vm774_vm5, %v767_v43, %v769_v46  ;;  %v776_v48 = vsel %vm774_vm5, %v769_v46, %v771_v35 }
  0xb1   : > { %v782_v49 = vsel %vm500_vm0, %v775_v47, 0  ;;  %v785_v50 = vsel %vm500_vm0, %v776_v48, 0  ;;  %v3857_v51 = vld.sshfl [vmem:[#allocation1 + $0x10] sm:$0xff pattern:$0x73625140] }
  0xb2   : > { %3433 = vmatmul.msk.bf16.vlgmr.msra.gmra.mxu3 %vm496_vm1, %v3430_v45  ;;  %797 = vmatpush.bf16.msrb.mxu0 %v782_v49  ;;  %v3860_v52 = vld.sshfl [vmem:[#allocation1 + $0x18] sm:$0xff pattern:$0x73625140]  ;;  %v1774_v53 = vld.sshfl [vmem:[#allocation1] sm:$0xff pattern:$0x73625140] }
  0xb3   : > { %810 = vmatpush.bf16.msrb.mxu1 %v785_v50  ;;  %v3862_v54 = vld.sshfl [vmem:[#allocation1 + $0x8] sm:$0xff pattern:$0x73625140]  ;;  %v3446_v50 = vld [vmem:[%s4643_s2 + $0x1c] sm:$0xf] }
  0xb4   : > { %1630 = vrot.lane.b32.xlu0 %v1622_v26, %s3636_s28  ;;  %1850 = vst [vmem:[#allocation1] ss:$4 sm:$0xff] %v3747_v0  ;;  %1553 = vrot.lane.b32.xlu2 %v3803_v16, %s3635_s25  ;;  %s3640_s25 = smov 61  }
  0xb6   : > { %v773_v55 = vpop.permute.xlu0 %772  ;;  %v924_v56 = vpop.permute.xlu2 %923  ;;  %1632 = vrot.lane.b32.xlu1 %v1624_v27, %s3636_s28 }
  0xb7   : > { %v777_v57 = vsel %vm774_vm5, %v771_v35, %v773_v55 }
  0xb8   : > { %v788_v58 = vsel %vm500_vm0, %v777_v57, 0  ;;  %3429 = vmatmul.msk.bf16.vlgmr.msra.gmra.mxu0 %vm496_vm1, %v3816_v21  ;;  %3431 = vmatmul.msk.bf16.vlgmr.msra.gmra.mxu1 %vm496_vm1, %v3430_v45  ;;  %v844_v59 = vpop.permute.xlu1 %843 }
  0xb9   : > { %v852_v60 = vsel %vm851_vm6, %v844_v59, %v846_v44  ;;  %823 = vmatpush.bf16.msrb.mxu2 %v788_v58 }
  0xba   : > { %3432 = vmatmul.msk.bf16.vlgmr.msra.gmra.mxu2 %vm496_vm1, %v3430_v45  ;;  %v859_v61 = vsel %vm500_vm0, %v852_v60, 0 }
  0xbb   : > { %874 = vmatpush.bf16.msrb.mxu3 %v859_v61  ;;  %v3877_v62 = vld.sshfl [vmem:[#allocation1 + $0x8] sm:$0xff pattern:$0x73625140]  ;;  %v3879_v63 = vld.sshfl [vmem:[#allocation1 + $0x10] sm:$0xff pattern:$0x73625140] }
  0xbc   : > { %1705 = vrot.lane.b32.xlu0 %v1697_v39, %s3637_s15  ;;  %v3882_v1 = vld.sshfl [vmem:[#allocation1 + $0x18] sm:$0xff pattern:$0x73625140]  ;;  %v3884_v2 = vld.sshfl [vmem:[#allocation1] sm:$0xff pattern:$0x73625140]  ;;  %1628 = vrot.lane.b32.xlu2 %v3824_v29, %s3636_s28 }
  0xbd   : > { %1927 = vst [vmem:[#allocation1] ss:$4 sm:$0xff] %v3747_v0 }
  0xbe   : > { %v848_v3 = vpop.permute.xlu0 %847  ;;  %v930_v4 = vpop.permute.xlu2 %929  ;;  %1707 = vrot.lane.b32.xlu1 %v1699_v40, %s3637_s15 }
  0xbf   : > { %v853_v5 = vsel %vm851_vm6, %v846_v44, %v848_v3 }
  0xc0   : > { %v862_v9 = vsel %vm500_vm0, %v853_v5, 0  ;;  %v850_v10 = vpop.permute.xlu1 %849 }
  0xc1   : > { %v854_v11 = vsel %vm851_vm6, %v848_v3, %v850_v10  ;;  %887 = vmatpush.bf16.msra.mxu0 %v862_v9  ;;  %vm1867_vm6 = vcmask 646144  }
  0xc2   : > { %3439 = vmatmul.msk.bf16.vlgmr.msrb.gmra.mxu3 %vm496_vm1, %v3894_v8  ;;  %v865_v12 = vsel %vm500_vm0, %v854_v11, 0 }
  0xc3   : > { %900 = vmatpush.bf16.msra.mxu1 %v865_v12 }
  0xc4   : > { %1711 = vrot.lane.b32.xlu0 %v1703_v42, %s3637_s15  ;;  %v3905_v13 = vld.sshfl [vmem:[#allocation1] sm:$0xff pattern:$0x73625140]  ;;  %v3907_v7 = vld.sshfl [vmem:[#allocation1 + $0x8] sm:$0xff pattern:$0x73625140]  ;;  %1634 = vrot.lane.b32.xlu2 %v3822_v28, %s3636_s28 }
  0xc5   : > { %v3911_v14 = vld.sshfl [vmem:[#allocation1 + $0x10] sm:$0xff pattern:$0x73625140]  ;;  %v3913_v15 = vld.sshfl [vmem:[#allocation1 + $0x18] sm:$0xff pattern:$0x73625140] }
  0xc6   : > { %v926_v16 = vpop.permute.xlu0 %925  ;;  %v1007_v17 = vpop.permute.xlu2 %1006  ;;  %1782 = vrot.lane.b32.xlu1 %v1774_v53, %s3638_s20  ;;  %2004 = vst [vmem:[#allocation1] ss:$4 sm:$0xff] %v3747_v0  ;;  %s3641_s28 = smov 60  }
  0xc7   : > { %v932_v18 = vsel %vm931_vm7, %v924_v56, %v926_v16 }
  0xc8   : > { %3435 = vmatmul.msk.bf16.vlgmr.msrb.gmra.mxu0 %vm496_vm1, %v3434_v6  ;;  %3436 = vmatmul.msk.bf16.vlgmr.msrb.gmra.mxu1 %vm496_vm1, %v3434_v6  ;;  %v928_v19 = vpop.permute.xlu1 %927  ;;  %v939_v20 = vsel %vm500_vm0, %v932_v18, 0 }
  0xc9   : > { %v933_v21 = vsel %vm931_vm7, %v926_v16, %v928_v19  ;;  %v934_v22 = vsel %vm931_vm7, %v928_v19, %v930_v4  ;;  %954 = vmatpush.bf16.msra.mxu2 %v939_v20  ;;  %vm1944_vm7 = vcmask 498688  }
  0xca   : > { %3437 = vmatmul.msk.bf16.vlgmr.msrb.gmra.mxu2 %vm496_vm1, %v3434_v6  ;;  %v942_v23 = vsel %vm500_vm0, %v933_v21, 0  ;;  %v945_v24 = vsel %vm500_vm0, %v934_v22, 0  ;;  %v3450_v22 = vld [vmem:[%s4643_s2 + $0x20] sm:$0xf] }
  0xcb   : > { %967 = vmatpush.bf16.msra.mxu3 %v942_v23  ;;  %980 = vmatpush.bf16.msrb.mxu0 %v945_v24 }
  0xcc   : > { %1786 = vrot.lane.b32.xlu0 %v3857_v51, %s3638_s20  ;;  %1709 = vrot.lane.b32.xlu2 %v3842_v41, %s3637_s15 }
  0xcd   : > { %v3927_v25 = vld.sshfl [vmem:[#allocation1 + $0x10] sm:$0xff pattern:$0x73625140]  ;;  %v3929_v26 = vld.sshfl [vmem:[#allocation1 + $0x18] sm:$0xff pattern:$0x73625140] }
  0xce   : > { %v1003_v27 = vpop.permute.xlu0 %1002  ;;  %v1084_v28 = vpop.permute.xlu2 %1083  ;;  %1788 = vrot.lane.b32.xlu1 %v3860_v52, %s3638_s20  ;;  %v2005_v29 = vld.sshfl [vmem:[#allocation1] sm:$0xff pattern:$0x73625140]  ;;  %v3933_v30 = vld.sshfl [vmem:[#allocation1 + $0x8] sm:$0xff pattern:$0x73625140] }
  0xcf   : > { %2081 = vst [vmem:[#allocation1] ss:$4 sm:$0xff] %v3747_v0 }
  0xd0   : > { %v1005_v32 = vpop.permute.xlu1 %1004 }
  0xd1   : > { %v1011_v33 = vsel %vm1010_vm8, %v1003_v27, %v1005_v32  ;;  %v1012_v34 = vsel %vm1010_vm8, %v1005_v32, %v1007_v17 }
  0xd2   : > { %3444 = vmatmul.msk.bf16.vlgmr.msra.gmra.mxu3 %vm496_vm1, %v3442_v31  ;;  %v1018_v35 = vsel %vm500_vm0, %v1011_v33, 0  ;;  %v1021_v36 = vsel %vm500_vm0, %v1012_v34, 0 }
  0xd3   : > { %1033 = vmatpush.bf16.msrb.mxu1 %v1018_v35  ;;  %1046 = vmatpush.bf16.msrb.mxu2 %v1021_v36 }
  0xd4   : > { %1861 = vrot.lane.b32.xlu0 %v3877_v62, %s3639_s24  ;;  %1784 = vrot.lane.b32.xlu2 %v3862_v54, %s3638_s20  ;;  %s3647_s20 = smov 36  }
  0xd6   : > { %v1009_v37 = vpop.permute.xlu0 %1008  ;;  %v1175_v38 = vpop.permute.xlu2 %1174  ;;  %1863 = vrot.lane.b32.xlu1 %v3879_v63, %s3639_s24  ;;  %v3950_v39 = vld.sshfl [vmem:[#allocation1 + $0x8] sm:$0xff pattern:$0x73625140]  ;;  %v3952_v40 = vld.sshfl [vmem:[#allocation1 + $0x10] sm:$0xff pattern:$0x73625140] }
  0xd7   : > { %v1013_v41 = vsel %vm1010_vm8, %v1007_v17, %v1009_v37  ;;  %v3955_v42 = vld.sshfl [vmem:[#allocation1 + $0x18] sm:$0xff pattern:$0x73625140]  ;;  %v3957_v43 = vld.sshfl [vmem:[#allocation1] sm:$0xff pattern:$0x73625140] }
  0xd8   : > { %3440 = vmatmul.msk.bf16.vlgmr.msra.gmra.mxu0 %vm496_vm1, %v3894_v8  ;;  %3441 = vmatmul.msk.bf16.vlgmr.msra.gmra.mxu1 %vm496_vm1, %v3894_v8  ;;  %v1024_v44 = vsel %vm500_vm0, %v1013_v41, 0  ;;  %v1082_v45 = vpop.permute.xlu1 %1081  ;;  %2157 = vst [vmem:[#allocation1] ss:$4 sm:$0xff] %v3747_v0  ;;  %v4069_v37 = vld [vmem:[%s4645_s4] sm:$0xf]  ;;  %vm2021_vm8 = vcmask 490496  }
  0xd9   : > { %1059 = vmatpush.bf16.msrb.mxu3 %v1024_v44  ;;  %v1090_v46 = vsel %vm1089_vm9, %v1082_v45, %v1084_v28 }
  0xda   : > { %3443 = vmatmul.msk.bf16.vlgmr.msra.gmra.mxu2 %vm496_vm1, %v3442_v31  ;;  %v1097_v47 = vsel %vm500_vm0, %v1090_v46, 0 }
  0xdb   : > { %1112 = vmatpush.bf16.msra.mxu0 %v1097_v47 }
  0xdc   : > { %1936 = vrot.lane.b32.xlu0 %v3905_v13, %s3640_s25  ;;  %1859 = vrot.lane.b32.xlu2 %v3884_v2, %s3639_s24  ;;  %v3454_v13 = vld [vmem:[%s4645_s4 + $0x4] sm:$0xf] }
  0xde   : > { %v1086_v48 = vpop.permute.xlu0 %1085  ;;  %v1181_v49 = vpop.permute.xlu2 %1180  ;;  %1938 = vrot.lane.b32.xlu1 %v3907_v7, %s3640_s25 }
  0xdf   : > { %v1091_v51 = vsel %vm1089_vm9, %v1084_v28, %v1086_v48  ;;  %v3978_v52 = vld.sshfl [vmem:[#allocation1 + $0x8] sm:$0xff pattern:$0x73625140]  ;;  %v3981_v55 = vld.sshfl [vmem:[#allocation1 + $0x10] sm:$0xff pattern:$0x73625140]  ;;  %v4047_v28 = vpop.f32.mrf.mxu3 }
  0xe0   : > { %v1100_v53 = vsel %vm500_vm0, %v1091_v51, 0  ;;  %v1088_v54 = vpop.permute.xlu1 %1087  ;;  %v3984_v57 = vld.sshfl [vmem:[#allocation1] sm:$0xff pattern:$0x73625140] }
  0xe1   : > { %v1092_v56 = vsel %vm1089_vm9, %v1086_v48, %v1088_v54  ;;  %1125 = vmatpush.bf16.msra.mxu1 %v1100_v53  ;;  %v3986_v58 = vld.sshfl [vmem:[#allocation1 + $0x18] sm:$0xff pattern:$0x73625140]  ;;  %vm2174_vm9 = vcmask 474112  }
  0xe2   : > { %3449 = vmatmul.msk.bf16.vlgmr.msrb.gmra.mxu3 %vm496_vm1, %v3446_v50  ;;  %v1103_v59 = vsel %vm500_vm0, %v1092_v56, 0  ;;  %2234 = vst [vmem:[#allocation1] ss:$4 sm:$0xff] %v3747_v0 }
  0xe3   : > { %1138 = vmatpush.bf16.msra.mxu2 %v1103_v59  ;;  %v3461_v59 = vld [vmem:[%s4645_s4 + $0x8] sm:$0xf] }
  0xe4   : > { %1942 = vrot.lane.b32.xlu0 %v3913_v15, %s3640_s25  ;;  %1865 = vrot.lane.b32.xlu2 %v3882_v1, %s3639_s24  ;;  %s3649_s24 = smov 17  }
  0xe6   : > { %v1177_v60 = vpop.permute.xlu0 %1176  ;;  %v1251_v61 = vpop.permute.xlu2 %1250  ;;  %2013 = vrot.lane.b32.xlu1 %v2005_v29, %s3641_s28 }
  0xe7   : > { %v1183_v62 = vsel %vm1182_vm10, %v1175_v38, %v1177_v60  ;;  %v573_v41 = vpop.f32.mrf.mxu3 }
  0xe8   : > { %3445 = vmatmul.msk.bf16.vlgmr.msrb.gmra.mxu0 %vm496_vm1, %v3442_v31  ;;  %3447 = vmatmul.msk.bf16.vlgmr.msrb.gmra.mxu1 %vm496_vm1, %v3446_v50  ;;  %v1190_v63 = vsel %vm500_vm0, %v1183_v62, 0  ;;  %v1179_v2 = vpop.permute.xlu1 %1178 }
  0xe9   : > { %1205 = vmatpush.bf16.msra.mxu3 %v1190_v63  ;;  %v1184_v3 = vsel %vm1182_vm10, %v1177_v60, %v1179_v2  ;;  %v1185_v4 = vsel %vm1182_vm10, %v1179_v2, %v1181_v49  ;;  %v4000_v5 = vld.sshfl [vmem:[#allocation1 + $0x10] sm:$0xff pattern:$0x73625140]  ;;  %v4002_v1 = vld.sshfl [vmem:[#allocation1 + $0x18] sm:$0xff pattern:$0x73625140] }
  0xea   : > { %3448 = vmatmul.msk.bf16.vlgmr.msrb.gmra.mxu2 %vm496_vm1, %v3446_v50  ;;  %v1193_v8 = vsel %vm500_vm0, %v1184_v3, 0  ;;  %v1196_v9 = vsel %vm500_vm0, %v1185_v4, 0  ;;  %v4006_v10 = vld.sshfl [vmem:[#allocation1] sm:$0xff pattern:$0x73625140]  ;;  %vm2405_vm10 = vcmask 310272  }
  0xeb   : > { %1218 = vmatpush.bf16.msrb.mxu0 %v1193_v8  ;;  %1231 = vmatpush.bf16.msrb.mxu1 %v1196_v9  ;;  %v4008_v11 = vld.sshfl [vmem:[#allocation1 + $0x8] sm:$0xff pattern:$0x73625140] }
  0xec   : > { %2017 = vrot.lane.b32.xlu0 %v3927_v25, %s3641_s28  ;;  %2311 = vst [vmem:[#allocation1] ss:$4 sm:$0xff] %v3747_v0  ;;  %1940 = vrot.lane.b32.xlu2 %v3911_v14, %s3640_s25  ;;  %s3644_s25 = smov 39  }
  0xee   : > { %v1247_v12 = vpop.permute.xlu0 %1246  ;;  %2019 = vrot.lane.b32.xlu1 %v3929_v26, %s3641_s28  ;;  %v1323_v6 = vpop.permute.xlu2 %1322 }
  0xf0   : > { %v1249_v7 = vpop.permute.xlu1 %1248 }
  0xf1   : > { %v1255_v15 = vsel %vm1254_vm11, %v1247_v12, %v1249_v7  ;;  %v1256_v16 = vsel %vm1254_vm11, %v1249_v7, %v1251_v61 }
  0xf2   : > { %3455 = vmatmul.msk.bf16.vlgmr.msra.gmra.mxu3 %vm496_vm1, %v3454_v13  ;;  %v1262_v17 = vsel %vm500_vm0, %v1255_v15, 0  ;;  %v1265_v14 = vsel %vm500_vm0, %v1256_v16, 0 }
  0xf3   : > { %1290 = vmatpush.bf16.msrb.mxu3 %v1265_v14  ;;  %1277 = vmatpush.bf16.msrb.mxu2 %v1262_v17  ;;  %v4025_v18 = vld.sshfl [vmem:[#allocation1 + $0x8] sm:$0xff pattern:$0x73625140]  ;;  %v4027_v19 = vld.sshfl [vmem:[#allocation1 + $0x10] sm:$0xff pattern:$0x73625140] }
  0xf4   : > { %2092 = vrot.lane.b32.xlu0 %v3950_v39, %s3625_s22  ;;  %v4031_v20 = vld.sshfl [vmem:[#allocation1 + $0x18] sm:$0xff pattern:$0x73625140]  ;;  %v4033_v21 = vld.sshfl [vmem:[#allocation1] sm:$0xff pattern:$0x73625140]  ;;  %2015 = vrot.lane.b32.xlu2 %v3933_v30, %s3641_s28 }
  0xf5   : > { %2388 = vst [vmem:[#allocation1] ss:$4 sm:$0xff] %v3747_v0 }
  0xf6   : > { %v1253_v23 = vpop.permute.xlu0 %1252  ;;  %2094 = vrot.lane.b32.xlu1 %v3952_v40, %s3625_s22  ;;  %v1398_v24 = vpop.permute.xlu2 %1397 }
  0xf7   : > { %v1257_v25 = vsel %vm1254_vm11, %v1251_v61, %v1253_v23  ;;  %vm2328_vm11 = vcmask 318464  }
  0xf8   : > { %3451 = vmatmul.msk.bf16.vlgmr.msra.gmra.mxu0 %vm496_vm1, %v3450_v22  ;;  %3452 = vmatmul.msk.bf16.vlgmr.msra.gmra.mxu1 %vm496_vm1, %v3450_v22  ;;  %v1268_v26 = vsel %vm500_vm0, %v1257_v25, 0  ;;  %v1321_v27 = vpop.permute.xlu1 %1320 }
  0xf9   : > { %v1329_v29 = vsel %vm1328_vm12, %v1321_v27, %v1323_v6  ;;  %1303 = vmatpush.bf16.msra.mxu0 %v1268_v26  ;;  %v4157_v26 = vld [vmem:[%s4645_s4 + $0x10] sm:$0xf] }
  0xfa   : > { %3453 = vmatmul.msk.bf16.vlgmr.msra.gmra.mxu2 %vm496_vm1, %v3450_v22  ;;  %v1336_v30 = vsel %vm500_vm0, %v1329_v29, 0 }
  0xfb   : > { %1351 = vmatpush.bf16.msra.mxu1 %v1336_v30 }
  0xfc   : > { %2166 = vrot.lane.b32.xlu0 %v3984_v57, %s3642_s19  ;;  %v4054_v31 = vld.sshfl [vmem:[#allocation1 + $0x8] sm:$0xff pattern:$0x73625140]  ;;  %2090 = vrot.lane.b32.xlu2 %v3957_v43, %s3625_s22  ;;  %v4058_v32 = vld.sshfl [vmem:[#allocation1 + $0x10] sm:$0xff pattern:$0x73625140] }
  0xfd   : > { %v4060_v34 = vld.sshfl [vmem:[#allocation1] sm:$0xff pattern:$0x73625140]  ;;  %v4064_v36 = vld.sshfl [vmem:[#allocation1 + $0x18] sm:$0xff pattern:$0x73625140] }
  0xfe   : > { %v1325_v33 = vpop.permute.xlu0 %1324  ;;  %2168 = vrot.lane.b32.xlu1 %v3978_v52, %s3642_s19  ;;  %v1404_v35 = vpop.permute.xlu2 %1403  ;;  %2465 = vst [vmem:[#allocation1] ss:$4 sm:$0xff] %v3747_v0 }
  0xff   : > { %v1330_v38 = vsel %vm1328_vm12, %v1323_v6, %v1325_v33 }
 0x100   : > { %v1339_v39 = vsel %vm500_vm0, %v1330_v38, 0  ;;  %v1327_v40 = vpop.permute.xlu1 %1326 }
 0x101   : > { %v1331_v43 = vsel %vm1328_vm12, %v1325_v33, %v1327_v40  ;;  %1364 = vmatpush.bf16.msra.mxu2 %v1339_v39  ;;  %vm2482_vm12 = vcmask 302080  }
 0x102   : > { %3459 = vmatmul.msk.bf16.vlgmr.msrb.gmra.mxu3 %vm496_vm1, %v4069_v37  ;;  %v1342_v44 = vsel %vm500_vm0, %v1331_v43, 0 }
 0x103   : > { %1377 = vmatpush.bf16.msra.mxu3 %v1342_v44 }
 0x104   : > { %2172 = vrot.lane.b32.xlu0 %v3986_v58, %s3642_s19  ;;  %2096 = vrot.lane.b32.xlu2 %v3955_v42, %s3625_s22 }
 0x105   : > { %v4089_v42 = vld.sshfl [vmem:[#allocation1 + $0x10] sm:$0xff pattern:$0x73625140]  ;;  %v4091_v52 = vld.sshfl [vmem:[#allocation1 + $0x18] sm:$0xff pattern:$0x73625140] }
 0x106   : > { %v1400_v45 = vpop.permute.xlu0 %1399  ;;  %2243 = vrot.lane.b32.xlu1 %v4006_v10, %s3643_s23  ;;  %v1479_v49 = vpop.permute.xlu2 %1478  ;;  %v4095_v56 = vld.sshfl [vmem:[#allocation1] sm:$0xff pattern:$0x73625140]  ;;  %v4097_v57 = vld.sshfl [vmem:[#allocation1 + $0x8] sm:$0xff pattern:$0x73625140] }
 0x107   : > { %v1406_v46 = vsel %vm1405_vm13, %v1398_v24, %v1400_v45  ;;  %2542 = vst [vmem:[#allocation1] ss:$4 sm:$0xff] %v3747_v0 }
 0x108   : > { %3456 = vmatmul.msk.bf16.vlgmr.msrb.gmra.mxu0 %vm496_vm1, %v3454_v13  ;;  %3457 = vmatmul.msk.bf16.vlgmr.msrb.gmra.mxu1 %vm496_vm1, %v3454_v13  ;;  %v1402_v47 = vpop.permute.xlu1 %1401  ;;  %v1413_v48 = vsel %vm500_vm0, %v1406_v46, 0 }
 0x109   : > { %v1407_v50 = vsel %vm1405_vm13, %v1400_v45, %v1402_v47  ;;  %v1408_v51 = vsel %vm1405_vm13, %v1402_v47, %v1404_v35  ;;  %1428 = vmatpush.bf16.msrb.mxu0 %v1413_v48  ;;  %v3465_v35 = vld [vmem:[%s4645_s4 + $0xc] sm:$0xf]  ;;  %vm2559_vm13 = vcmask 293888  }
 0x10a   : > { %3458 = vmatmul.msk.bf16.vlgmr.msrb.gmra.mxu2 %vm496_vm1, %v4069_v37  ;;  %v1416_v53 = vsel %vm500_vm0, %v1407_v50, 0  ;;  %v1419_v54 = vsel %vm500_vm0, %v1408_v51, 0 }
 0x10b   : > { %1441 = vmatpush.bf16.msrb.mxu1 %v1416_v53  ;;  %1454 = vmatpush.bf16.msrb.mxu2 %v1419_v54 }
 0x10c   : > { %2247 = vrot.lane.b32.xlu0 %v4000_v5, %s3643_s23  ;;  %2170 = vrot.lane.b32.xlu2 %v3981_v55, %s3642_s19  ;;  %s3653_s19 = smov 14  }
 0x10e   : > { %v1475_v58 = vpop.permute.xlu0 %1474  ;;  %2249 = vrot.lane.b32.xlu1 %v4002_v1, %s3643_s23  ;;  %v1554_v61 = vpop.permute.xlu2 %1553  ;;  %v4113_v2 = vld.sshfl [vmem:[#allocation1 + $0x8] sm:$0xff pattern:$0x73625140]  ;;  %v4115_v3 = vld.sshfl [vmem:[#allocation1 + $0x10] sm:$0xff pattern:$0x73625140] }
 0x10f   : > { %v4119_v4 = vld.sshfl [vmem:[#allocation1 + $0x18] sm:$0xff pattern:$0x73625140]  ;;  %v4121_v5 = vld.sshfl [vmem:[#allocation1] sm:$0xff pattern:$0x73625140] }
 0x110   : > { %v1477_v60 = vpop.permute.xlu1 %1476  ;;  %2619 = vst [vmem:[#allocation1] ss:$4 sm:$0xff] %v3747_v0 }
 0x111   : > { %v1483_v62 = vsel %vm1482_vm14, %v1475_v58, %v1477_v60  ;;  %v1484_v55 = vsel %vm1482_vm14, %v1477_v60, %v1479_v49 }
 0x112   : > { %3464 = vmatmul.msk.bf16.vlgmr.msra.gmra.mxu3 %vm496_vm1, %v3461_v59  ;;  %v1490_v63 = vsel %vm500_vm0, %v1483_v62, 0  ;;  %v1493_v12 = vsel %vm500_vm0, %v1484_v55, 0 }
 0x113   : > { %1505 = vmatpush.bf16.msrb.mxu3 %v1490_v63  ;;  %v4202_v63 = vld [vmem:[%s4645_s4 + $0x14] sm:$0xf] }
 0x114   : > { %2322 = vrot.lane.b32.xlu0 %v4025_v18, %s3644_s25  ;;  %2245 = vrot.lane.b32.xlu2 %v4008_v11, %s3643_s23  ;;  %s3654_s23 = smov 13  }
 0x115   : > { %v519_v1 = vpop.f32.mrf.mxu0  ;;  %v532_v8 = vpop.f32.mrf.mxu1 }
 0x116   : > { %v1481_v9 = vpop.permute.xlu0 %1480  ;;  %v4127_v10 = vadd.f32 %v4047_v28, %v519_v1  ;;  %2324 = vrot.lane.b32.xlu1 %v4027_v19, %s3644_s25  ;;  %v1629_v7 = vpop.permute.xlu2 %1628 }
 0x117   : > { %v1485_v6 = vsel %vm1482_vm14, %v1479_v49, %v1481_v9  ;;  %v4142_v14 = vld.sshfl [vmem:[#allocation1 + $0x8] sm:$0xff pattern:$0x73625140]  ;;  %v4146_v22 = vld.sshfl [vmem:[#allocation1 + $0x10] sm:$0xff pattern:$0x73625140] }
 0x118   : > { %3460 = vmatmul.msk.bf16.vlgmr.msra.gmra.mxu0 %vm496_vm1, %v4069_v37  ;;  %3462 = vmatmul.msk.bf16.vlgmr.msra.gmra.mxu1 %vm496_vm1, %v3461_v59  ;;  %v1496_v11 = vsel %vm500_vm0, %v1485_v6, 0  ;;  %v1552_v13 = vpop.permute.xlu1 %1551  ;;  %v4148_v24 = vld.sshfl [vmem:[#allocation1] sm:$0xff pattern:$0x73625140]  ;;  %vm2713_vm14 = vcmask 138240  }
 0x119   : > { %v1560_v15 = vsel %vm1559_vm15, %v1552_v13, %v1554_v61  ;;  %1518 = vmatpush.bf16.msra.mxu0 %v1493_v12  ;;  %1531 = vmatpush.bf16.msra.mxu1 %v1496_v11  ;;  %v4152_v25 = vld.sshfl [vmem:[#allocation1 + $0x18] sm:$0xff pattern:$0x73625140] }
 0x11a   : > { %3463 = vmatmul.msk.bf16.vlgmr.msra.gmra.mxu2 %vm496_vm1, %v3461_v59  ;;  %v1567_v16 = vsel %vm500_vm0, %v1560_v15, 0  ;;  %2696 = vst [vmem:[#allocation1] ss:$4 sm:$0xff] %v3747_v0 }
 0x11b   : > { %1582 = vmatpush.bf16.msra.mxu2 %v1567_v16 }
 0x11c   : > { %2397 = vrot.lane.b32.xlu0 %v4060_v34, %s3645_s26  ;;  %2320 = vrot.lane.b32.xlu2 %v4033_v21, %s3644_s25 }
 0x11d   : > { %v545_v17 = vpop.f32.mrf.mxu2  ;;  %v521_v18 = vpop.f32.mrf.mxu0 }
 0x11e   : > { %v534_v19 = vpop.f32.mrf.mxu1  ;;  %v1556_v23 = vpop.permute.xlu0 %1555  ;;  %2399 = vrot.lane.b32.xlu1 %v4054_v31, %s3645_s26 }
 0x11f   : > { %v1561_v27 = vsel %vm1559_vm15, %v1554_v61, %v1556_v23  ;;  %v1635_v29 = vpop.permute.xlu2 %1634 }
 0x120   : > { %v1570_v21 = vsel %vm500_vm0, %v1561_v27, 0  ;;  %v1558_v28 = vpop.permute.xlu1 %1557 }
 0x121   : > { %1595 = vmatpush.bf16.msra.mxu3 %v1570_v21  ;;  %v1562_v30 = vsel %vm1559_vm15, %v1556_v23, %v1558_v28  ;;  %v4173_v43 = vld.sshfl [vmem:[#allocation1] sm:$0xff pattern:$0x73625140]  ;;  %v4179_v44 = vld.sshfl [vmem:[#allocation1 + $0x18] sm:$0xff pattern:$0x73625140] }
 0x122   : > { %3470 = vmatmul.msk.bf16.vlgmr.msrb.gmra.mxu3 %vm496_vm1, %v4157_v26  ;;  %v1573_v41 = vsel %vm500_vm0, %v1562_v30, 0  ;;  %v4187_v50 = vld.sshfl [vmem:[#allocation1 + $0x10] sm:$0xff pattern:$0x73625140]  ;;  %vm2636_vm15 = vcmask 285696  }
 0x124   : > { %2403 = vrot.lane.b32.xlu0 %v4064_v36, %s3645_s26  ;;  %2326 = vrot.lane.b32.xlu2 %v4031_v20, %s3644_s25  ;;  %v4177_v36 = vld.sshfl [vmem:[#allocation1 + $0x8] sm:$0xff pattern:$0x73625140] }
 0x125   : > { %v547_v31 = vpop.f32.mrf.mxu2  ;;  %v584_v33 = vpop.f32.mrf.mxu0  ;;  %2773 = vst [vmem:[#allocation1] ss:$4 sm:$0xff] %v3747_v0 }
 0x126   : > { %v597_v34 = vpop.f32.mrf.mxu1  ;;  %v1631_v37 = vpop.permute.xlu0 %1630  ;;  %v585_v38 = vadd.f32 %v584_v33, %v532_v8  ;;  %2474 = vrot.lane.b32.xlu1 %v4095_v56, %s3646_s17 }
 0x127   : > { %v598_v39 = vadd.f32 %v597_v34, %v545_v17  ;;  %v658_v40 = vpop.f32.mrf.mxu3  ;;  %v1637_v20 = vsel %vm1636_vm2, %v1629_v7, %v1631_v37  ;;  %v1710_v54 = vpop.permute.xlu2 %1709 }
 0x128   : > { %v4181_v45 = vadd.f32 %v658_v40, %v585_v38  ;;  %3466 = vmatmul.msk.bf16.vlgmr.msrb.gmra.mxu0 %vm496_vm1, %v3465_v35  ;;  %3467 = vmatmul.msk.bf16.vlgmr.msrb.gmra.mxu1 %vm496_vm1, %v3465_v35  ;;  %v1644_v46 = vsel %vm500_vm0, %v1637_v20, 0  ;;  %v1633_v47 = vpop.permute.xlu1 %1632 }
 0x129   : > { %v1638_v48 = vsel %vm1636_vm2, %v1631_v37, %v1633_v47  ;;  %v1639_v49 = vsel %vm1636_vm2, %v1633_v47, %v1635_v29  ;;  %1608 = vmatpush.bf16.msrb.mxu0 %v1573_v41  ;;  %1659 = vmatpush.bf16.msrb.mxu1 %v1644_v46  ;;  %vm2790_vm2 = vcmask 130048  }
 0x12a   : > { %3468 = vmatmul.msk.bf16.vlgmr.msrb.gmra.mxu2 %vm496_vm1, %v3465_v35  ;;  %v1647_v51 = vsel %vm500_vm0, %v1638_v48, 0  ;;  %v1650_v53 = vsel %vm500_vm0, %v1639_v49, 0 }
 0x12b   : > { %1685 = vmatpush.bf16.msrb.mxu3 %v1650_v53  ;;  %1672 = vmatpush.bf16.msrb.mxu2 %v1647_v51 }
 0x12c   : > { %2478 = vrot.lane.b32.xlu0 %v4089_v42, %s3646_s17  ;;  %2401 = vrot.lane.b32.xlu2 %v4058_v32, %s3645_s26  ;;  %v4204_v55 = vld.sshfl [vmem:[#allocation1] sm:$0xff pattern:$0x73625140]  ;;  %v4206_v1 = vld.sshfl [vmem:[#allocation1 + $0x10] sm:$0xff pattern:$0x73625140] }
 0x12d   : > { %v645_v56 = vpop.f32.mrf.mxu2  ;;  %v586_v59 = vpop.f32.mrf.mxu0  ;;  %v4210_v32 = vld.sshfl [vmem:[#allocation1 + $0x18] sm:$0xff pattern:$0x73625140]  ;;  %v4213_v9 = vld.sshfl [vmem:[#allocation1 + $0x8] sm:$0xff pattern:$0x73625140] }
 0x12e   : > { %v675_v58 = vadd.f32 %v645_v56, %v4127_v10  ;;  %v599_v60 = vpop.f32.mrf.mxu1  ;;  %v1706_v61 = vpop.permute.xlu0 %1705  ;;  %2480 = vrot.lane.b32.xlu1 %v4091_v52, %s3646_s17  ;;  %2850 = vst [vmem:[#allocation1] ss:$4 sm:$0xff] %v3747_v0 }
 0x12f   : > { %v660_v62 = vpop.f32.mrf.mxu3  ;;  %v1785_v12 = vpop.permute.xlu2 %1784 }
 0x130   : > { %v1708_v42 = vpop.permute.xlu1 %1707 }
 0x131   : > { %v1714_v8 = vsel %vm1713_vm3, %v1706_v61, %v1708_v42  ;;  %v1715_v10 = vsel %vm1713_vm3, %v1708_v42, %v1710_v54 }
 0x132   : > { %3475 = vmatmul.msk.bf16.vlgmr.msra.gmra.mxu3 %vm496_vm1, %v4202_v63  ;;  %v1721_v17 = vsel %vm500_vm0, %v1714_v8, 0  ;;  %v1724_v18 = vsel %vm500_vm0, %v1715_v10, 0 }
 0x134   : > { %2553 = vrot.lane.b32.xlu0 %v4113_v2, %s3647_s20  ;;  %2476 = vrot.lane.b32.xlu2 %v4097_v57, %s3646_s17  ;;  %s3566_s17 = smul.u32 24, %s4657_s30 }
 0x135   : > { %v647_v52 = vpop.f32.mrf.mxu2  ;;  %v671_v6 = vpop.f32.mrf.mxu0  ;;  %v4241_v28 = vld.sshfl [vmem:[#allocation1 + $0x10] sm:$0xff pattern:$0x73625140]  ;;  %v4246_v35 = vld.sshfl [vmem:[#allocation1] sm:$0xff pattern:$0x73625140] }
 0x136   : > { %v722_v11 = vpop.f32.mrf.mxu1  ;;  %v1712_v13 = vpop.permute.xlu0 %1711  ;;  %v677_v7 = vadd.f32 %v671_v6, %v598_v39  ;;  %2555 = vrot.lane.b32.xlu1 %v4115_v3, %s3647_s20  ;;  %v4248_v37 = vld.sshfl [vmem:[#allocation1 + $0x18] sm:$0xff pattern:$0x73625140] }
 0x137   : > { %v752_v15 = vadd.f32 %v722_v11, %v675_v58  ;;  %v748_v16 = vpop.f32.mrf.mxu3  ;;  %v1716_v2 = vsel %vm1713_vm3, %v1710_v54, %v1712_v13  ;;  %v1860_v38 = vpop.permute.xlu2 %1859  ;;  %vm2867_vm3 = vcmask 121856  }
 0x138   : > { %v4226_v19 = vadd.f32 %v748_v16, %v677_v7  ;;  %3471 = vmatmul.msk.bf16.vlgmr.msra.gmra.mxu0 %vm496_vm1, %v4157_v26  ;;  %3472 = vmatmul.msk.bf16.vlgmr.msra.gmra.mxu1 %vm496_vm1, %v4157_v26  ;;  %v1727_v57 = vsel %vm500_vm0, %v1716_v2, 0  ;;  %v1783_v23 = vpop.permute.xlu1 %1782  ;;  %v4239_v26 = vld.sshfl [vmem:[#allocation1 + $0x8] sm:$0xff pattern:$0x73625140] }
 0x139   : > { %v1791_v3 = vsel %vm1790_vm4, %v1783_v23, %v1785_v12  ;;  %1736 = vmatpush.bf16.msra.mxu0 %v1721_v17  ;;  %1749 = vmatpush.bf16.msra.mxu1 %v1724_v18  ;;  %2927 = vst [vmem:[#allocation1] ss:$4 sm:$0xff] %v3747_v0  ;;  %v3651_v23 = vmov 0  }
 0x13a   : > { %3474 = vmatmul.msk.bf16.vlgmr.msra.gmra.mxu2 %vm496_vm1, %v4202_v63  ;;  %v1798_v27 = vsel %vm500_vm0, %v1791_v3, 0  ;;  %3608 = vset.pattern.permute.xlu0 %v3651_v23 }
 0x13b   : > { %1762 = vmatpush.bf16.msra.mxu2 %v1727_v57  ;;  %1813 = vmatpush.bf16.msra.mxu3 %v1798_v27 }
 0x13c   : > { %2628 = vrot.lane.b32.xlu0 %v4148_v24, %s3648_s21  ;;  %2551 = vrot.lane.b32.xlu2 %v4121_v5, %s3647_s20  ;;  %v3477_v24 = vld [vmem:[%s4645_s4 + $0x18] sm:$0xf] }
 0x13d   : > { %v735_v21 = vpop.f32.mrf.mxu2  ;;  %v673_v30 = vpop.f32.mrf.mxu0  ;;  %3609 = vset.pattern.permute.xlu1 %v3651_v23 }
 0x13e   : > { %v753_v29 = vadd.f32 %v735_v21, %v4181_v45  ;;  %v724_v31 = vpop.f32.mrf.mxu1  ;;  %v1787_v33 = vpop.permute.xlu0 %1786  ;;  %2630 = vrot.lane.b32.xlu1 %v4142_v14, %s3648_s21 }
 0x13f   : > { %v750_v34 = vpop.f32.mrf.mxu3  ;;  %v1792_v39 = vsel %vm1790_vm4, %v1785_v12, %v1787_v33  ;;  %v1866_v60 = vpop.permute.xlu2 %1865 }
 0x140   : > { %v1789_v5 = vpop.permute.xlu1 %1788  ;;  %v1801_v49 = vsel %vm500_vm0, %v1792_v39, 0  ;;  %v4265_v53 = vld.sshfl [vmem:[#allocation1] sm:$0xff pattern:$0x73625140] }
 0x141   : > { %v1793_v40 = vsel %vm1790_vm4, %v1787_v33, %v1789_v5  ;;  %v4272_v54 = vld.sshfl [vmem:[#allocation1 + $0x18] sm:$0xff pattern:$0x73625140]  ;;  %v4282_v61 = vld.sshfl [vmem:[#allocation1 + $0x10] sm:$0xff pattern:$0x73625140] }
 0x142   : > { %3480 = vmatmul.msk.bf16.vlgmr.msrb.gmra.mxu3 %vm496_vm1, %v3477_v24  ;;  %v1804_v51 = vsel %vm500_vm0, %v1793_v40, 0  ;;  %v4330_v5 = vld [vmem:[%s4645_s4 + $0x24] sm:$0xf]  ;;  %vm2944_vm4 = vcmask 113664  }
 0x144   : > { %2634 = vrot.lane.b32.xlu0 %v4152_v25, %s3648_s21  ;;  %2557 = vrot.lane.b32.xlu2 %v4119_v4, %s3647_s20  ;;  %v4270_v4 = vld.sshfl [vmem:[#allocation1 + $0x8] sm:$0xff pattern:$0x73625140]  ;;  %s467_s20 = scalar_lea.vmem %s4655_s14, %s3566_s17 }
 0x145   : > { %v737_v41 = vpop.f32.mrf.mxu2  ;;  %v799_v14 = vpop.f32.mrf.mxu0  ;;  %3004 = vst [vmem:[#allocation1] ss:$4 sm:$0xff] %v3747_v0  ;;  %v4296_v0 = vld [vmem:[%s4645_s4 + $0x20] sm:$0xf] }
 0x146   : > { %v812_v20 = vpop.f32.mrf.mxu1  ;;  %v1862_v45 = vpop.permute.xlu0 %1861  ;;  %v829_v46 = vadd.f32 %v799_v14, %v752_v15  ;;  %2705 = vrot.lane.b32.xlu1 %v4173_v43, %s3649_s24  ;;  %v3481_v15 = vld [vmem:[%s4645_s4 + $0x1c] sm:$0xf] }
 0x147   : > { %v830_v47 = vadd.f32 %v812_v20, %v753_v29  ;;  %v876_v48 = vpop.f32.mrf.mxu3  ;;  %v1868_v25 = vsel %vm1867_vm6, %v1860_v38, %v1862_v45  ;;  %v1941_v6 = vpop.permute.xlu2 %1940 }
 0x148   : > { %v4274_v56 = vadd.f32 %v876_v48, %v829_v46  ;;  %3476 = vmatmul.msk.bf16.vlgmr.msrb.gmra.mxu0 %vm496_vm1, %v4202_v63  ;;  %3478 = vmatmul.msk.bf16.vlgmr.msrb.gmra.mxu1 %vm496_vm1, %v3477_v24  ;;  %v1864_v58 = vpop.permute.xlu1 %1863  ;;  %v1875_v59 = vsel %vm500_vm0, %v1868_v25, 0 }
 0x149   : > { %v1869_v43 = vsel %vm1867_vm6, %v1862_v45, %v1864_v58  ;;  %1826 = vmatpush.bf16.msrb.mxu0 %v1801_v49  ;;  %1839 = vmatpush.bf16.msrb.mxu1 %v1804_v51 }
 0x14a   : > { %3479 = vmatmul.msk.bf16.vlgmr.msrb.gmra.mxu2 %vm496_vm1, %v3477_v24  ;;  %v1878_v62 = vsel %vm500_vm0, %v1869_v43, 0 }
 0x14b   : > { %1890 = vmatpush.bf16.msrb.mxu2 %v1875_v59  ;;  %1903 = vmatpush.bf16.msrb.mxu3 %v1878_v62 }
 0x14c   : > { %2709 = vrot.lane.b32.xlu0 %v4187_v50, %s3649_s24  ;;  %2632 = vrot.lane.b32.xlu2 %v4146_v22, %s3648_s21  ;;  %v1870_v22 = vsel %vm1867_vm6, %v1864_v58, %v1866_v60  ;;  %vm3021_vm6 = vcmask 105472  }
 0x14d   : > { %v825_v63 = vpop.f32.mrf.mxu2  ;;  %v801_v8 = vpop.f32.mrf.mxu0 }
 0x14e   : > { %v831_v42 = vadd.f32 %v825_v63, %v4226_v19  ;;  %v814_v52 = vpop.f32.mrf.mxu1  ;;  %v1937_v10 = vpop.permute.xlu0 %1936  ;;  %2711 = vrot.lane.b32.xlu1 %v4179_v44, %s3649_s24  ;;  %v3493_v8 = vld [vmem:[%s4645_s4 + $0x28] sm:$0xf] }
 0x14f   : > { %v878_v12 = vpop.f32.mrf.mxu3  ;;  %v2016_v29 = vpop.permute.xlu2 %2015 }
 0x150   : > { %v1939_v50 = vpop.permute.xlu1 %1938 }
 0x151   : > { %v1945_v44 = vsel %vm1944_vm7, %v1937_v10, %v1939_v50  ;;  %v1946_v16 = vsel %vm1944_vm7, %v1939_v50, %v1941_v6 }
 0x152   : > { %3486 = vmatmul.msk.bf16.vlgmr.msra.gmra.mxu3 %vm496_vm1, %v4296_v0  ;;  %v1955_v21 = vsel %vm500_vm0, %v1946_v16, 0 }
 0x154   : > { %2784 = vrot.lane.b32.xlu0 %v4213_v9, %s3650_s27  ;;  %2707 = vrot.lane.b32.xlu2 %v4177_v36, %s3649_s24  ;;  %v1881_v9 = vsel %vm500_vm0, %v1870_v22, 0  ;;  %v1952_v36 = vsel %vm500_vm0, %v1945_v44, 0 }
 0x155   : > { %v827_v11 = vpop.f32.mrf.mxu2  ;;  %v889_v13 = vpop.f32.mrf.mxu0 }
 0x156   : > { %v902_v7 = vpop.f32.mrf.mxu1  ;;  %v1943_v17 = vpop.permute.xlu0 %1942  ;;  %v907_v2 = vadd.f32 %v889_v13, %v830_v47  ;;  %2786 = vrot.lane.b32.xlu1 %v4206_v1, %s3650_s27 }
 0x157   : > { %v908_v18 = vadd.f32 %v902_v7, %v831_v42  ;;  %v969_v19 = vpop.f32.mrf.mxu3  ;;  %v1947_v57 = vsel %vm1944_vm7, %v1941_v6, %v1943_v17 }
 0x158   : > { %v987_v3 = vadd.f32 %v969_v19, %v907_v2  ;;  %3482 = vmatmul.msk.bf16.vlgmr.msra.gmra.mxu0 %vm496_vm1, %v3481_v15  ;;  %3483 = vmatmul.msk.bf16.vlgmr.msra.gmra.mxu1 %vm496_vm1, %v3481_v15  ;;  %v1958_v27 = vsel %vm500_vm0, %v1947_v57, 0  ;;  %v2014_v30 = vpop.permute.xlu1 %2013 }
 0x159   : > { %1916 = vmatpush.bf16.msra.mxu0 %v1881_v9  ;;  %1993 = vmatpush.bf16.msra.mxu3 %v1958_v27  ;;  %v2022_v41 = vsel %vm2021_vm8, %v2014_v30, %v2016_v29  ;;  %v4388_v27 = vld [vmem:[%s4645_s4 + $0x30] sm:$0xf] }
 0x15a   : > { %3484 = vmatmul.msk.bf16.vlgmr.msra.gmra.mxu2 %vm496_vm1, %v3481_v15  ;;  %1967 = vmatpush.bf16.msra.mxu1 %v1952_v36 }
 0x15b   : > { %1980 = vmatpush.bf16.msra.mxu2 %v1955_v21 }
 0x15c   : > { %2859 = vrot.lane.b32.xlu0 %v4246_v35, %s3652_s16  ;;  %2782 = vrot.lane.b32.xlu2 %v4204_v55, %s3650_s27  ;;  %v2091_v35 = vpop.permute.xlu2 %2090 }
 0x15d   : > { %v956_v1 = vpop.f32.mrf.mxu2  ;;  %v891_v33 = vpop.f32.mrf.mxu0 }
 0x15e   : > { %v986_v31 = vadd.f32 %v956_v1, %v4274_v56  ;;  %v904_v34 = vpop.f32.mrf.mxu1  ;;  %v2018_v24 = vpop.permute.xlu0 %2017  ;;  %2861 = vrot.lane.b32.xlu1 %v4239_v26, %s3652_s16 }
 0x15f   : > { %v971_v38 = vpop.f32.mrf.mxu3  ;;  %v2023_v40 = vsel %vm2021_vm8, %v2016_v29, %v2018_v24 }
 0x160   : > { %v2020_v39 = vpop.permute.xlu1 %2019  ;;  %v2032_v49 = vsel %vm500_vm0, %v2023_v40, 0 }
 0x161   : > { %v2024_v20 = vsel %vm2021_vm8, %v2018_v24, %v2020_v39  ;;  %v3497_v39 = vld [vmem:[%s4645_s4 + $0x2c] sm:$0xf] }
 0x162   : > { %3491 = vmatmul.msk.bf16.vlgmr.msrb.gmra.mxu3 %vm496_vm1, %v4330_v5 }
 0x164   : > { %2865 = vrot.lane.b32.xlu0 %v4248_v37, %s3652_s16  ;;  %2788 = vrot.lane.b32.xlu2 %v4210_v32, %s3650_s27  ;;  %v2029_v37 = vsel %vm500_vm0, %v2022_v41, 0  ;;  %v2035_v32 = vsel %vm500_vm0, %v2024_v20, 0  ;;  %v2097_v59 = vpop.permute.xlu2 %2096 }
 0x165   : > { %v958_v55 = vpop.f32.mrf.mxu2  ;;  %v982_v26 = vpop.f32.mrf.mxu0 }
 0x166   : > { %v1035_v14 = vpop.f32.mrf.mxu1  ;;  %v2093_v45 = vpop.permute.xlu0 %2092  ;;  %v988_v46 = vadd.f32 %v982_v26, %v908_v18  ;;  %2936 = vrot.lane.b32.xlu1 %v4265_v53, %s3653_s19  ;;  %v1147_v18 = vld [vmem:[%s4644_s3] sm:$0xff] }
 0x167   : > { %v1065_v47 = vadd.f32 %v1035_v14, %v986_v31  ;;  %v1061_v48 = vpop.f32.mrf.mxu3  ;;  %v2098_v51 = vsel %vm774_vm5, %v2091_v35, %v2093_v45 }
 0x168   : > { %v1067_v25 = vadd.f32 %v1061_v48, %v988_v46  ;;  %3487 = vmatmul.msk.bf16.vlgmr.msrb.gmra.mxu0 %vm496_vm1, %v4296_v0  ;;  %3488 = vmatmul.msk.bf16.vlgmr.msrb.gmra.mxu1 %vm496_vm1, %v4296_v0  ;;  %v2105_v56 = vsel %vm500_vm0, %v2098_v51, 0  ;;  %v2095_v58 = vpop.permute.xlu1 %2094 }
 0x169   : > { %2120 = vmatpush.bf16.msrb.mxu3 %v2105_v56  ;;  %2044 = vmatpush.bf16.msrb.mxu0 %v2029_v37  ;;  %v2099_v0 = vsel %vm774_vm5, %v2093_v45, %v2095_v58  ;;  %v2100_v6 = vsel %vm774_vm5, %v2095_v58, %v2097_v59  ;;  %vm2251_vm5 = vcmask 465920   ;;  %v3009_v37 = vld.sshfl [vmem:[#allocation1 + $0x10] sm:$0xff pattern:$0x73625140] }
 0x16a   : > { %3490 = vmatmul.msk.bf16.vlgmr.msrb.gmra.mxu2 %vm496_vm1, %v4330_v5  ;;  %2057 = vmatpush.bf16.msrb.mxu1 %v2032_v49  ;;  %v2108_v16 = vsel %vm500_vm0, %v2099_v0, 0  ;;  %v2111_v17 = vsel %vm500_vm0, %v2100_v6, 0  ;;  %v3005_v0 = vld.sshfl [vmem:[#allocation1] sm:$0xff pattern:$0x73625140] }
 0x16b   : > { %2070 = vmatpush.bf16.msrb.mxu2 %v2035_v32  ;;  %v3505_v32 = vld [vmem:[%s4645_s4 + $0x34] sm:$0xf] }
 0x16c   : > { %2940 = vrot.lane.b32.xlu0 %v4282_v61, %s3653_s19  ;;  %2863 = vrot.lane.b32.xlu2 %v4241_v28, %s3652_s16  ;;  %v2171_v52 = vpop.permute.xlu2 %2170  ;;  %v3007_v61 = vld.sshfl [vmem:[#allocation1 + $0x8] sm:$0xff pattern:$0x73625140] }
 0x16d   : > { %v1048_v53 = vpop.f32.mrf.mxu2  ;;  %v984_v43 = vpop.f32.mrf.mxu0 }
 0x16e   : > { %v1066_v60 = vadd.f32 %v1048_v53, %v987_v3  ;;  %v1037_v62 = vpop.f32.mrf.mxu1  ;;  %v2167_v63 = vpop.permute.xlu0 %2166  ;;  %2942 = vrot.lane.b32.xlu1 %v4272_v54, %s3653_s19 }
 0x16f   : > { %v1063_v42 = vpop.f32.mrf.mxu3 }
 0x170   : > { %v2169_v10 = vpop.permute.xlu1 %2168 }
 0x171   : > { %v2176_v12 = vsel %vm2174_vm9, %v2169_v10, %v2171_v52  ;;  %v2175_v50 = vsel %vm2174_vm9, %v2167_v63, %v2169_v10 }
 0x172   : > { %3496 = vmatmul.msk.bf16.vlgmr.msra.gmra.mxu3 %vm496_vm1, %v3493_v8  ;;  %v2185_v28 = vsel %vm500_vm0, %v2176_v12, 0  ;;  %v2182_v2 = vsel %vm500_vm0, %v2175_v50, 0 }
 0x173   : > { %2210 = vmatpush.bf16.msra.mxu3 %v2185_v28 }
 0x174   : > { %3015 = vrot.lane.b32.xlu0 %v3007_v61, %s3654_s23  ;;  %2938 = vrot.lane.b32.xlu2 %v4270_v4, %s3653_s19  ;;  %v2246_v21 = vpop.permute.xlu2 %2245 }
 0x175   : > { %v1050_v54 = vpop.f32.mrf.mxu2  ;;  %v1114_v22 = vpop.f32.mrf.mxu0 }
 0x176   : > { %v1127_v11 = vpop.f32.mrf.mxu1  ;;  %v2173_v44 = vpop.permute.xlu0 %2172  ;;  %v4369_v13 = vadd.f32 %v1114_v22, %v1065_v47  ;;  %3017 = vrot.lane.b32.xlu1 %v3009_v37, %s3654_s23 }
 0x177   : > { %v4371_v7 = vadd.f32 %v1127_v11, %v1066_v60  ;;  %v1207_v15 = vpop.f32.mrf.mxu3  ;;  %v2177_v31 = vsel %vm2174_vm9, %v2171_v52, %v2173_v44 }
 0x178   : > { %3492 = vmatmul.msk.bf16.vlgmr.msra.gmra.mxu0 %vm496_vm1, %v4330_v5  ;;  %3494 = vmatmul.msk.bf16.vlgmr.msra.gmra.mxu1 %vm496_vm1, %v3493_v8  ;;  %v2244_v4 = vpop.permute.xlu1 %2243  ;;  %v2188_v40 = vsel %vm500_vm0, %v2177_v31, 0 }
 0x179   : > { %2133 = vmatpush.bf16.msra.mxu0 %v2108_v16  ;;  %2146 = vmatpush.bf16.msra.mxu1 %v2111_v17  ;;  %v2252_v34 = vsel %vm2251_vm5, %v2244_v4, %v2246_v21  ;;  %v3509_v4 = vld [vmem:[%s4645_s4 + $0x38] sm:$0xf] }
 0x17a   : > { %3495 = vmatmul.msk.bf16.vlgmr.msra.gmra.mxu2 %vm496_vm1, %v3493_v8  ;;  %v2259_v26 = vsel %vm500_vm0, %v2252_v34, 0 }
 0x17b   : > { %2197 = vmatpush.bf16.msra.mxu2 %v2182_v2 }
 0x17c   : > { %1150 = vperm.xlu0 %3608, %v1147_v18   ;;  %v2321_v20 = vpop.permute.xlu2 %2320  ;;  %3013 = vrot.lane.b32.xlu2 %v3005_v0, %s3654_s23 }
 0x17d   : > { %v1140_v19 = vpop.f32.mrf.mxu2  ;;  %v1116_v57 = vpop.f32.mrf.mxu0 }
 0x17e   : > { %v4383_v9 = vadd.f32 %v1140_v19, %v1067_v25  ;;  %v1129_v36 = vpop.f32.mrf.mxu1  ;;  %v2248_v23 = vpop.permute.xlu0 %2247 }
 0x17f   : > { %v1209_v3 = vpop.f32.mrf.mxu3  ;;  %v2253_v24 = vsel %vm2251_vm5, %v2246_v21, %v2248_v23 }
 0x180   : > { %v2250_v29 = vpop.permute.xlu1 %2249  ;;  %v2262_v14 = vsel %vm500_vm0, %v2253_v24, 0 }
 0x181   : > { %v2254_v30 = vsel %vm2251_vm5, %v2248_v23, %v2250_v29  ;;  %vm3242_vm5 = vcmask 1043456  }
 0x182   : > { %3502 = vmatmul.msk.bf16.vlgmr.msrb.gmra.mxu3 %vm496_vm1, %v4388_v27  ;;  %v2265_v1 = vsel %vm500_vm0, %v2254_v30, 0 }
 0x183   : > { %2300 = vmatpush.bf16.msrb.mxu3 %v2265_v1 }
 0x184   : > { %v2327_v56 = vpop.permute.xlu2 %2326 }
 0x185   : > { %v1142_v33 = vpop.f32.mrf.mxu2  ;;  %v1220_v38 = vpop.f32.mrf.mxu0 }
 0x186   : > { %v1233_v5 = vpop.f32.mrf.mxu1  ;;  %v2323_v35 = vpop.permute.xlu0 %2322 }
 0x187   : > { %v1292_v55 = vpop.f32.mrf.mxu3  ;;  %v2329_v60 = vsel %vm2328_vm11, %v2321_v20, %v2323_v35 }
 0x188   : > { %v1293_v41 = vadd.f32 %v1292_v55, %v1220_v38  ;;  %3498 = vmatmul.msk.bf16.vlgmr.msrb.gmra.mxu0 %vm496_vm1, %v3497_v39  ;;  %3499 = vmatmul.msk.bf16.vlgmr.msrb.gmra.mxu1 %vm496_vm1, %v3497_v39  ;;  %v2325_v45 = vpop.permute.xlu1 %2324  ;;  %v2336_v28 = vsel %vm500_vm0, %v2329_v60, 0  ;;  %v3513_v60 = vld [vmem:[%s4645_s4 + $0x3c] sm:$0xf] }
 0x189   : > { %2223 = vmatpush.bf16.msrb.mxu0 %v2188_v40  ;;  %2274 = vmatpush.bf16.msrb.mxu1 %v2259_v26  ;;  %v2330_v62 = vsel %vm2328_vm11, %v2323_v35, %v2325_v45  ;;  %v2331_v63 = vsel %vm2328_vm11, %v2325_v45, %v2327_v56  ;;  %v3011_v40 = vld.sshfl [vmem:[#allocation1 + $0x18] sm:$0xff pattern:$0x73625140] }
 0x18a   : > { %3500 = vmatmul.msk.bf16.vlgmr.msrb.gmra.mxu2 %vm496_vm1, %v3497_v39  ;;  %v2339_v54 = vsel %vm500_vm0, %v2330_v62, 0  ;;  %v2342_v6 = vsel %vm500_vm0, %v2331_v63, 0  ;;  %3019 = vrot.lane.b32.xlu2 %v3011_v40, %s3654_s23  ;;  %v3525_v40 = vld [vmem:[%s4645_s4 + $0x48] sm:$0xf] }
 0x18b   : > { %2287 = vmatpush.bf16.msrb.mxu2 %v2262_v14 }
 0x18c   : > { %v2402_v50 = vpop.permute.xlu2 %2401 }
 0x18d   : > { %v1279_v46 = vpop.f32.mrf.mxu2  ;;  %v1222_v48 = vpop.f32.mrf.mxu0 }
 0x18e   : > { %v1280_v47 = vadd.f32 %v1279_v46, %v1207_v15  ;;  %v1235_v49 = vpop.f32.mrf.mxu1  ;;  %v2398_v51 = vpop.permute.xlu0 %2397 }
 0x18f   : > { %v1294_v25 = vpop.f32.mrf.mxu3 }
 0x190   : > { %v2400_v58 = vpop.permute.xlu1 %2399 }
 0x191   : > { %v2406_v59 = vsel %vm2405_vm10, %v2398_v51, %v2400_v58  ;;  %v2407_v23 = vsel %vm2405_vm10, %v2400_v58, %v2402_v50 }
 0x192   : > { %3507 = vmatmul.msk.bf16.vlgmr.msra.gmra.mxu3 %vm496_vm1, %v3505_v32  ;;  %v2413_v53 = vsel %vm500_vm0, %v2406_v59, 0  ;;  %v2416_v24 = vsel %vm500_vm0, %v2407_v23, 0 }
 0x193   : > { %2428 = vmatpush.bf16.msra.mxu3 %v2413_v53 }
 0x194   : > { %v2477_v18 = vpop.permute.xlu2 %2476 }
 0x195   : > { %v1281_v43 = vpop.f32.mrf.mxu2  ;;  %v1305_v42 = vpop.f32.mrf.mxu0 }
 0x196   : > { %v1353_v8 = vpop.f32.mrf.mxu1  ;;  %v2404_v52 = vpop.permute.xlu0 %2403  ;;  %v1306_v10 = vadd.f32 %v1305_v42, %v1233_v5 }
 0x197   : > { %v1383_v61 = vadd.f32 %v1353_v8, %v1280_v47  ;;  %v1379_v12 = vpop.f32.mrf.mxu3  ;;  %v3517_v47 = vld [vmem:[%s4645_s4 + $0x40] sm:$0xf] }
 0x198   : > { %v1385_v22 = vadd.f32 %v1379_v12, %v1306_v10  ;;  %3503 = vmatmul.msk.bf16.vlgmr.msra.gmra.mxu0 %vm496_vm1, %v4388_v27  ;;  %3504 = vmatmul.msk.bf16.vlgmr.msra.gmra.mxu1 %vm496_vm1, %v4388_v27  ;;  %v2475_v19 = vpop.permute.xlu1 %2474  ;;  %v2408_v27 = vsel %vm2405_vm10, %v2402_v50, %v2404_v52 }
 0x199   : > { %2351 = vmatpush.bf16.msra.mxu0 %v2336_v28  ;;  %2364 = vmatpush.bf16.msra.mxu1 %v2339_v54  ;;  %v2483_v21 = vsel %vm2482_vm12, %v2475_v19, %v2477_v18  ;;  %v2419_v38 = vsel %vm500_vm0, %v2408_v27, 0 }
 0x19a   : > { %3506 = vmatmul.msk.bf16.vlgmr.msra.gmra.mxu2 %vm496_vm1, %v3505_v32  ;;  %v2490_v5 = vsel %vm500_vm0, %v2483_v21, 0 }
 0x19b   : > { %2377 = vmatpush.bf16.msra.mxu2 %v2342_v6 }
 0x19c   : > { %v2552_v35 = vpop.permute.xlu2 %2551 }
 0x19d   : > { %v1366_v11 = vpop.f32.mrf.mxu2  ;;  %v1307_v15 = vpop.f32.mrf.mxu0 }
 0x19e   : > { %v1384_v44 = vadd.f32 %v1366_v11, %v1293_v41  ;;  %v1355_v16 = vpop.f32.mrf.mxu1  ;;  %v2479_v17 = vpop.permute.xlu0 %2478 }
 0x19f   : > { %v1381_v2 = vpop.f32.mrf.mxu3  ;;  %v2484_v57 = vsel %vm2482_vm12, %v2477_v18, %v2479_v17 }
 0x1a0   : > { %v2493_v36 = vsel %vm500_vm0, %v2484_v57, 0  ;;  %v2481_v39 = vpop.permute.xlu1 %2480 }
 0x1a1   : > { %v2485_v25 = vsel %vm2482_vm12, %v2479_v17, %v2481_v39 }
 0x1a2   : > { %3512 = vmatmul.msk.bf16.vlgmr.msrb.gmra.mxu3 %vm496_vm1, %v3509_v4  ;;  %v2496_v8 = vsel %vm500_vm0, %v2485_v25, 0 }
 0x1a3   : > { %2518 = vmatpush.bf16.msrb.mxu3 %v2493_v36 }
 0x1a4   : > { %v2558_v49 = vpop.permute.xlu2 %2557 }
 0x1a5   : > { %v1368_v3 = vpop.f32.mrf.mxu2  ;;  %v1430_v29 = vpop.f32.mrf.mxu0 }
 0x1a6   : > { %v1443_v30 = vpop.f32.mrf.mxu1  ;;  %v2554_v1 = vpop.permute.xlu0 %2553  ;;  %v1460_v31 = vadd.f32 %v1430_v29, %v1383_v61 }
 0x1a7   : > { %v1461_v33 = vadd.f32 %v1443_v30, %v1384_v44  ;;  %v1507_v34 = vpop.f32.mrf.mxu3  ;;  %v2560_v56 = vsel %vm2559_vm13, %v2552_v35, %v2554_v1  ;;  %v3521_v44 = vld [vmem:[%s4645_s4 + $0x44] sm:$0xf] }
 0x1a8   : > { %v1537_v55 = vadd.f32 %v1507_v34, %v1460_v31  ;;  %3508 = vmatmul.msk.bf16.vlgmr.msrb.gmra.mxu0 %vm496_vm1, %v3505_v32  ;;  %3510 = vmatmul.msk.bf16.vlgmr.msrb.gmra.mxu1 %vm496_vm1, %v3509_v4  ;;  %v2556_v48 = vpop.permute.xlu1 %2555  ;;  %v2567_v52 = vsel %vm500_vm0, %v2560_v56, 0 }
 0x1a9   : > { %2441 = vmatpush.bf16.msrb.mxu0 %v2416_v24  ;;  %2454 = vmatpush.bf16.msrb.mxu1 %v2419_v38  ;;  %v2562_v37 = vsel %vm2559_vm13, %v2556_v48, %v2558_v49  ;;  %v2561_v58 = vsel %vm2559_vm13, %v2554_v1, %v2556_v48 }
 0x1aa   : > { %3511 = vmatmul.msk.bf16.vlgmr.msrb.gmra.mxu2 %vm496_vm1, %v3509_v4  ;;  %v2573_v51 = vsel %vm500_vm0, %v2562_v37, 0  ;;  %v2570_v10 = vsel %vm500_vm0, %v2561_v58, 0 }
 0x1ab   : > { %2505 = vmatpush.bf16.msrb.mxu2 %v2490_v5 }
 0x1ac   : > { %v2633_v61 = vpop.permute.xlu2 %2632 }
 0x1ad   : > { %v1456_v41 = vpop.f32.mrf.mxu2  ;;  %v1432_v14 = vpop.f32.mrf.mxu0 }
 0x1ae   : > { %v1462_v26 = vadd.f32 %v1456_v41, %v1385_v22  ;;  %v1445_v20 = vpop.f32.mrf.mxu1  ;;  %v2629_v45 = vpop.permute.xlu0 %2628 }
 0x1af   : > { %v1509_v46 = vpop.f32.mrf.mxu3 }
 0x1b0   : > { %v2631_v12 = vpop.permute.xlu1 %2630 }
 0x1b1   : > { %v2637_v4 = vsel %vm2636_vm15, %v2629_v45, %v2631_v12  ;;  %v2638_v57 = vsel %vm2636_vm15, %v2631_v12, %v2633_v61 }
 0x1b2   : > { %3518 = vmatmul.msk.bf16.vlgmr.msra.gmra.mxu3 %vm496_vm1, %v3517_v47  ;;  %v2644_v30 = vsel %vm500_vm0, %v2637_v4, 0  ;;  %v2647_v31 = vsel %vm500_vm0, %v2638_v57, 0 }
 0x1b3   : > { %2608 = vmatpush.bf16.msra.mxu3 %v2573_v51 }
 0x1b4   : > { %v2708_v15 = vpop.permute.xlu2 %2707 }
 0x1b5   : > { %v1458_v32 = vpop.f32.mrf.mxu2  ;;  %v1520_v59 = vpop.f32.mrf.mxu0 }
 0x1b6   : > { %v1533_v53 = vpop.f32.mrf.mxu1  ;;  %v2635_v43 = vpop.permute.xlu0 %2634  ;;  %v1538_v62 = vadd.f32 %v1520_v59, %v1461_v33 }
 0x1b7   : > { %v1539_v63 = vadd.f32 %v1533_v53, %v1462_v26  ;;  %v1597_v42 = vpop.f32.mrf.mxu3  ;;  %v2639_v19 = vsel %vm2636_vm15, %v2633_v61, %v2635_v43  ;;  %v4484_v61 = vld [vmem:[%s4645_s4 + $0x50] sm:$0xf] }
 0x1b8   : > { %v1615_v28 = vadd.f32 %v1597_v42, %v1538_v62  ;;  %3514 = vmatmul.msk.bf16.vlgmr.msra.gmra.mxu0 %vm496_vm1, %v3513_v60  ;;  %3515 = vmatmul.msk.bf16.vlgmr.msra.gmra.mxu1 %vm496_vm1, %v3513_v60  ;;  %v2706_v16 = vpop.permute.xlu1 %2705  ;;  %v2650_v1 = vsel %vm500_vm0, %v2639_v19, 0 }
 0x1b9   : > { %2531 = vmatpush.bf16.msra.mxu0 %v2496_v8  ;;  %2582 = vmatpush.bf16.msra.mxu1 %v2567_v52  ;;  %v2714_v17 = vsel %vm2713_vm14, %v2706_v16, %v2708_v15  ;;  %v3529_v16 = vld [vmem:[%s4645_s4 + $0x4c] sm:$0xf] }
 0x1ba   : > { %3516 = vmatmul.msk.bf16.vlgmr.msra.gmra.mxu2 %vm496_vm1, %v3513_v60  ;;  %v2721_v2 = vsel %vm500_vm0, %v2714_v17, 0 }
 0x1bb   : > { %2595 = vmatpush.bf16.msra.mxu2 %v2570_v10 }
 0x1bc   : > { %v2783_v26 = vpop.permute.xlu2 %2782 }
 0x1bd   : > { %v1584_v0 = vpop.f32.mrf.mxu2  ;;  %v1522_v6 = vpop.f32.mrf.mxu0 }
 0x1be   : > { %v1614_v54 = vadd.f32 %v1584_v0, %v1537_v55  ;;  %v1535_v50 = vpop.f32.mrf.mxu1  ;;  %v2710_v22 = vpop.permute.xlu0 %2709 }
 0x1bf   : > { %v1599_v11 = vpop.f32.mrf.mxu3  ;;  %v2715_v14 = vsel %vm2713_vm14, %v2708_v15, %v2710_v22 }
 0x1c0   : > { %v2712_v34 = vpop.permute.xlu1 %2711  ;;  %v2724_v58 = vsel %vm500_vm0, %v2715_v14, 0 }
 0x1c1   : > { %v2716_v46 = vsel %vm2713_vm14, %v2710_v22, %v2712_v34 }
 0x1c2   : > { %3523 = vmatmul.msk.bf16.vlgmr.msrb.gmra.mxu3 %vm496_vm1, %v3521_v44  ;;  %v2727_v59 = vsel %vm500_vm0, %v2716_v46, 0 }
 0x1c3   : > { %2736 = vmatpush.bf16.msrb.mxu3 %v2721_v2 }
 0x1c4   : > { %v2789_v43 = vpop.permute.xlu2 %2788 }
 0x1c5   : > { %v1586_v18 = vpop.f32.mrf.mxu2  ;;  %v1610_v36 = vpop.f32.mrf.mxu0 }
 0x1c6   : > { %v1661_v23 = vpop.f32.mrf.mxu1  ;;  %v2785_v3 = vpop.permute.xlu0 %2784  ;;  %v1616_v27 = vadd.f32 %v1610_v36, %v1539_v63 }
 0x1c7   : > { %v1691_v21 = vadd.f32 %v1661_v23, %v1614_v54  ;;  %v1687_v29 = vpop.f32.mrf.mxu3  ;;  %v2791_v48 = vsel %vm2790_vm2, %v2783_v26, %v2785_v3 }
 0x1c8   : > { %v1693_v33 = vadd.f32 %v1687_v29, %v1616_v27  ;;  %3519 = vmatmul.msk.bf16.vlgmr.msrb.gmra.mxu0 %vm496_vm1, %v3517_v47  ;;  %3520 = vmatmul.msk.bf16.vlgmr.msrb.gmra.mxu1 %vm496_vm1, %v3517_v47  ;;  %v2787_v41 = vpop.permute.xlu1 %2786  ;;  %v2798_v53 = vsel %vm500_vm0, %v2791_v48, 0 }
 0x1c9   : > { %2659 = vmatpush.bf16.msrb.mxu0 %v2644_v30  ;;  %2672 = vmatpush.bf16.msrb.mxu1 %v2647_v31  ;;  %v2792_v20 = vsel %vm2790_vm2, %v2785_v3, %v2787_v41  ;;  %v2793_v0 = vsel %vm2790_vm2, %v2787_v41, %v2789_v43  ;;  %v4508_v30 = vld [vmem:[%s4642_s1] sm:$0x7] }
 0x1ca   : > { %3522 = vmatmul.msk.bf16.vlgmr.msrb.gmra.mxu2 %vm496_vm1, %v3521_v44  ;;  %v2801_v47 = vsel %vm500_vm0, %v2792_v20, 0  ;;  %v2804_v19 = vsel %vm500_vm0, %v2793_v0, 0 }
 0x1cb   : > { %2685 = vmatpush.bf16.msrb.mxu2 %v2650_v1 }
 0x1cd   : > { %v1674_v24 = vpop.f32.mrf.mxu2  ;;  %v1612_v5 = vpop.f32.mrf.mxu0 }
 0x1ce   : > { %v1692_v38 = vadd.f32 %v1674_v24, %v1615_v28  ;;  %v1663_v39 = vpop.f32.mrf.mxu1  ;;  %v2860_v35 = vpop.permute.xlu0 %2859  ;;  %v3096_v5 = vperm.slane %v4508_v30, 0 }
 0x1cf   : > { %v1689_v55 = vpop.f32.mrf.mxu3  ;;  %v2864_v28 = vpop.permute.xlu2 %2863  ;;  %v3097_v39 = vperm.slane %v4508_v30, 1 }
 0x1d0   : > { %v2862_v12 = vpop.permute.xlu1 %2861 }
 0x1d1   : > { %v2868_v22 = vsel %vm2867_vm3, %v2860_v35, %v2862_v12  ;;  %v2869_v11 = vsel %vm2867_vm3, %v2862_v12, %v2864_v28 }
 0x1d2   : > { %3528 = vmatmul.msk.bf16.vlgmr.msra.gmra.mxu3 %vm496_vm1, %v3525_v40  ;;  %v2875_v57 = vsel %vm500_vm0, %v2868_v22, 0  ;;  %v2878_v36 = vsel %vm500_vm0, %v2869_v11, 0 }
 0x1d3   : > { %2826 = vmatpush.bf16.msra.mxu3 %v2801_v47 }
 0x1d5   : > { %v1676_v45 = vpop.f32.mrf.mxu2  ;;  %v1738_v49 = vpop.f32.mrf.mxu0 }
 0x1d6   : > { %v1751_v37 = vpop.f32.mrf.mxu1  ;;  %v2866_v51 = vpop.permute.xlu0 %2865  ;;  %v1768_v25 = vadd.f32 %v1738_v49, %v1691_v21 }
 0x1d7   : > { %v1769_v32 = vadd.f32 %v1751_v37, %v1692_v38  ;;  %v1815_v56 = vpop.f32.mrf.mxu3  ;;  %v2870_v54 = vsel %vm2867_vm3, %v2864_v28, %v2866_v51  ;;  %v2939_v3 = vpop.permute.xlu2 %2938  ;;  %v4516_v38 = vld [vmem:[%s4645_s4 + $0x54] sm:$0xf] }
 0x1d8   : > { %v4474_v60 = vadd.f32 %v1815_v56, %v1768_v25  ;;  %3524 = vmatmul.msk.bf16.vlgmr.msra.gmra.mxu0 %vm496_vm1, %v3521_v44  ;;  %3526 = vmatmul.msk.bf16.vlgmr.msra.gmra.mxu1 %vm496_vm1, %v3525_v40  ;;  %v2881_v50 = vsel %vm500_vm0, %v2870_v54, 0  ;;  %v2937_v23 = vpop.permute.xlu1 %2936 }
 0x1d9   : > { %2749 = vmatpush.bf16.msra.mxu0 %v2724_v58  ;;  %2762 = vmatpush.bf16.msra.mxu1 %v2727_v59 }
 0x1da   : > { %3527 = vmatmul.msk.bf16.vlgmr.msra.gmra.mxu2 %vm496_vm1, %v3525_v40 }
 0x1db   : > { %2813 = vmatpush.bf16.msra.mxu2 %v2798_v53 }
 0x1dd   : > { %v1764_v62 = vpop.f32.mrf.mxu2  ;;  %v1740_v42 = vpop.f32.mrf.mxu0 }
 0x1de   : > { %v1770_v63 = vadd.f32 %v1764_v62, %v1693_v33  ;;  %v1753_v8 = vpop.f32.mrf.mxu1  ;;  %v4479_v52 = vpop.permute.xlu0 %2940 }
 0x1df   : > { %v1817_v10 = vpop.f32.mrf.mxu3  ;;  %v2946_v48 = vsel %vm2944_vm4, %v2939_v3, %v4479_v52 }
 0x1e0   : > { %v2943_v41 = vpop.permute.xlu1 %2942 }
 0x1e1   : > { %v2947_v37 = vsel %vm2944_vm4, %v4479_v52, %v2943_v41 }
 0x1e2   : > { %3534 = vmatmul.msk.bf16.vlgmr.msrb.gmra.mxu3 %vm496_vm1, %v4484_v61  ;;  %v2958_v42 = vsel %vm500_vm0, %v2947_v37, 0 }
 0x1e3   : > { %2916 = vmatpush.bf16.msrb.mxu3 %v2881_v50 }
 0x1e5   : > { %v1766_v6 = vpop.f32.mrf.mxu2  ;;  %v1828_v44 = vpop.f32.mrf.mxu0 }
 0x1e6   : > { %v1841_v15 = vpop.f32.mrf.mxu1  ;;  %v4493_v17 = vpop.permute.xlu0 %3015  ;;  %v4495_v2 = vadd.f32 %v1828_v44, %v1769_v32 }
 0x1e7   : > { %v1847_v4 = vadd.f32 %v1841_v15, %v1770_v63  ;;  %v4497_v18 = vpop.f32.mrf.mxu3  ;;  %v2955_v63 = vsel %vm500_vm0, %v2946_v48, 0 }
 0x1e8   : > { %3530 = vmatmul.msk.bf16.vlgmr.msrb.gmra.mxu0 %vm496_vm1, %v3529_v16  ;;  %3531 = vmatmul.msk.bf16.vlgmr.msrb.gmra.mxu1 %vm496_vm1, %v3529_v16  ;;  %v1923_v52 = vadd.f32 %v4497_v18, %v4495_v2  ;;  %v3018_v6 = vpop.permute.xlu1 %3017 }
 0x1e9   : > { %2839 = vmatpush.bf16.msrb.mxu0 %v2804_v19  ;;  %2890 = vmatpush.bf16.msrb.mxu1 %v2875_v57  ;;  %v3023_v50 = vsel %vm3021_vm6, %v4493_v17, %v3018_v6  ;;  %v3079_v19 = vld [vmem:[%s4646_s5] sm:$0xff] }
 0x1ea   : > { %3532 = vmatmul.msk.bf16.vlgmr.msrb.gmra.mxu2 %vm496_vm1, %v3529_v16  ;;  %3082 = vperm.xlu1 %3609, %v3079_v19  }
 0x1eb   : > { %2903 = vmatpush.bf16.msrb.mxu2 %v2878_v36 }
 0x1ed   : > { %v1892_v27 = vpop.f32.mrf.mxu2  ;;  %v1830_v21 = vpop.f32.mrf.mxu0 }
 0x1ee   : > { %v1843_v29 = vpop.f32.mrf.mxu1  ;;  %v1151_v1 = vpop.permute.xlu0 %1150  ;;  %v1922_v46 = vadd.f32 %v1892_v27, %v4474_v60 }
 0x1ef   : > { %v1907_v31 = vpop.f32.mrf.mxu3  ;;  %v1153_v33 = vadd.f32 %v1151_v1, %v4369_v13  ;;  %v1154_v34 = vadd.f32 %v1151_v1, %v4371_v7  ;;  %v1155_v24 = vadd.f32 %v1151_v1, %v4383_v9  ;;  %v3098_v13 = vperm.slane %v4508_v30, 2  ;;  %v3014_v9 = vpop.permute.xlu2 %3013  ;;  %v3549_v1 = vld [vmem:[%s4645_s4 + $0x60] sm:$0xf] }
 0x1f0   : > { %v2945_v7 = vsel %vm2944_vm4, %v2937_v23, %v2939_v3  ;;  %v3022_v45 = vsel %vm3021_vm6, %v3014_v9, %v4493_v17 }
 0x1f1   : > { %v1156_v35 = vmul.f32 0.01, %v1153_v33  ;;  %v1157_v55 = vmul.f32 0.01, %v1154_v34  ;;  %v1158_v40 = vmul.f32 0.01, %v1155_v24 }
 0x1f2   : > { %3539 = vmatmul.msk.bf16.vlgmr.msra.gmra.mxu3 %vm496_vm1, %v4516_v38  ;;  %v3029_v49 = vsel %vm500_vm0, %v3022_v45, 0  ;;  %v2952_v60 = vsel %vm500_vm0, %v2945_v7, 0 }
 0x1f3   : > { %v4524_v26 = vmax.f32 %v1153_v33, %v1156_v35  ;;  %v4526_v14 = vmax.f32 %v1154_v34, %v1157_v55  ;;  %v4528_v20 = vmax.f32 %v1155_v24, %v1158_v40  ;;  %3044 = vmatpush.bf16.msra.mxu3 %v3029_v49  ;;  %v3545_v24 = vld [vmem:[%s4645_s4 + $0x5c] sm:$0xf] }
 0x1f5   : > { %v1894_v47 = vpop.f32.mrf.mxu2  ;;  %v1918_v51 = vpop.f32.mrf.mxu0  ;;  %v3102_v32 = vmul.f32 %v3096_v5, %v4524_v26  ;;  %v3103_v56 = vmul.f32 %v3097_v39, %v4526_v14  ;;  %v3104_v43 = vmul.f32 %v3098_v13, %v4528_v20 }
 0x1f6   : > { %v1969_v25 = vpop.f32.mrf.mxu1  ;;  %v1924_v58 = vadd.f32 %v1918_v51, %v1847_v4  ;;  %v3032_v4 = vsel %vm500_vm0, %v3023_v50, 0 }
 0x1f7   : > { %v1999_v59 = vadd.f32 %v1969_v25, %v1922_v46  ;;  %v1995_v53 = vpop.f32.mrf.mxu3  ;;  %v3105_v62 = vadd.f32 %v3103_v56, %v3102_v32  ;;  %v3020_v18 = vpop.permute.xlu2 %3019 }
 0x1f8   : > { %3535 = vmatmul.msk.bf16.vlgmr.msra.gmra.mxu0 %vm496_vm1, %v4484_v61  ;;  %3536 = vmatmul.msk.bf16.vlgmr.msra.gmra.mxu1 %vm496_vm1, %v4484_v61  ;;  %v3541_v61 = vld [vmem:[%s4645_s4 + $0x58] sm:$0xf]  ;;  %v3024_v57 = vsel %vm3021_vm6, %v3018_v6, %v3020_v18  ;;  %v2001_v36 = vadd.f32 %v1995_v53, %v1924_v58 }
 0x1f9   : > { %v3106_v8 = vadd.f32 %v3105_v62, %v3104_v43  ;;  %2967 = vmatpush.bf16.msra.mxu0 %v2952_v60  ;;  %2980 = vmatpush.bf16.msra.mxu1 %v2955_v63  ;;  %v3035_v17 = vsel %vm500_vm0, %v3024_v57, 0  ;;  %vm3120_vm0 = vcmask 64512  }
 0x1fa   : > { %3538 = vmatmul.msk.bf16.vlgmr.msra.gmra.mxu2 %vm496_vm1, %v4516_v38 }
 0x1fb   : > { %2993 = vmatpush.bf16.msra.mxu2 %v2958_v42  ;;  %3107 = vadd.xlane.f32.xlu2 %v3106_v8 }
 0x1fd   : > { %v1982_v10 = vpop.f32.mrf.mxu2  ;;  %v1920_v28 = vpop.f32.mrf.mxu0 }
 0x1fe   : > { %v2000_v12 = vadd.f32 %v1982_v10, %v1923_v52  ;;  %v1971_v0 = vpop.f32.mrf.mxu1 }
 0x1ff   : > { %v1997_v54 = vpop.f32.mrf.mxu3 }
 0x202   : > { %3544 = vmatmul.msk.bf16.vlgmr.msrb.gmra.mxu3 %vm496_vm1, %v3541_v61 }
 0x205   : > { %v1984_v22 = vpop.f32.mrf.mxu2  ;;  %v2046_v11 = vpop.f32.mrf.mxu0 }
 0x206   : > { %v2059_v44 = vpop.f32.mrf.mxu1  ;;  %v2076_v15 = vadd.f32 %v2046_v11, %v1999_v59 }
 0x207   : > { %v2077_v16 = vadd.f32 %v2059_v44, %v2000_v12  ;;  %v2122_v2 = vpop.f32.mrf.mxu3 }
 0x208   : > { %3540 = vmatmul.msk.bf16.vlgmr.msrb.gmra.mxu0 %vm496_vm1, %v4516_v38  ;;  %3542 = vmatmul.msk.bf16.vlgmr.msrb.gmra.mxu1 %vm496_vm1, %v3541_v61  ;;  %v2152_v41 = vadd.f32 %v2122_v2, %v2076_v15 }
 0x209   : > { %3057 = vmatpush.bf16.msrb.mxu0 %v3032_v4  ;;  %3070 = vmatpush.bf16.msrb.mxu1 %v3035_v17 }
 0x20a   : > { %3543 = vmatmul.msk.bf16.vlgmr.msrb.gmra.mxu2 %vm496_vm1, %v3541_v61 }
 0x20d   : > { %v2072_v23 = vpop.f32.mrf.mxu2  ;;  %v2048_v27 = vpop.f32.mrf.mxu0 }
 0x20e   : > { %v2078_v3 = vadd.f32 %v2072_v23, %v2001_v36  ;;  %v2061_v21 = vpop.f32.mrf.mxu1 }
 0x20f   : > { %v2124_v29 = vpop.f32.mrf.mxu3 }
 0x212   : > { %3550 = vmatmul.msk.bf16.vlgmr.msra.gmra.mxu3 %vm496_vm1, %v3549_v1 }
 0x215   : > { %v2074_v31 = vpop.f32.mrf.mxu2  ;;  %v2135_v33 = vpop.f32.mrf.mxu0 }
 0x216   : > { %v2148_v34 = vpop.f32.mrf.mxu1  ;;  %v2153_v38 = vadd.f32 %v2135_v33, %v2077_v16 }
 0x217   : > { %v2154_v35 = vadd.f32 %v2148_v34, %v2078_v3  ;;  %v2212_v55 = vpop.f32.mrf.mxu3 }
 0x218   : > { %v2230_v40 = vadd.f32 %v2212_v55, %v2153_v38  ;;  %3546 = vmatmul.msk.bf16.vlgmr.msra.gmra.mxu0 %vm496_vm1, %v3545_v24  ;;  %3547 = vmatmul.msk.bf16.vlgmr.msra.gmra.mxu1 %vm496_vm1, %v3545_v24 }
 0x21a   : > { %3548 = vmatmul.msk.bf16.vlgmr.msra.gmra.mxu2 %vm496_vm1, %v3545_v24 }
 0x21d   : > { %v2199_v7 = vpop.f32.mrf.mxu2  ;;  %v2137_v45 = vpop.f32.mrf.mxu0 }
 0x21e   : > { %v2229_v9 = vadd.f32 %v2199_v7, %v2152_v41  ;;  %v2150_v46 = vpop.f32.mrf.mxu1 }
 0x21f   : > { %v2214_v47 = vpop.f32.mrf.mxu3 }
 0x225   : > { %v2201_v48 = vpop.f32.mrf.mxu2  ;;  %v2225_v49 = vpop.f32.mrf.mxu0 }
 0x226   : > { %v2276_v37 = vpop.f32.mrf.mxu1  ;;  %v2231_v51 = vadd.f32 %v2225_v49, %v2154_v35 }
 0x227   : > { %v2306_v25 = vadd.f32 %v2276_v37, %v2229_v9  ;;  %v2302_v32 = vpop.f32.mrf.mxu3 }
 0x228   : > { %v2308_v56 = vadd.f32 %v2302_v32, %v2231_v51  ;;  %3551 = vmatmul.msk.bf16.vlgmr.msrb.gmra.mxu0 %vm496_vm1, %v3549_v1  ;;  %3552 = vmatmul.msk.bf16.vlgmr.msrb.gmra.mxu1 %vm496_vm1, %v3549_v1 }
 0x22d   : > { %v2289_v58 = vpop.f32.mrf.mxu2  ;;  %v2227_v53 = vpop.f32.mrf.mxu0 }
 0x22e   : > { %v2307_v59 = vadd.f32 %v2289_v58, %v2230_v40  ;;  %v2278_v60 = vpop.f32.mrf.mxu1 }
 0x22f   : > { %v2304_v43 = vpop.f32.mrf.mxu3 }
 0x235   : > { %v2291_v62 = vpop.f32.mrf.mxu2  ;;  %v2353_v63 = vpop.f32.mrf.mxu0 }
 0x236   : > { %v2366_v42 = vpop.f32.mrf.mxu1  ;;  %v2383_v8 = vadd.f32 %v2353_v63, %v2306_v25 }
 0x237   : > { %v2384_v52 = vadd.f32 %v2366_v42, %v2307_v59  ;;  %v2430_v10 = vpop.f32.mrf.mxu3 }
 0x238   : > { %v2460_v12 = vadd.f32 %v2430_v10, %v2383_v8 }
 0x23d   : > { %v2379_v28 = vpop.f32.mrf.mxu2  ;;  %v2355_v54 = vpop.f32.mrf.mxu0 }
 0x23e   : > { %v2385_v0 = vadd.f32 %v2379_v28, %v2308_v56  ;;  %v2368_v61 = vpop.f32.mrf.mxu1 }
 0x23f   : > { %v2432_v6 = vpop.f32.mrf.mxu3 }
 0x245   : > { %v2381_v50 = vpop.f32.mrf.mxu2  ;;  %v2443_v22 = vpop.f32.mrf.mxu0 }
 0x246   : > { %v2456_v11 = vpop.f32.mrf.mxu1  ;;  %v2461_v44 = vadd.f32 %v2443_v22, %v2384_v52 }
 0x247   : > { %v2462_v15 = vadd.f32 %v2456_v11, %v2385_v0  ;;  %v2520_v16 = vpop.f32.mrf.mxu3 }
 0x248   : > { %v2538_v2 = vadd.f32 %v2520_v16, %v2461_v44 }
 0x24d   : > { %v2507_v4 = vpop.f32.mrf.mxu2  ;;  %v2445_v19 = vpop.f32.mrf.mxu0 }
 0x24e   : > { %v2537_v18 = vadd.f32 %v2507_v4, %v2460_v12  ;;  %v2458_v57 = vpop.f32.mrf.mxu1 }
 0x24f   : > { %v2522_v17 = vpop.f32.mrf.mxu3 }
 0x255   : > { %v2509_v36 = vpop.f32.mrf.mxu2  ;;  %v2533_v23 = vpop.f32.mrf.mxu0 }
 0x256   : > { %v2584_v3 = vpop.f32.mrf.mxu1  ;;  %v2539_v27 = vadd.f32 %v2533_v23, %v2462_v15 }
 0x257   : > { %v2614_v21 = vadd.f32 %v2584_v3, %v2537_v18  ;;  %v2610_v29 = vpop.f32.mrf.mxu3 }
 0x258   : > { %v2616_v1 = vadd.f32 %v2610_v29, %v2539_v27 }
 0x25c   : > { %v3083_v23 = vpop.permute.xlu1 %3082 }
 0x25d   : > { %v2597_v31 = vpop.f32.mrf.mxu2  ;;  %v2535_v33 = vpop.f32.mrf.mxu0 }
 0x25e   : > { %v2586_v34 = vpop.f32.mrf.mxu1  ;;  %v2615_v6 = vadd.f32 %v2597_v31, %v2538_v2 }
 0x25f   : > { %v2612_v24 = vpop.f32.mrf.mxu3 }
 0x265   : > { %v2599_v38 = vpop.f32.mrf.mxu2  ;;  %v2661_v35 = vpop.f32.mrf.mxu0 }
 0x266   : > { %v2674_v55 = vpop.f32.mrf.mxu1  ;;  %v2691_v52 = vadd.f32 %v2661_v35, %v2614_v21 }
 0x267   : > { %v2738_v40 = vpop.f32.mrf.mxu3  ;;  %v2692_v22 = vadd.f32 %v2674_v55, %v2615_v6 }
 0x268   : > { %v2768_v10 = vadd.f32 %v2738_v40, %v2691_v52 }
 0x26d   : > { %v2687_v41 = vpop.f32.mrf.mxu2  ;;  %v2663_v7 = vpop.f32.mrf.mxu0 }
 0x26e   : > { %v2676_v9 = vpop.f32.mrf.mxu1  ;;  %v3108_v45 = vpop.xlane.xlu2 %3107  ;;  %v2693_v11 = vadd.f32 %v2687_v41, %v2616_v1 }
 0x26f   : > { %v2740_v46 = vpop.f32.mrf.mxu3  ;;  %v3109_v47 = vmul.f32 0.00390625, %v3108_v45 }
 0x271   : > { %3162 = vmatpush.msrb.mxu3 %v3109_v47 }
 0x275   : > { %v2689_v48 = vpop.f32.mrf.mxu2  ;;  %v2751_v49 = vpop.f32.mrf.mxu0 }
 0x276   : > { %v2764_v37 = vpop.f32.mrf.mxu1  ;;  %v2769_v15 = vadd.f32 %v2751_v49, %v2692_v22 }
 0x277   : > { %v2828_v51 = vpop.f32.mrf.mxu3  ;;  %v2770_v16 = vadd.f32 %v2764_v37, %v2693_v11 }
 0x278   : > { %v2846_v3 = vadd.f32 %v2828_v51, %v2769_v15 }
 0x27d   : > { %v2815_v25 = vpop.f32.mrf.mxu2  ;;  %v2753_v32 = vpop.f32.mrf.mxu0 }
 0x27e   : > { %v2766_v56 = vpop.f32.mrf.mxu1  ;;  %v2845_v54 = vadd.f32 %v2815_v25, %v2768_v10 }
 0x27f   : > { %v2830_v58 = vpop.f32.mrf.mxu3  ;;  %v3118_v56 = vld [vmem:[%s4647_s6] sm:$0xff] }
 0x280   : > { %3554 = vmatmul.msk.f32.vlgmr.msrb.gmra.mxu3 %vm3120_vm0, %v3118_v56 }
 0x285   : > { %v2817_v59 = vpop.f32.mrf.mxu2  ;;  %v2841_v53 = vpop.f32.mrf.mxu0 }
 0x286   : > { %v2892_v60 = vpop.f32.mrf.mxu1  ;;  %v2847_v57 = vadd.f32 %v2841_v53, %v2770_v16 }
 0x287   : > { %v2918_v43 = vpop.f32.mrf.mxu3  ;;  %v2922_v50 = vadd.f32 %v2892_v60, %v2845_v54 }
 0x288   : > { %v2924_v27 = vadd.f32 %v2918_v43, %v2847_v57 }
 0x28d   : > { %v2905_v62 = vpop.f32.mrf.mxu2  ;;  %v2843_v63 = vpop.f32.mrf.mxu0 }
 0x28e   : > { %v2894_v42 = vpop.f32.mrf.mxu1  ;;  %v2923_v21 = vadd.f32 %v2905_v62, %v2846_v3  ;;  %v3170_v62 = vld [vmem:[%s4650_s9] sm:$0xff] }
 0x28f   : > { %v2920_v8 = vpop.f32.mrf.mxu3  ;;  %v3171_v63 = vld [vmem:[%s4651_s10] sm:$0xff] }
 0x295   : > { %v2907_v12 = vpop.f32.mrf.mxu2  ;;  %v2969_v28 = vpop.f32.mrf.mxu0 }
 0x296   : > { %v2982_v0 = vpop.f32.mrf.mxu1  ;;  %v2999_v44 = vadd.f32 %v2969_v28, %v2922_v50 }
 0x297   : > { %v3046_v61 = vpop.f32.mrf.mxu3  ;;  %v3000_v33 = vadd.f32 %v2982_v0, %v2923_v21 }
 0x298   : > { %v3076_v17 = vadd.f32 %v3046_v61, %v2999_v44 }
 0x29a   : > { %v3085_v29 = vadd.f32 %v3083_v23, %v3076_v17 }
 0x29c   : > { %v3088_v1 = vmul.f32 0.01, %v3085_v29 }
 0x29d   : > { %v2995_v4 = vpop.f32.mrf.mxu2  ;;  %v2971_v18 = vpop.f32.mrf.mxu0 }
 0x29e   : > { %v2984_v19 = vpop.f32.mrf.mxu1  ;;  %v3001_v34 = vadd.f32 %v2995_v4, %v2924_v27  ;;  %v3091_v41 = vmax.f32 %v3085_v29, %v3088_v1  ;;  %v3342_v4 = vld [vmem:[%s4654_s13] sm:$0xff] }
 0x29f   : > { %v3048_v36 = vpop.f32.mrf.mxu3 }
 0x2a0   : > { %v3110_v49 = vmul.f32 %v3096_v5, %v3091_v41  ;;  %v3119_v5 = vld [vmem:[%s4648_s7] sm:$0xff] }
 0x2a5   : > { %v2997_v2 = vpop.f32.mrf.mxu2  ;;  %v3059_v31 = vpop.f32.mrf.mxu0 }
 0x2a6   : > { %v3072_v24 = vpop.f32.mrf.mxu1  ;;  %v3077_v38 = vadd.f32 %v3059_v31, %v3000_v33  ;;  %v3238_v33 = vld [vmem:[%s4653_s12] sm:$0xf] }
 0x2a7   : > { %v3078_v35 = vadd.f32 %v3072_v24, %v3001_v34 }
 0x2a8   : > { %v3086_v55 = vadd.f32 %v3083_v23, %v3077_v38 }
 0x2a9   : > { %v3087_v40 = vadd.f32 %v3083_v23, %v3078_v35 }
 0x2aa   : > { %v3089_v7 = vmul.f32 0.01, %v3086_v55 }
 0x2ab   : > { %v3090_v9 = vmul.f32 0.01, %v3087_v40 }
 0x2ac   : > { %v3092_v45 = vmax.f32 %v3086_v55, %v3089_v7 }
 0x2ad   : > { %v3093_v46 = vmax.f32 %v3087_v40, %v3090_v9  ;;  %v3061_v47 = vpop.f32.mrf.mxu0 }
 0x2ae   : > { %v3074_v48 = vpop.f32.mrf.mxu1  ;;  %v3111_v37 = vmul.f32 %v3097_v39, %v3092_v45 }
 0x2af   : > { %v3112_v51 = vmul.f32 %v3098_v13, %v3093_v46  ;;  %v3167_v13 = vld [vmem:[%s4649_s8] sm:$0xff] }
 0x2b0   : > { %v3113_v25 = vadd.f32 %v3111_v37, %v3110_v49 }
 0x2b2   : > { %v3114_v32 = vadd.f32 %v3113_v25, %v3112_v51 }
 0x2b4   : > { %3115 = vadd.xlane.f32.xlu1 %v3114_v32 }
 0x303   : > { %v3164_v30 = vpop.f32.mrf.mxu3 }
 0x327   : > { %v3116_v58 = vpop.xlane.xlu1 %3115 }
 0x328   : > { %v3117_v59 = vmul.f32 0.00390625, %v3116_v58 }
 0x32a   : > { %3139 = vmatpush.msrb.mxu2 %v3117_v59 }
 0x32b   : > { %3553 = vmatmul.msk.f32.vlgmr.msrb.gmra.mxu2 %vm3120_vm0, %v3119_v5 }
 0x3ae   : > { %v3141_v39 = vpop.f32.mrf.mxu2 }
 0x3af   : > { %v3165_v53 = vadd.f32 %v3164_v30, %v3141_v39 }
 0x3b1   : > { %v3168_v60 = vadd.f32 %v3167_v13, %v3165_v53 }
 0x3b3   : > { %v3169_v43 = vmax.f32 %v3168_v60, 0.0 }
 0x3b5   : > { %3190 = vmatpush.msra.mxu2 %v3169_v43 }
 0x3b6   : > { %3555 = vmatmul.msk.f32.vlgmr.msra.gmra.mxu2 %vm3120_vm0, %v3170_v62 }
 0x439   : > { %v3192_v42 = vpop.f32.mrf.mxu2 }
 0x43a   : > { %v3193_v8 = vadd.f32 %v3192_v42, %v3171_v63 }
 0x43c   : > { %v3556_v52 = vmul.f32 -1.442695, %v3193_v8 }
 0x43e   : > { %3610 = vpow2.f32 %v3556_v52 }
 0x444   : > { %v3611_v10 = vpop.eup %3610 }
 0x445   : > { %v3198_v12 = vadd.f32 1.0, %v3611_v10 }
 0x447   : > { %3612 = vrcp.f32 %v3198_v12  ;;  %v3210_v61 = vand.u32 2147483648, %v3198_v12  ;;  %v3208_v50 = vand.u32 2147483647, %v3198_v12  ;;  %vm3204_vm7 = vweird.f32 %v3198_v12 }
 0x449   : > { %v3211_v11 = vor.u32 1.1754944e-38, %v3210_v61  ;;  %vm3209_vm9 = vcmp.eq.f32.partialorder %v3208_v50, 8.507059e+37 }
 0x44d   : > { %v3613_v28 = vpop.eup %3612 }
 0x44e   : > { %v3200_v0 = vmul.f32 %v3613_v28, %v3198_v12  ;;  %vm3205_vm1 = vweird.f32 %v3613_v28 }
 0x44f   : > { %vm3206_vm8 = vmor %vm3204_vm7, %vm3205_vm1 }
 0x450   : > { %v3201_v54 = vsub.f32 1.0, %v3200_v0 }
 0x452   : > { %v3202_v6 = vmul.f32 %v3613_v28, %v3201_v54 }
 0x454   : > { %v3203_v22 = vadd.f32 %v3613_v28, %v3202_v6 }
 0x456   : > { %v3207_v44 = vsel %vm3206_vm8, %v3613_v28, %v3203_v22 }
 0x457   : > { %v3212_v15 = vsel %vm3209_vm9, %v3211_v11, %v3207_v44 }
 0x458   : > { %v3225_v16 = vsub.f32 1.0, %v3212_v15 }
 0x45a   : > { %3228 = vperm.xlu0 %3608, %v3225_v16  }
 0x462   : > { %3216 = vperm.xlu0 %3608, %v3212_v15  }
 0x46a   : > { %3345 = vperm.xlu0 %3608, %v3342_v4  }
 0x4cc   : > { %v3229_v18 = vpop.permute.xlu0 %3228 }
 0x4cd   : > { %v3231_v19 = vmul.f32 %v3229_v18, %v3091_v41  ;;  %v3232_v57 = vmul.f32 %v3229_v18, %v3092_v45  ;;  %v3233_v17 = vmul.f32 %v3229_v18, %v3093_v46 }
 0x4cf   : > { %v3234_v36 = vpack.c.bf16 %v3231_v19, %v3231_v19  ;;  %v3235_v23 = vpack.c.bf16 %v3232_v57, %v3232_v57  ;;  %v3236_v3 = vpack.c.bf16 %v3233_v17, %v3233_v17 }
 0x4d1   : > { %v3244_v27 = vsel %vm3242_vm5, %v3234_v36, 0  ;;  %v3247_v21 = vsel %vm3242_vm5, %v3235_v23, 0  ;;  %v3250_v29 = vsel %vm3242_vm5, %v3236_v3, 0 }
 0x4d2   : > { %3259 = vmatpush.bf16.msra.mxu3 %v3244_v27  ;;  %3272 = vmatpush.bf16.msra.mxu0 %v3247_v21 }
 0x4d3   : > { %3285 = vmatpush.bf16.msra.mxu1 %v3250_v29 }
 0x4d4   : > { %v3217_v34 = vpop.permute.xlu0 %3216 }
 0x4d5   : > { %v3219_v2 = vmul.f32 %v3217_v34, %v4524_v26  ;;  %v3220_v31 = vmul.f32 %v3217_v34, %v4526_v14  ;;  %v3221_v24 = vmul.f32 %v3217_v34, %v4528_v20  ;;  %3557 = vmatmul.msk.bf16.vlgmr.msra.gmra.mxu3 %vm3120_vm0, %v3238_v33  ;;  %3558 = vmatmul.msk.bf16.vlgmr.msra.gmra.mxu0 %vm3120_vm0, %v3238_v33  ;;  %v3237_v14 = vld [vmem:[%s4652_s11] sm:$0xf] }
 0x4d6   : > { %3559 = vmatmul.msk.bf16.vlgmr.msra.gmra.mxu1 %vm3120_vm0, %v3238_v33 }
 0x4d7   : > { %v3222_v1 = vpack.c.bf16 %v3219_v2, %v3219_v2  ;;  %v3223_v38 = vpack.c.bf16 %v3220_v31, %v3220_v31  ;;  %v3224_v35 = vpack.c.bf16 %v3221_v24, %v3221_v24 }
 0x4d9   : > { %v3295_v55 = vsel %vm3242_vm5, %v3222_v1, 0  ;;  %v3298_v40 = vsel %vm3242_vm5, %v3223_v38, 0  ;;  %v3301_v26 = vsel %vm3242_vm5, %v3224_v35, 0 }
 0x4da   : > { %3310 = vmatpush.bf16.msrb.mxu2 %v3295_v55  ;;  %3323 = vmatpush.bf16.msrb.mxu3 %v3298_v40 }
 0x4db   : > { %3336 = vmatpush.bf16.msrb.mxu0 %v3301_v26 }
 0x4dc   : > { %v3346_v49 = vpop.permute.xlu0 %3345 }
 0x4dd   : > { %3560 = vmatmul.msk.bf16.vlgmr.msrb.gmra.mxu2 %vm3120_vm0, %v3237_v14 }
 0x4e5   : > { %3561 = vmatmul.msk.bf16.vlgmr.msrb.gmra.mxu3 %vm3120_vm0, %v3237_v14  ;;  %3562 = vmatmul.msk.bf16.vlgmr.msrb.gmra.mxu0 %vm3120_vm0, %v3237_v14 }
 0x552   : > { %v3274_v20 = vpop.f32.mrf.mxu0 }
 0x553   : > { %v3287_v41 = vpop.f32.mrf.mxu1 }
 0x558   : > { %v3261_v7 = vpop.f32.mrf.mxu3 }
 0x55a   : > { %v3276_v9 = vpop.f32.mrf.mxu0 }
 0x55b   : > { %v3289_v45 = vpop.f32.mrf.mxu1 }
 0x560   : > { %v3263_v46 = vpop.f32.mrf.mxu3  ;;  %v3312_v47 = vpop.f32.mrf.mxu2 }
 0x561   : > { %v3313_v48 = vadd.f32 %v3312_v47, %v3261_v7 }
 0x562   : > { %v3338_v37 = vpop.f32.mrf.mxu0 }
 0x563   : > { %v3348_v51 = vadd.f32 %v3346_v49, %v3313_v48  ;;  %v3339_v25 = vadd.f32 %v3338_v37, %v3287_v41 }
 0x565   : > { %v3351_v32 = vmax.f32 %v3348_v51, 0.0  ;;  %v3350_v56 = vadd.f32 %v3346_v49, %v3339_v25 }
 0x567   : > { %3354 = vst [vmem:[%s467_s20] sm:$0xff] %v3351_v32  ;;  %v3353_v58 = vmax.f32 %v3350_v56, 0.0 }
 0x568   : > { %v3325_v59 = vpop.f32.mrf.mxu3  ;;  %v3314_v5 = vpop.f32.mrf.mxu2 }
 0x569   : > { %3356 = vst [vmem:[%s467_s20 + $0x10] sm:$0xff] %v3353_v58  ;;  %v3326_v30 = vadd.f32 %v3325_v59, %v3274_v20 }
 0x56a   : > { %v3340_v39 = vpop.f32.mrf.mxu0 }
 0x56b   : > { %v3349_v13 = vadd.f32 %v3346_v49, %v3326_v30 }
 0x56d   : > { %v3352_v53 = vmax.f32 %v3349_v13, 0.0 }
 0x56f   : > { %3355 = vst [vmem:[%s467_s20 + $0x8] sm:$0xff] %v3352_v53 }
 0x570   : > { %v3327_v60 = vpop.f32.mrf.mxu3 }
 0x571 PF: > { %s24_s29 = sadd.s32 1, %s3620_s29  }
 0x572   : > { %p21_p4 = scmp.ge.s32.totalorder %s24_s29, 4  }
 0x574   :  { %23 = sbr.rel (!%p21_p4) target bundleno = 1 (0x1), region = 141 }

</bundles_post_ra>
